<compile_context>
chip_gen: v7x
topology: tpu7x:2x2x1
jax: 0.10.0
libtpu: 0.0.40
codegen_flags: <defaults>
</compile_context>

<pallas_src>
import numpy as np
import jax
import jax.numpy as jnp
from jax.experimental import pallas as pl
from jax.experimental.pallas import tpu as pltpu


# ----------------------------------------------------------------------------
# Host-side banded ("Toeplitz") weight matrices (numpy, built once per params).
# ----------------------------------------------------------------------------
def _valid_pool_bands(w, w_in):
    """5x5 VALID conv immediately followed by a 2x2 maxpool along W.

    Returns one (kh*w_in*ci, 2*wp*co) matrix: first wp*co output columns are
    the pre-pool EVEN output columns, last wp*co the ODD ones (W-pool becomes a
    single elementwise max in-kernel).  Rows are ordered (height-tap di, input
    column, input channel) to match the lane-concatenated im2col slab.
    """
    kh, kw, ci, co = w.shape
    w_out = w_in - kw + 1
    wp = w_out // 2
    even = np.zeros((kh, w_in * ci, wp * co), np.float32)
    odd = np.zeros((kh, w_in * ci, wp * co), np.float32)
    for di in range(kh):
        for jj in range(wp):
            for dj in range(kw):
                te = 2 * jj + dj
                to = 2 * jj + 1 + dj
                even[di, te * ci:(te + 1) * ci, jj * co:(jj + 1) * co] = w[di, dj]
                odd[di, to * ci:(to + 1) * ci, jj * co:(jj + 1) * co] = w[di, dj]
    return np.concatenate([even.reshape(kh * w_in * ci, wp * co),
                           odd.reshape(kh * w_in * ci, wp * co)], axis=1)


def _same3_band(w, wd):
    """3x3 SAME conv as one (3*wd*ci, wd*co) matrix (W zero-padding folded in).

    Row block 0 multiplies the down-shifted slab (input row i-1), block 1 the
    unshifted slab, block 2 the up-shifted slab (input row i+1) — matching the
    in-kernel lane-concatenated [a_dn | a | a_up] slab.
    """
    kh, kw, ci, co = w.shape
    band = np.zeros((kh, wd * ci, wd * co), np.float32)
    for di in range(kh):
        for j in range(wd):
            for dj in range(kw):
                t = j + dj - 1
                if 0 <= t < wd:
                    band[di, t * ci:(t + 1) * ci, j * co:(j + 1) * co] = w[di, dj]
    return band.reshape(kh * wd * ci, wd * co)


def _fc_mat(fcw):
    """Fold torch's NCHW-order flatten into fc; pad N 10->128 (lane-dense out)."""
    out = np.zeros((4, 4 * 32, 128), np.float32)
    for h in range(4):
        for w_ in range(4):
            for c in range(32):
                out[h, w_ * 32 + c, :10] = fcw[c * 16 + h * 4 + w_, :]
    return out.reshape(512, 128)


# ----------------------------------------------------------------------------
# The single fused kernel
# ----------------------------------------------------------------------------
def _net_kernel(x_ref,
                w1_ref, b1_ref,
                r1a_ref, r1ab_ref, r1b_ref, r1bb_ref,
                w2_ref, b2_ref,
                r2a_ref, r2ab_ref, r2b_ref, r2bb_ref,
                fcw_ref, fcb_ref,
                out_ref):
    f32 = jnp.float32
    x = x_ref[...]                                  # (bb, 28, 28), compute dtype
    bb = x.shape[0]
    cdt = x.dtype

    def mm(a, w_ref):                               # MXU, f32 accumulation
        return jnp.dot(a, w_ref[...], preferred_element_type=f32)

    def conv_pool(a3, h_out, kdim, ndim, w_ref, b_ref):
        # 5x5 VALID conv + ReLU + 2x2 maxpool:
        #   5 height taps fused along K (im2col slab), even/odd pre-pool output
        #   columns fused along N -> ONE matmul, then max (W-pool), relu, H-pool.
        s = jnp.concatenate([a3[:, di:di + h_out, :] for di in range(5)], axis=-1)
        y = mm(s.reshape(bb * h_out, kdim), w_ref)               # (bb*h_out, 2*ndim)
        y = jnp.maximum(jnp.maximum(y[:, :ndim], y[:, ndim:]) + b_ref[...], 0.0)
        y = y.reshape(bb * (h_out // 2), 2, ndim)                # H-pool (no strided
        return jnp.maximum(y[:, 0, :], y[:, 1, :])               #  sublane slices)

    def same3(a2, hh, wc, band_ref, brow_ref):
        # 3x3 SAME conv: H padding via shifted VIEWS (no shift matmuls),
        # three height taps fused along K -> ONE matmul.
        a3 = a2.reshape(bb, hh, wc)
        zrow = jnp.zeros((bb, 1, wc), a2.dtype)
        ap = jnp.concatenate([zrow, a3, zrow], axis=1)           # (bb, hh+2, wc)
        slab = jnp.concatenate(
            [ap[:, 0:hh, :], a3, ap[:, 2:hh + 2, :]], axis=-1)   # [row-1 | row | row+1]
        return mm(slab.reshape(bb * hh, 3 * wc), band_ref) + brow_ref[...]

    def res_block(a, hh, wc, wa_ref, ba_ref, wb_ref, bb2_ref):
        z = jnp.maximum(same3(a.astype(cdt), hh, wc, wa_ref, ba_ref), 0.0)
        z = same3(z.astype(cdt), hh, wc, wb_ref, bb2_ref)
        return jnp.maximum(a + z, 0.0)

    # conv1 (5x5 VALID, 1->16) + relu + pool : 28x28x1 -> 12x12x16
    a = conv_pool(x, 24, 5 * 28, 12 * 16, w1_ref, b1_ref)        # (bb*12, 192) f32
    # residual block 1 (16 ch, 12x12)
    a = res_block(a, 12, 192, r1a_ref, r1ab_ref, r1b_ref, r1bb_ref)
    # conv2 (5x5 VALID, 16->32) + relu + pool : 12x12x16 -> 4x4x32
    a = conv_pool(a.astype(cdt).reshape(bb, 12, 192), 8, 5 * 192, 4 * 32,
                  w2_ref, b2_ref)                                # (bb*4, 128) f32
    # residual block 2 (32 ch, 4x4)
    a = res_block(a, 4, 128, r2a_ref, r2ab_ref, r2b_ref, r2bb_ref)
    # flatten (NCHW order folded into fcw) + fc; output padded to 128 lanes
    out = mm(a.astype(cdt).reshape(bb, 512), fcw_ref) + fcb_ref[...]
    out_ref[...] = out.astype(out_ref.dtype)


# ----------------------------------------------------------------------------
# Factory: build constants ONCE per parameter set, return the forward closure.
# ----------------------------------------------------------------------------
def make_net_forward(params, compute_dtype=jnp.bfloat16, block_batch=32):
    p = {k: np.asarray(v, np.float32) for k, v in params.items()}

    w1 = _valid_pool_bands(p["conv1_w"], 28)              # (140, 384)
    b1 = np.tile(p["conv1_b"], 12).reshape(1, 192)
    r1a = _same3_band(p["rb1_w1"], 12)                    # (576, 192)
    r1ab = np.tile(p["rb1_b1"], 12).reshape(1, 192)
    r1b = _same3_band(p["rb1_w2"], 12)
    r1bb = np.tile(p["rb1_b2"], 12).reshape(1, 192)
    w2 = _valid_pool_bands(p["conv2_w"], 12)              # (960, 256)
    b2 = np.tile(p["conv2_b"], 4).reshape(1, 128)
    r2a = _same3_band(p["rb2_w1"], 4)                     # (384, 128)
    r2ab = np.tile(p["rb2_b1"], 4).reshape(1, 128)
    r2b = _same3_band(p["rb2_w2"], 4)
    r2bb = np.tile(p["rb2_b2"], 4).reshape(1, 128)
    fcw = _fc_mat(p["fc_w"])                              # (512, 128)
    fcb = np.pad(p["fc_b"].reshape(1, 10), ((0, 0), (0, 118)))

    # MXU operands in compute_dtype (bf16 = native MXU rate on v5e/v6e/v7x);
    # biases stay f32 (added post-accumulation).  Uploaded once, closed over.
    consts = tuple(jnp.asarray(a, dt) for a, dt in [
        (w1, compute_dtype), (b1, jnp.float32),
        (r1a, compute_dtype), (r1ab, jnp.float32),
        (r1b, compute_dtype), (r1bb, jnp.float32),
        (w2, compute_dtype), (b2, jnp.float32),
        (r2a, compute_dtype), (r2ab, jnp.float32),
        (r2b, compute_dtype), (r2bb, jnp.float32),
        (fcw, compute_dtype), (fcb, jnp.float32),
    ])

    @jax.jit
    def _run(xp, *cs):
        n_pad = xp.shape[0]
        bb = n_pad if n_pad <= block_batch else block_batch
        in_specs = [pl.BlockSpec((bb, 28, 28), lambda i: (i, 0, 0))]
        in_specs += [pl.BlockSpec(c.shape, lambda i: (0, 0)) for c in cs]
        out = pl.pallas_call(
            _net_kernel,
            out_shape=jax.ShapeDtypeStruct((n_pad, 128), jnp.float32),
            grid=(n_pad // bb,),
            in_specs=in_specs,
            out_specs=pl.BlockSpec((bb, 128), lambda i: (i, 0)),
            compiler_params=pltpu.CompilerParams(
                dimension_semantics=("parallel",),        # megacore-shard batch steps
                vmem_limit_bytes=32 * 1024 * 1024),       # v5e default is only 16 MiB
        )(xp, *cs)
        return out[:, :10]

    def forward(x_nchw):
        n, c_in, hh, ww = x_nchw.shape
        assert (c_in, hh, ww) == (1, 28, 28), "Net expects (N, 1, 28, 28) inputs"
        bb = n if n <= block_batch else block_batch       # for v7x, pick block_batch
        n_pad = -(-n // bb) * bb                          # <= n//2 to keep >=2 steps
        x = jnp.asarray(x_nchw, compute_dtype).reshape(n, 28, 28)
        if n_pad != n:
            x = jnp.pad(x, ((0, n_pad - n), (0, 0), (0, 0)))
        return _run(x, *consts)[:n]

    return forward


# ----------------------------------------------------------------------------
# Deterministic synthetic parameters (shapes from Net.__init__, HWIO weights)
# ----------------------------------------------------------------------------
def init_params(key):
    ks = jax.random.split(key, 14)

    def conv_w(k, kh, kw, cin, cout):
        scale = 1.0 / np.sqrt(kh * kw * cin)
        return scale * jax.random.normal(k, (kh, kw, cin, cout), jnp.float32)

    def bias(k, c):
        return 0.01 * jax.random.normal(k, (c,), jnp.float32)

    return {
        "conv1_w": conv_w(ks[0], 5, 5, 1, 16),   "conv1_b": bias(ks[1], 16),
        "rb1_w1":  conv_w(ks[2], 3, 3, 16, 16),  "rb1_b1":  bias(ks[3], 16),
        "rb1_w2":  conv_w(ks[4], 3, 3, 16, 16),  "rb1_b2":  bias(ks[5], 16),
        "conv2_w": conv_w(ks[6], 5, 5, 16, 32),  "conv2_b": bias(ks[7], 32),
        "rb2_w1":  conv_w(ks[8], 3, 3, 32, 32),  "rb2_b1":  bias(ks[9], 32),
        "rb2_w2":  conv_w(ks[10], 3, 3, 32, 32), "rb2_b2":  bias(ks[11], 32),
        "fc_w":    (1.0 / np.sqrt(512)) *
                   jax.random.normal(ks[12], (512, 10), jnp.float32),
        "fc_b":    0.01 * jax.random.normal(ks[13], (10,), jnp.float32),
    }


# ----------------------------------------------------------------------------
# Pure-JAX reference (correctness check only)
# ----------------------------------------------------------------------------
def _ref_conv(x, w, b, padding):
    out = jax.lax.conv_general_dilated(
        x, w, window_strides=(1, 1), padding=padding,
        dimension_numbers=("NHWC", "HWIO", "NHWC"))
    return out + b.reshape(1, 1, 1, -1)


def _ref_maxpool(x):
    return jax.lax.reduce_window(x, -jnp.inf, jax.lax.max,
                                 (1, 2, 2, 1), (1, 2, 2, 1), "VALID")


def net_forward_ref(params, x_nchw):
    x = jnp.transpose(x_nchw, (0, 2, 3, 1))
    x = _ref_maxpool(jax.nn.relu(_ref_conv(x, params["conv1_w"], params["conv1_b"], "VALID")))
    y = jax.nn.relu(_ref_conv(x, params["rb1_w1"], params["rb1_b1"], "SAME"))
    y = _ref_conv(y, params["rb1_w2"], params["rb1_b2"], "SAME")
    x = jax.nn.relu(x + y)
    x = _ref_maxpool(jax.nn.relu(_ref_conv(x, params["conv2_w"], params["conv2_b"], "VALID")))
    y = jax.nn.relu(_ref_conv(x, params["rb2_w1"], params["rb2_b1"], "SAME"))
    y = _ref_conv(y, params["rb2_w2"], params["rb2_b2"], "SAME")
    x = jax.nn.relu(x + y)
    flat = jnp.transpose(x, (0, 3, 1, 2)).reshape(x.shape[0], -1)
    return flat @ params["fc_w"] + params["fc_b"].reshape(1, -1)


# ----------------------------------------------------------------------------
if __name__ == "__main__":
    # fc expects 512 = 32*4*4 features => 28x28 single-channel input (MNIST-like).
    x = jax.random.normal(jax.random.PRNGKey(0), (2, 1, 28, 28), jnp.float32)
    params = init_params(jax.random.PRNGKey(42))
    ref = net_forward_ref(params, x)

    # f32 MXU operands: tight check of the banded-matrix / fused-pool /
    # shifted-view / folded-flatten formulation.
    out_f32 = jax.block_until_ready(make_net_forward(params, jnp.float32)(x))
    assert out_f32.shape == (2, 10), out_f32.shape
    np.testing.assert_allclose(np.asarray(out_f32), np.asarray(ref),
                               rtol=2e-3, atol=2e-3)

    # bf16 MXU operands (production path): looser tolerance for bf16 quantization
    # with f32 accumulation through 7 matmul stages.
    out_bf16 = jax.block_until_ready(make_net_forward(params, jnp.bfloat16)(x))
    assert out_bf16.shape == (2, 10), out_bf16.shape
    np.testing.assert_allclose(np.asarray(out_bf16), np.asarray(ref),
                               rtol=1e-1, atol=1e-1)

    print("KERNEL_OK")
</pallas_src>

<mosaic_0001>
module attributes {stable_mosaic.version = 11 : i64} {
  func.func @_net_kernel(%arg0: i32, %arg1: memref<2x28x28xf32, #tpu.memory_space<vmem>>, %arg2: memref<140x384xf32, #tpu.memory_space<vmem>>, %arg3: memref<1x192xf32, #tpu.memory_space<vmem>>, %arg4: memref<576x192xf32, #tpu.memory_space<vmem>>, %arg5: memref<1x192xf32, #tpu.memory_space<vmem>>, %arg6: memref<576x192xf32, #tpu.memory_space<vmem>>, %arg7: memref<1x192xf32, #tpu.memory_space<vmem>>, %arg8: memref<960x256xf32, #tpu.memory_space<vmem>>, %arg9: memref<1x128xf32, #tpu.memory_space<vmem>>, %arg10: memref<384x128xf32, #tpu.memory_space<vmem>>, %arg11: memref<1x128xf32, #tpu.memory_space<vmem>>, %arg12: memref<384x128xf32, #tpu.memory_space<vmem>>, %arg13: memref<1x128xf32, #tpu.memory_space<vmem>>, %arg14: memref<512x128xf32, #tpu.memory_space<vmem>>, %arg15: memref<1x128xf32, #tpu.memory_space<vmem>>, %arg16: memref<2x128xf32, #tpu.memory_space<vmem>>) attributes {dimension_semantics = [#tpu.dimension_semantics<parallel>], iteration_bounds = array<i64: 1>, scalar_prefetch = 0 : i64, scratch_operands = 0 : i64, tpu.core_type = #tpu.core_type<tc>, window_params = [{transform_indices = @transform_0, window_bounds = array<i64: 2, 28, 28>}, {pipeline_mode = #tpu.pipeline_mode<synchronous>, transform_indices = @transform_1, window_bounds = array<i64: 140, 384>}, {pipeline_mode = #tpu.pipeline_mode<synchronous>, transform_indices = @transform_2, window_bounds = array<i64: 1, 192>}, {pipeline_mode = #tpu.pipeline_mode<synchronous>, transform_indices = @transform_3, window_bounds = array<i64: 576, 192>}, {pipeline_mode = #tpu.pipeline_mode<synchronous>, transform_indices = @transform_4, window_bounds = array<i64: 1, 192>}, {pipeline_mode = #tpu.pipeline_mode<synchronous>, transform_indices = @transform_5, window_bounds = array<i64: 576, 192>}, {pipeline_mode = #tpu.pipeline_mode<synchronous>, transform_indices = @transform_6, window_bounds = array<i64: 1, 192>}, {pipeline_mode = #tpu.pipeline_mode<synchronous>, transform_indices = @transform_7, window_bounds = array<i64: 960, 256>}, {pipeline_mode = #tpu.pipeline_mode<synchronous>, transform_indices = @transform_8, window_bounds = array<i64: 1, 128>}, {pipeline_mode = #tpu.pipeline_mode<synchronous>, transform_indices = @transform_9, window_bounds = array<i64: 384, 128>}, {pipeline_mode = #tpu.pipeline_mode<synchronous>, transform_indices = @transform_10, window_bounds = array<i64: 1, 128>}, {pipeline_mode = #tpu.pipeline_mode<synchronous>, transform_indices = @transform_11, window_bounds = array<i64: 384, 128>}, {pipeline_mode = #tpu.pipeline_mode<synchronous>, transform_indices = @transform_12, window_bounds = array<i64: 1, 128>}, {pipeline_mode = #tpu.pipeline_mode<synchronous>, transform_indices = @transform_13, window_bounds = array<i64: 512, 128>}, {pipeline_mode = #tpu.pipeline_mode<synchronous>, transform_indices = @transform_14, window_bounds = array<i64: 1, 128>}, {transform_indices = @transform_15, window_bounds = array<i64: 2, 128>}]} {
    %c0 = arith.constant 0 : index
    %c0_0 = arith.constant 0 : index
    %c0_1 = arith.constant 0 : index
    %0 = vector.load %arg1[%c0, %c0_0, %c0_1] : memref<2x28x28xf32, #tpu.memory_space<vmem>>, vector<2x28x28xf32>
    %1 = vector.extract_strided_slice %0 {offsets = [0, 0, 0], sizes = [2, 24, 28], strides = [1, 1, 1]} : vector<2x28x28xf32> to vector<2x24x28xf32>
    %2 = vector.extract_strided_slice %0 {offsets = [0, 1, 0], sizes = [2, 24, 28], strides = [1, 1, 1]} : vector<2x28x28xf32> to vector<2x24x28xf32>
    %3 = vector.extract_strided_slice %0 {offsets = [0, 2, 0], sizes = [2, 24, 28], strides = [1, 1, 1]} : vector<2x28x28xf32> to vector<2x24x28xf32>
    %4 = vector.extract_strided_slice %0 {offsets = [0, 3, 0], sizes = [2, 24, 28], strides = [1, 1, 1]} : vector<2x28x28xf32> to vector<2x24x28xf32>
    %5 = vector.extract_strided_slice %0 {offsets = [0, 4, 0], sizes = [2, 24, 28], strides = [1, 1, 1]} : vector<2x28x28xf32> to vector<2x24x28xf32>
    %6 = tpu.concatenate %1, %2, %3, %4, %5 in 2 : vector<2x24x28xf32>, vector<2x24x28xf32>, vector<2x24x28xf32>, vector<2x24x28xf32>, vector<2x24x28xf32> -> vector<2x24x140xf32>
    %7 = vector.shape_cast %6 : vector<2x24x140xf32> to vector<48x140xf32>
    %c0_2 = arith.constant 0 : index
    %c0_3 = arith.constant 0 : index
    %8 = vector.load %arg2[%c0_2, %c0_3] : memref<140x384xf32, #tpu.memory_space<vmem>>, vector<140x384xf32>
    %cst = arith.constant dense<0.000000e+00> : vector<48x384xf32>
    %9 = tpu.matmul %7, %8, %cst {dimension_numbers = #tpu.dot_dimension_numbers<[1], [0], [0], [1], [0, 0, 1, 1], [], []>} : vector<48x140xf32>, vector<140x384xf32>, vector<48x384xf32> -> vector<48x384xf32>
    %10 = vector.extract_strided_slice %9 {offsets = [0, 0], sizes = [48, 192], strides = [1, 1]} : vector<48x384xf32> to vector<48x192xf32>
    %11 = vector.extract_strided_slice %9 {offsets = [0, 192], sizes = [48, 192], strides = [1, 1]} : vector<48x384xf32> to vector<48x192xf32>
    %12 = arith.maximumf %10, %11 : vector<48x192xf32>
    %c0_4 = arith.constant 0 : index
    %c0_5 = arith.constant 0 : index
    %13 = vector.load %arg3[%c0_4, %c0_5] : memref<1x192xf32, #tpu.memory_space<vmem>>, vector<1x192xf32>
    %14 = vector.broadcast %13 : vector<1x192xf32> to vector<48x192xf32>
    %15 = arith.addf %12, %14 : vector<48x192xf32>
    %cst_6 = arith.constant 0.000000e+00 : f32
    %16 = vector.broadcast %cst_6 : f32 to vector<48x192xf32>
    %17 = arith.maximumf %15, %16 : vector<48x192xf32>
    %18 = vector.shape_cast %17 : vector<48x192xf32> to vector<24x2x192xf32>
    %19 = vector.extract_strided_slice %18 {offsets = [0, 0, 0], sizes = [24, 1, 192], strides = [1, 1, 1]} : vector<24x2x192xf32> to vector<24x1x192xf32>
    %20 = vector.shape_cast %19 : vector<24x1x192xf32> to vector<24x192xf32>
    %21 = vector.extract_strided_slice %18 {offsets = [0, 1, 0], sizes = [24, 1, 192], strides = [1, 1, 1]} : vector<24x2x192xf32> to vector<24x1x192xf32>
    %22 = vector.shape_cast %21 : vector<24x1x192xf32> to vector<24x192xf32>
    %23 = arith.maximumf %20, %22 : vector<24x192xf32>
    %24 = vector.shape_cast %23 : vector<24x192xf32> to vector<2x12x192xf32>
    %cst_7 = arith.constant 0.000000e+00 : f32
    %25 = vector.broadcast %cst_7 : f32 to vector<2x1x192xf32>
    %26 = tpu.concatenate %25, %24, %25 in 1 : vector<2x1x192xf32>, vector<2x12x192xf32>, vector<2x1x192xf32> -> vector<2x14x192xf32>
    %27 = vector.extract_strided_slice %26 {offsets = [0, 0, 0], sizes = [2, 12, 192], strides = [1, 1, 1]} : vector<2x14x192xf32> to vector<2x12x192xf32>
    %28 = vector.extract_strided_slice %26 {offsets = [0, 2, 0], sizes = [2, 12, 192], strides = [1, 1, 1]} : vector<2x14x192xf32> to vector<2x12x192xf32>
    %29 = tpu.concatenate %27, %24, %28 in 2 : vector<2x12x192xf32>, vector<2x12x192xf32>, vector<2x12x192xf32> -> vector<2x12x576xf32>
    %30 = vector.shape_cast %29 : vector<2x12x576xf32> to vector<24x576xf32>
    %c0_8 = arith.constant 0 : index
    %c0_9 = arith.constant 0 : index
    %31 = vector.load %arg4[%c0_8, %c0_9] : memref<576x192xf32, #tpu.memory_space<vmem>>, vector<576x192xf32>
    %cst_10 = arith.constant dense<0.000000e+00> : vector<24x192xf32>
    %32 = tpu.matmul %30, %31, %cst_10 {dimension_numbers = #tpu.dot_dimension_numbers<[1], [0], [0], [1], [0, 0, 1, 1], [], []>} : vector<24x576xf32>, vector<576x192xf32>, vector<24x192xf32> -> vector<24x192xf32>
    %c0_11 = arith.constant 0 : index
    %c0_12 = arith.constant 0 : index
    %33 = vector.load %arg5[%c0_11, %c0_12] : memref<1x192xf32, #tpu.memory_space<vmem>>, vector<1x192xf32>
    %34 = vector.broadcast %33 : vector<1x192xf32> to vector<24x192xf32>
    %35 = arith.addf %32, %34 : vector<24x192xf32>
    %cst_13 = arith.constant 0.000000e+00 : f32
    %36 = vector.broadcast %cst_13 : f32 to vector<24x192xf32>
    %37 = arith.maximumf %35, %36 : vector<24x192xf32>
    %38 = vector.shape_cast %37 : vector<24x192xf32> to vector<2x12x192xf32>
    %cst_14 = arith.constant 0.000000e+00 : f32
    %39 = vector.broadcast %cst_14 : f32 to vector<2x1x192xf32>
    %40 = tpu.concatenate %39, %38, %39 in 1 : vector<2x1x192xf32>, vector<2x12x192xf32>, vector<2x1x192xf32> -> vector<2x14x192xf32>
    %41 = vector.extract_strided_slice %40 {offsets = [0, 0, 0], sizes = [2, 12, 192], strides = [1, 1, 1]} : vector<2x14x192xf32> to vector<2x12x192xf32>
    %42 = vector.extract_strided_slice %40 {offsets = [0, 2, 0], sizes = [2, 12, 192], strides = [1, 1, 1]} : vector<2x14x192xf32> to vector<2x12x192xf32>
    %43 = tpu.concatenate %41, %38, %42 in 2 : vector<2x12x192xf32>, vector<2x12x192xf32>, vector<2x12x192xf32> -> vector<2x12x576xf32>
    %44 = vector.shape_cast %43 : vector<2x12x576xf32> to vector<24x576xf32>
    %c0_15 = arith.constant 0 : index
    %c0_16 = arith.constant 0 : index
    %45 = vector.load %arg6[%c0_15, %c0_16] : memref<576x192xf32, #tpu.memory_space<vmem>>, vector<576x192xf32>
    %cst_17 = arith.constant dense<0.000000e+00> : vector<24x192xf32>
    %46 = tpu.matmul %44, %45, %cst_17 {dimension_numbers = #tpu.dot_dimension_numbers<[1], [0], [0], [1], [0, 0, 1, 1], [], []>} : vector<24x576xf32>, vector<576x192xf32>, vector<24x192xf32> -> vector<24x192xf32>
    %c0_18 = arith.constant 0 : index
    %c0_19 = arith.constant 0 : index
    %47 = vector.load %arg7[%c0_18, %c0_19] : memref<1x192xf32, #tpu.memory_space<vmem>>, vector<1x192xf32>
    %48 = vector.broadcast %47 : vector<1x192xf32> to vector<24x192xf32>
    %49 = arith.addf %46, %48 : vector<24x192xf32>
    %50 = arith.addf %23, %49 : vector<24x192xf32>
    %cst_20 = arith.constant 0.000000e+00 : f32
    %51 = vector.broadcast %cst_20 : f32 to vector<24x192xf32>
    %52 = arith.maximumf %50, %51 : vector<24x192xf32>
    %53 = vector.shape_cast %52 : vector<24x192xf32> to vector<2x12x192xf32>
    %54 = vector.extract_strided_slice %53 {offsets = [0, 0, 0], sizes = [2, 8, 192], strides = [1, 1, 1]} : vector<2x12x192xf32> to vector<2x8x192xf32>
    %55 = vector.extract_strided_slice %53 {offsets = [0, 1, 0], sizes = [2, 8, 192], strides = [1, 1, 1]} : vector<2x12x192xf32> to vector<2x8x192xf32>
    %56 = vector.extract_strided_slice %53 {offsets = [0, 2, 0], sizes = [2, 8, 192], strides = [1, 1, 1]} : vector<2x12x192xf32> to vector<2x8x192xf32>
    %57 = vector.extract_strided_slice %53 {offsets = [0, 3, 0], sizes = [2, 8, 192], strides = [1, 1, 1]} : vector<2x12x192xf32> to vector<2x8x192xf32>
    %58 = vector.extract_strided_slice %53 {offsets = [0, 4, 0], sizes = [2, 8, 192], strides = [1, 1, 1]} : vector<2x12x192xf32> to vector<2x8x192xf32>
    %59 = tpu.concatenate %54, %55, %56, %57, %58 in 2 : vector<2x8x192xf32>, vector<2x8x192xf32>, vector<2x8x192xf32>, vector<2x8x192xf32>, vector<2x8x192xf32> -> vector<2x8x960xf32>
    %60 = vector.shape_cast %59 : vector<2x8x960xf32> to vector<16x960xf32>
    %c0_21 = arith.constant 0 : index
    %c0_22 = arith.constant 0 : index
    %61 = vector.load %arg8[%c0_21, %c0_22] : memref<960x256xf32, #tpu.memory_space<vmem>>, vector<960x256xf32>
    %cst_23 = arith.constant dense<0.000000e+00> : vector<16x256xf32>
    %62 = tpu.matmul %60, %61, %cst_23 {dimension_numbers = #tpu.dot_dimension_numbers<[1], [0], [0], [1], [0, 0, 1, 1], [], []>} : vector<16x960xf32>, vector<960x256xf32>, vector<16x256xf32> -> vector<16x256xf32>
    %63 = vector.extract_strided_slice %62 {offsets = [0, 0], sizes = [16, 128], strides = [1, 1]} : vector<16x256xf32> to vector<16x128xf32>
    %64 = vector.extract_strided_slice %62 {offsets = [0, 128], sizes = [16, 128], strides = [1, 1]} : vector<16x256xf32> to vector<16x128xf32>
    %65 = arith.maximumf %63, %64 : vector<16x128xf32>
    %c0_24 = arith.constant 0 : index
    %c0_25 = arith.constant 0 : index
    %66 = vector.load %arg9[%c0_24, %c0_25] : memref<1x128xf32, #tpu.memory_space<vmem>>, vector<1x128xf32>
    %67 = vector.broadcast %66 : vector<1x128xf32> to vector<16x128xf32>
    %68 = arith.addf %65, %67 : vector<16x128xf32>
    %cst_26 = arith.constant 0.000000e+00 : f32
    %69 = vector.broadcast %cst_26 : f32 to vector<16x128xf32>
    %70 = arith.maximumf %68, %69 : vector<16x128xf32>
    %71 = vector.shape_cast %70 : vector<16x128xf32> to vector<8x2x128xf32>
    %72 = vector.extract_strided_slice %71 {offsets = [0, 0, 0], sizes = [8, 1, 128], strides = [1, 1, 1]} : vector<8x2x128xf32> to vector<8x1x128xf32>
    %73 = vector.shape_cast %72 : vector<8x1x128xf32> to vector<8x128xf32>
    %74 = vector.extract_strided_slice %71 {offsets = [0, 1, 0], sizes = [8, 1, 128], strides = [1, 1, 1]} : vector<8x2x128xf32> to vector<8x1x128xf32>
    %75 = vector.shape_cast %74 : vector<8x1x128xf32> to vector<8x128xf32>
    %76 = arith.maximumf %73, %75 : vector<8x128xf32>
    %77 = vector.shape_cast %76 : vector<8x128xf32> to vector<2x4x128xf32>
    %cst_27 = arith.constant 0.000000e+00 : f32
    %78 = vector.broadcast %cst_27 : f32 to vector<2x1x128xf32>
    %79 = tpu.concatenate %78, %77, %78 in 1 : vector<2x1x128xf32>, vector<2x4x128xf32>, vector<2x1x128xf32> -> vector<2x6x128xf32>
    %80 = vector.extract_strided_slice %79 {offsets = [0, 0, 0], sizes = [2, 4, 128], strides = [1, 1, 1]} : vector<2x6x128xf32> to vector<2x4x128xf32>
    %81 = vector.extract_strided_slice %79 {offsets = [0, 2, 0], sizes = [2, 4, 128], strides = [1, 1, 1]} : vector<2x6x128xf32> to vector<2x4x128xf32>
    %82 = tpu.concatenate %80, %77, %81 in 2 : vector<2x4x128xf32>, vector<2x4x128xf32>, vector<2x4x128xf32> -> vector<2x4x384xf32>
    %83 = vector.shape_cast %82 : vector<2x4x384xf32> to vector<8x384xf32>
    %c0_28 = arith.constant 0 : index
    %c0_29 = arith.constant 0 : index
    %84 = vector.load %arg10[%c0_28, %c0_29] : memref<384x128xf32, #tpu.memory_space<vmem>>, vector<384x128xf32>
    %cst_30 = arith.constant dense<0.000000e+00> : vector<8x128xf32>
    %85 = tpu.matmul %83, %84, %cst_30 {dimension_numbers = #tpu.dot_dimension_numbers<[1], [0], [0], [1], [0, 0, 1, 1], [], []>} : vector<8x384xf32>, vector<384x128xf32>, vector<8x128xf32> -> vector<8x128xf32>
    %c0_31 = arith.constant 0 : index
    %c0_32 = arith.constant 0 : index
    %86 = vector.load %arg11[%c0_31, %c0_32] : memref<1x128xf32, #tpu.memory_space<vmem>>, vector<1x128xf32>
    %87 = vector.broadcast %86 : vector<1x128xf32> to vector<8x128xf32>
    %88 = arith.addf %85, %87 : vector<8x128xf32>
    %cst_33 = arith.constant 0.000000e+00 : f32
    %89 = vector.broadcast %cst_33 : f32 to vector<8x128xf32>
    %90 = arith.maximumf %88, %89 : vector<8x128xf32>
    %91 = vector.shape_cast %90 : vector<8x128xf32> to vector<2x4x128xf32>
    %cst_34 = arith.constant 0.000000e+00 : f32
    %92 = vector.broadcast %cst_34 : f32 to vector<2x1x128xf32>
    %93 = tpu.concatenate %92, %91, %92 in 1 : vector<2x1x128xf32>, vector<2x4x128xf32>, vector<2x1x128xf32> -> vector<2x6x128xf32>
    %94 = vector.extract_strided_slice %93 {offsets = [0, 0, 0], sizes = [2, 4, 128], strides = [1, 1, 1]} : vector<2x6x128xf32> to vector<2x4x128xf32>
    %95 = vector.extract_strided_slice %93 {offsets = [0, 2, 0], sizes = [2, 4, 128], strides = [1, 1, 1]} : vector<2x6x128xf32> to vector<2x4x128xf32>
    %96 = tpu.concatenate %94, %91, %95 in 2 : vector<2x4x128xf32>, vector<2x4x128xf32>, vector<2x4x128xf32> -> vector<2x4x384xf32>
    %97 = vector.shape_cast %96 : vector<2x4x384xf32> to vector<8x384xf32>
    %c0_35 = arith.constant 0 : index
    %c0_36 = arith.constant 0 : index
    %98 = vector.load %arg12[%c0_35, %c0_36] : memref<384x128xf32, #tpu.memory_space<vmem>>, vector<384x128xf32>
    %cst_37 = arith.constant dense<0.000000e+00> : vector<8x128xf32>
    %99 = tpu.matmul %97, %98, %cst_37 {dimension_numbers = #tpu.dot_dimension_numbers<[1], [0], [0], [1], [0, 0, 1, 1], [], []>} : vector<8x384xf32>, vector<384x128xf32>, vector<8x128xf32> -> vector<8x128xf32>
    %c0_38 = arith.constant 0 : index
    %c0_39 = arith.constant 0 : index
    %100 = vector.load %arg13[%c0_38, %c0_39] : memref<1x128xf32, #tpu.memory_space<vmem>>, vector<1x128xf32>
    %101 = vector.broadcast %100 : vector<1x128xf32> to vector<8x128xf32>
    %102 = arith.addf %99, %101 : vector<8x128xf32>
    %103 = arith.addf %76, %102 : vector<8x128xf32>
    %cst_40 = arith.constant 0.000000e+00 : f32
    %104 = vector.broadcast %cst_40 : f32 to vector<8x128xf32>
    %105 = arith.maximumf %103, %104 : vector<8x128xf32>
    %106 = vector.shape_cast %105 : vector<8x128xf32> to vector<2x512xf32>
    %c0_41 = arith.constant 0 : index
    %c0_42 = arith.constant 0 : index
    %107 = vector.load %arg14[%c0_41, %c0_42] : memref<512x128xf32, #tpu.memory_space<vmem>>, vector<512x128xf32>
    %cst_43 = arith.constant dense<0.000000e+00> : vector<2x128xf32>
    %108 = tpu.matmul %106, %107, %cst_43 {dimension_numbers = #tpu.dot_dimension_numbers<[1], [0], [0], [1], [0, 0, 1, 1], [], []>} : vector<2x512xf32>, vector<512x128xf32>, vector<2x128xf32> -> vector<2x128xf32>
    %c0_44 = arith.constant 0 : index
    %c0_45 = arith.constant 0 : index
    %109 = vector.load %arg15[%c0_44, %c0_45] : memref<1x128xf32, #tpu.memory_space<vmem>>, vector<1x128xf32>
    %110 = vector.broadcast %109 : vector<1x128xf32> to vector<2x128xf32>
    %111 = arith.addf %108, %110 : vector<2x128xf32>
    %c0_46 = arith.constant 0 : index
    %c0_47 = arith.constant 0 : index
    %112 = vector.load %arg16[%c0_46, %c0_47] : memref<2x128xf32, #tpu.memory_space<vmem>>, vector<2x128xf32>
    tpu.vector_store %arg16[%c0_46, %c0_47], %111 {strides = array<i32>} : memref<2x128xf32, #tpu.memory_space<vmem>>, vector<2x128xf32>,
    return
  }
  func.func @transform_0(%arg0: i32) -> (i32, i32, i32) {
    %c0_i32 = arith.constant 0 : i32
    %c0_i32_0 = arith.constant 0 : i32
    %c0_i32_1 = arith.constant 0 : i32
    return %arg0, %c0_i32, %c0_i32_0 : i32, i32, i32
  }
  func.func @transform_1(%arg0: i32) -> (i32, i32) {
    %c0_i32 = arith.constant 0 : i32
    %c0_i32_0 = arith.constant 0 : i32
    %c0_i32_1 = arith.constant 0 : i32
    return %c0_i32, %c0_i32_0 : i32, i32
  }
  func.func @transform_2(%arg0: i32) -> (i32, i32) {
    %c0_i32 = arith.constant 0 : i32
    %c0_i32_0 = arith.constant 0 : i32
    %c0_i32_1 = arith.constant 0 : i32
    return %c0_i32, %c0_i32_0 : i32, i32
  }
  func.func @transform_3(%arg0: i32) -> (i32, i32) {
    %c0_i32 = arith.constant 0 : i32
    %c0_i32_0 = arith.constant 0 : i32
    %c0_i32_1 = arith.constant 0 : i32
    return %c0_i32, %c0_i32_0 : i32, i32
  }
  func.func @transform_4(%arg0: i32) -> (i32, i32) {
    %c0_i32 = arith.constant 0 : i32
    %c0_i32_0 = arith.constant 0 : i32
    %c0_i32_1 = arith.constant 0 : i32
    return %c0_i32, %c0_i32_0 : i32, i32
  }
  func.func @transform_5(%arg0: i32) -> (i32, i32) {
    %c0_i32 = arith.constant 0 : i32
    %c0_i32_0 = arith.constant 0 : i32
    %c0_i32_1 = arith.constant 0 : i32
    return %c0_i32, %c0_i32_0 : i32, i32
  }
  func.func @transform_6(%arg0: i32) -> (i32, i32) {
    %c0_i32 = arith.constant 0 : i32
    %c0_i32_0 = arith.constant 0 : i32
    %c0_i32_1 = arith.constant 0 : i32
    return %c0_i32, %c0_i32_0 : i32, i32
  }
  func.func @transform_7(%arg0: i32) -> (i32, i32) {
    %c0_i32 = arith.constant 0 : i32
    %c0_i32_0 = arith.constant 0 : i32
    %c0_i32_1 = arith.constant 0 : i32
    return %c0_i32, %c0_i32_0 : i32, i32
  }
  func.func @transform_8(%arg0: i32) -> (i32, i32) {
    %c0_i32 = arith.constant 0 : i32
    %c0_i32_0 = arith.constant 0 : i32
    %c0_i32_1 = arith.constant 0 : i32
    return %c0_i32, %c0_i32_0 : i32, i32
  }
  func.func @transform_9(%arg0: i32) -> (i32, i32) {
    %c0_i32 = arith.constant 0 : i32
    %c0_i32_0 = arith.constant 0 : i32
    %c0_i32_1 = arith.constant 0 : i32
    return %c0_i32, %c0_i32_0 : i32, i32
  }
  func.func @transform_10(%arg0: i32) -> (i32, i32) {
    %c0_i32 = arith.constant 0 : i32
    %c0_i32_0 = arith.constant 0 : i32
    %c0_i32_1 = arith.constant 0 : i32
    return %c0_i32, %c0_i32_0 : i32, i32
  }
  func.func @transform_11(%arg0: i32) -> (i32, i32) {
    %c0_i32 = arith.constant 0 : i32
    %c0_i32_0 = arith.constant 0 : i32
    %c0_i32_1 = arith.constant 0 : i32
    return %c0_i32, %c0_i32_0 : i32, i32
  }
  func.func @transform_12(%arg0: i32) -> (i32, i32) {
    %c0_i32 = arith.constant 0 : i32
    %c0_i32_0 = arith.constant 0 : i32
    %c0_i32_1 = arith.constant 0 : i32
    return %c0_i32, %c0_i32_0 : i32, i32
  }
  func.func @transform_13(%arg0: i32) -> (i32, i32) {
    %c0_i32 = arith.constant 0 : i32
    %c0_i32_0 = arith.constant 0 : i32
    %c0_i32_1 = arith.constant 0 : i32
    return %c0_i32, %c0_i32_0 : i32, i32
  }
  func.func @transform_14(%arg0: i32) -> (i32, i32) {
    %c0_i32 = arith.constant 0 : i32
    %c0_i32_0 = arith.constant 0 : i32
    %c0_i32_1 = arith.constant 0 : i32
    return %c0_i32, %c0_i32_0 : i32, i32
  }
  func.func @transform_15(%arg0: i32) -> (i32, i32) {
    %c0_i32 = arith.constant 0 : i32
    %c0_i32_0 = arith.constant 0 : i32
    return %arg0, %c0_i32 : i32, i32
  }
}

</mosaic_0001>

<bundles_post_ra>
// kernel: _run.1
= control target key start
LH: loop header
LB: loop body
LE: loop exit
PB: predicated region body
PF: predicated region fallthrough
CT: control target
= control target key end

     0   :  { %20 = vsyncpa [#allocation3], 0  ;;  %s9279_s0 = inlined_call_operand.vmem [shape: f32[2,28,28], index: 0, kind: input, shape index: {}]   ;;  %s9280_s1 = inlined_call_operand.vmem [shape: f32[140,384], index: 1, kind: input, shape index: {}]   ;;  %s9281_s2 = inlined_call_operand.vmem [shape: f32[1,192], index: 2, kind: input, shape index: {}]   ;;  %s9282_s3 = inlined_call_operand.vmem [shape: f32[576,192], index: 3, kind: input, shape index: {}]   ;;  %s9283_s4 = inlined_call_operand.vmem [shape: f32[1,192], index: 4, kind: input, shape index: {}]   ;;  %s9284_s5 = inlined_call_operand.vmem [shape: f32[576,192], index: 5, kind: input, shape index: {}]   ;;  %s9285_s6 = inlined_call_operand.vmem [shape: f32[1,192], index: 6, kind: input, shape index: {}]   ;;  %s9286_s7 = inlined_call_operand.vmem [shape: f32[960,256], index: 7, kind: input, shape index: {}]   ;;  %s9287_s8 = inlined_call_operand.vmem [shape: f32[1,128], index: 8, kind: input, shape index: {}]   ;;  %s9288_s9 = inlined_call_operand.vmem [shape: f32[384,128], index: 9, kind: input, shape index: {}]   ;;  %s9289_s10 = inlined_call_operand.vmem [shape: f32[1,128], index: 10, kind: input, shape index: {}]   ;;  %s9290_s11 = inlined_call_operand.hbm [shape: f32[384,128], index: 11, kind: input, shape index: {}]   ;;  %s9291_s12 = inlined_call_operand.vmem [shape: f32[1,128], index: 12, kind: input, shape index: {}]   ;;  %s9292_s13 = inlined_call_operand.vmem [shape: f32[512,128], index: 13, kind: input, shape index: {}]   ;;  %s9293_s14 = inlined_call_operand.vmem [shape: f32[1,128], index: 14, kind: input, shape index: {}]   ;;  %s9294_s15 = inlined_call_operand.hbm [shape: f32[2,128], index: 15, kind: output, shape index: {}]  }
   0x1   :  { %21 = vsyncpa [#allocation4], 0  ;;  %s5509_s18 = smov [#allocation2]   ;;  %s5461_s22 = scalar_lea.hbm %s9290_s11, 6144 }
   0x2   :  { %s49_s19 = sshll.u32 %s5509_s18, 4  ;;  %p5462_p0 = scmp.ne.s32.totalorder %s9290_s11, %s5461_s22  ;;  %s50_s19 = int_to_ptr.vmem [resolvable:$true] %s49_s19 }
   0x3   :  { %p5465_p1 = scmp.lt.u32.totalorder %s5461_s22, %s9290_s11 }
   0x5   :  { %p5467_p2 = pnand %p5465_p1, %p5462_p0 }
   0x7   :  { %5470 = shalt.err (!%p5467_p2)
}
   0x8   :  { %s5471_s27 = scalar_lea.vmem %s50_s19, 6144  ;;  %p5476_p4 = scmp.lt.s32.totalorder %s50_s19, %s50_s19 }
   0x9   :  { %p5472_p3 = scmp.ne.s32.totalorder %s50_s19, %s5471_s27  ;;  %p5477_p5 = scmp.lt.s32.totalorder %s5471_s27, %s5471_s27 }
   0xb   :  { %p5478_p6 = por %p5477_p5, %p5476_p4 }
   0xd   :  { %p5479_p7 = pnand %p5478_p6, %p5472_p3 }
   0xf   :  { %5482 = shalt.err (!%p5479_p7)
}
  0x10   :  { %s5510_s28 = smov 128   ;;  %s5511_s29 = smov 8  }
  0x11   :  { %55 = dma.hbm_to_vmem [thread:$0]  %s9290_s11, 6144, %s50_s19, [#allocation3], %s5510_s28, %s5510_s28, %s5511_s29  }
  0x12   :  { %5505 = dma.done.wait [#allocation3], 6144  }
  0x13   :  { %5506 = vsyncadd [#allocation3], 4294961152  ;;  %vm81_vm0 = vcmask 1046528   ;;  %v5619_v0 = vld [vmem:[%s9279_s0] sm:$0xff]  ;;  %v5624_v1 = vld [vmem:[%s9279_s0 + $0x8] sm:$0xff]  ;;  %vm147_vm1 = vcmask 1044480  }
  0x14   :  { %v5629_v2 = vld [vmem:[%s9279_s0 + $0x10] sm:$0xff]  ;;  %vm114_vm2 = vcmask 1045504   ;;  %vm180_vm3 = vcmask 1043456   ;;  %v82_v3 = vrot.slane %v5619_v0, 1  ;;  %v83_v4 = vrot.slane %v5624_v1, 1  ;;  %v5651_v16 = vld [vmem:[%s9279_s0 + $0x20] sm:$0xff] }
  0x15   :  { %v85_v5 = vrot.slane %v5629_v2, 1  ;;  %v148_v6 = vrot.slane %v5619_v0, 3  ;;  %v149_v7 = vrot.slane %v5624_v1, 3  ;;  %v151_v8 = vrot.slane %v5629_v2, 3  ;;  %v5646_v15 = vld [vmem:[%s9279_s0 + $0x18] sm:$0xf] }
  0x16   :  { %v115_v9 = vrot.slane %v5619_v0, 2  ;;  %v116_v10 = vrot.slane %v5624_v1, 2  ;;  %v84_v11 = vsel %vm81_vm0, %v82_v3, %v83_v4  ;;  %v118_v13 = vrot.slane %v5629_v2, 2  ;;  %v5656_v17 = vld [vmem:[%s9279_s0 + $0x28] sm:$0xff]  ;;  %s5512_s28 = smov 28   ;;  %s5513_s29 = smov 84  }
  0x17   :  { %v86_v12 = vsel %vm81_vm0, %v83_v4, %v85_v5  ;;  %v181_v14 = vrot.slane %v5619_v0, 4  ;;  %v150_v19 = vsel %vm147_vm1, %v148_v6, %v149_v7  ;;  %v152_v20 = vsel %vm147_vm1, %v149_v7, %v151_v8  ;;  %s5514_s30 = smov 56   ;;  %s5515_s16 = smov 112   ;;  %v5690_v45 = vld [vmem:[%s9279_s0 + $0x30] sm:$0xff]  ;;  %v5695_v46 = vld [vmem:[%s9279_s0 + $0x38] sm:$0xf] }
  0x18   :  { %v5416_v18 = vpack.i.bf16 %v86_v12, %v84_v11  ;;  %v117_v21 = vsel %vm114_vm2, %v115_v9, %v116_v10  ;;  %v5426_v22 = vpack.i.bf16 %v152_v20, %v150_v19  ;;  %v119_v23 = vsel %vm114_vm2, %v116_v10, %v118_v13  ;;  %v242_v47 = vld [vmem:[%s9280_s1 + $0x8] sm:$0xff]  ;;  %v245_v48 = vld [vmem:[%s9280_s1 + $0x20] sm:$0xff]  ;;  %v244_v50 = vld [vmem:[%s9280_s1 + $0x18] sm:$0xff] }
  0x19   :  { %v182_v24 = vrot.slane %v5624_v1, 4  ;;  %v5421_v25 = vpack.i.bf16 %v119_v23, %v117_v21  ;;  %v87_v26 = vrot.slane %v5646_v15, 1  ;;  %v89_v27 = vrot.slane %v5651_v16, 1  ;;  %v241_v49 = vld [vmem:[%s9280_s1] sm:$0xff]  ;;  %v248_v53 = vld [vmem:[%s9280_s1 + $0x38] sm:$0xff]  ;;  %v251_v54 = vld [vmem:[%s9280_s1 + $0x50] sm:$0xff] }
  0x1a   :  { %5417 = vrot.lane.b32.xlu0 %v5416_v18, %s5512_s28  ;;  %v90_v28 = vrot.slane %v5656_v17, 1  ;;  %5427 = vrot.lane.b32.xlu1 %v5426_v22, %s5513_s29  ;;  %v184_v30 = vrot.slane %v5629_v2, 4  ;;  %v120_v31 = vrot.slane %v5646_v15, 2  ;;  %v122_v32 = vrot.slane %v5651_v16, 2  ;;  %v247_v62 = vld [vmem:[%s9280_s1 + $0x30] sm:$0xff]  ;;  %v250_v63 = vld [vmem:[%s9280_s1 + $0x48] sm:$0xff] }
  0x1b   :  { %v183_v29 = vsel %vm180_vm3, %v181_v14, %v182_v24  ;;  %v88_v33 = vsel %vm81_vm0, %v85_v5, %v87_v26  ;;  %v123_v35 = vrot.slane %v5656_v17, 2  ;;  %v153_v36 = vrot.slane %v5646_v15, 3  ;;  %v254_v4 = vld [vmem:[%s9280_s1 + $0x68] sm:$0xff]  ;;  %v257_v5 = vld [vmem:[%s9280_s1 + $0x80] sm:$0xff]  ;;  %v256_v14 = vld [vmem:[%s9280_s1 + $0x78] sm:$0xff] }
  0x1c   :  { %v91_v34 = vsel %vm81_vm0, %v89_v27, %v90_v28  ;;  %v155_v37 = vrot.slane %v5651_v16, 3  ;;  %v156_v38 = vrot.slane %v5656_v17, 3  ;;  %v185_v39 = vsel %vm180_vm3, %v182_v24, %v184_v30  ;;  %v263_v18 = vld [vmem:[%s9280_s1 + $0xb0] sm:$0xff]  ;;  %v262_v26 = vld [vmem:[%s9280_s1 + $0xa8] sm:$0xff] }
  0x1d   :  { %v5431_v40 = vpack.i.bf16 %v91_v34, %v88_v33  ;;  %v121_v41 = vsel %vm114_vm2, %v118_v13, %v120_v31  ;;  %v124_v42 = vsel %vm114_vm2, %v122_v32, %v123_v35  ;;  %v154_v43 = vsel %vm147_vm1, %v151_v8, %v153_v36  ;;  %v253_v13 = vld [vmem:[%s9280_s1 + $0x60] sm:$0xff]  ;;  %v266_v27 = vld [vmem:[%s9280_s1 + $0xc8] sm:$0xff]  ;;  %v268_v36 = vld [vmem:[%s9280_s1 + $0xd8] sm:$0xff] }
  0x1e   :  { %5422 = vrot.lane.b32.xlu0 %v5421_v25, %s5514_s30  ;;  %195 = vrot.lane.b32.xlu1 %v183_v29, %s5515_s16  ;;  %v157_v44 = vsel %vm147_vm1, %v155_v37, %v156_v38  ;;  %v5436_v51 = vpack.i.bf16 %v124_v42, %v121_v41  ;;  %v186_v52 = vrot.slane %v5646_v15, 4  ;;  %v92_v56 = vrot.slane %v5690_v45, 1  ;;  %v260_v15 = vld [vmem:[%s9280_s1 + $0x98] sm:$0xff]  ;;  %v259_v25 = vld [vmem:[%s9280_s1 + $0x90] sm:$0xff] }
  0x1f   :  { %v5441_v55 = vpack.i.bf16 %v157_v44, %v154_v43  ;;  %v94_v57 = vrot.slane %v5695_v46, 1  ;;  %v188_v58 = vrot.slane %v5651_v16, 4  ;;  %v189_v59 = vrot.slane %v5656_v17, 4  ;;  %v272_v37 = vld [vmem:[%s9280_s1 + $0xf8] sm:$0xff]  ;;  %v271_v44 = vld [vmem:[%s9280_s1 + $0xf0] sm:$0xff] }
  0x20   :  { %v4583_v60 = vpack.c.bf16 %v245_v48, %v242_v47  ;;  %v4585_v61 = vpack.c.bf16 %v244_v50, %v241_v49  ;;  %v4587_v3 = vpack.c.bf16 %v251_v54, %v248_v53  ;;  %v187_v6 = vsel %vm180_vm3, %v184_v30, %v186_v52  ;;  %v274_v47 = vld [vmem:[%s9280_s1 + $0x108] sm:$0xff]  ;;  %v277_v52 = vld [vmem:[%s9280_s1 + $0x120] sm:$0xff]  ;;  %v280_v53 = vld [vmem:[%s9280_s1 + $0x138] sm:$0xff] }
  0x21   :  { %v93_v7 = vsel %vm81_vm0, %v90_v28, %v92_v56  ;;  %v95_v8 = vsel %vm81_vm0, %v92_v56, %v94_v57  ;;  %v4589_v9 = vpack.c.bf16 %v250_v63, %v247_v62  ;;  %v190_v10 = vsel %vm180_vm3, %v188_v58, %v189_v59  ;;  %v269_v28 = vld [vmem:[%s9280_s1 + $0xe0] sm:$0xff]  ;;  %v278_v48 = vld [vmem:[%s9280_s1 + $0x128] sm:$0xff]  ;;  %v284_v54 = vld [vmem:[%s9280_s1 + $0x158] sm:$0xff] }
  0x22   :  { %197 = vrot.lane.b32.xlu0 %v185_v39, %s5515_s16  ;;  %5432 = vrot.lane.b32.xlu1 %v5431_v40, %s5512_s28  ;;  %v125_v11 = vrot.slane %v5690_v45, 2  ;;  %v4591_v12 = vpack.c.bf16 %v257_v5, %v254_v4  ;;  %v5446_v19 = vpack.i.bf16 %v95_v8, %v93_v7  ;;  %v158_v20 = vrot.slane %v5690_v45, 3  ;;  %v283_v58 = vld [vmem:[%s9280_s1 + $0x150] sm:$0xff]  ;;  %v292_v4 = vld [vmem:[%s9280_s1 + $0x198] sm:$0xf] }
  0x23   :  { %4584 = vmatprep.subr.bf16.mxu1 %v4583_v60  ;;  %v4593_v21 = vpack.c.bf16 %v256_v14, %v253_v13  ;;  %v191_v23 = vrot.slane %v5690_v45, 4  ;;  %v4595_v24 = vpack.c.bf16 %v263_v18, %v260_v15  ;;  %v127_v30 = vrot.slane %v5695_v46, 2  ;;  %v290_v60 = vld [vmem:[%s9280_s1 + $0x188] sm:$0xff]  ;;  %v243_v14 = vld [vmem:[%s9280_s1 + $0x10] sm:$0xff] }
  0x24   :  { %4586 = vmatpush1.bf16.msra.mxu1 %v4585_v61  ;;  %v126_v22 = vsel %vm114_vm2, %v123_v35, %v125_v11  ;;  %v159_v29 = vsel %vm147_vm1, %v156_v38, %v158_v20  ;;  %v4597_v31 = vpack.c.bf16 %v262_v26, %v259_v25  ;;  %v160_v33 = vrot.slane %v5695_v46, 3  ;;  %v265_v35 = vld [vmem:[%s9280_s1 + $0xc0] sm:$0xff]  ;;  %v275_v38 = vld [vmem:[%s9280_s1 + $0x110] sm:$0xff]  ;;  %v246_v15 = vld [vmem:[%s9280_s1 + $0x28] sm:$0xff] }
  0x25   :  { %4588 = vmatprep.subr.bf16.mxu1 %v4587_v3  ;;  %v192_v32 = vsel %vm180_vm3, %v189_v59, %v191_v23  ;;  %v4599_v34 = vpack.c.bf16 %v269_v28, %v266_v27  ;;  %v128_v39 = vsel %vm114_vm2, %v125_v11, %v127_v30  ;;  %v193_v40 = vrot.slane %v5695_v46, 4  ;;  %v281_v46 = vld [vmem:[%s9280_s1 + $0x140] sm:$0xff]  ;;  %v286_v59 = vld [vmem:[%s9280_s1 + $0x168] sm:$0xff] }
  0x26   :  { %5437 = vrot.lane.b32.xlu0 %v5436_v51, %s5514_s30  ;;  %5442 = vrot.lane.b32.xlu1 %v5441_v55, %s5513_s29  ;;  %v4601_v41 = vpack.c.bf16 %v268_v36, %v265_v35  ;;  %v161_v42 = vsel %vm147_vm1, %v158_v20, %v160_v33  ;;  %v4603_v43 = vpack.c.bf16 %v275_v38, %v272_v37  ;;  %v287_v55 = vld [vmem:[%s9280_s1 + $0x170] sm:$0xff]  ;;  %v293_v61 = vld [vmem:[%s9280_s1 + $0x1a0] sm:$0xf]  ;;  %vm5516_vm4 = vmmov 1  }
  0x27   :  { %v194_v49 = vsel %vm180_vm3, %v191_v23, %v193_v40  ;;  %v4605_v50 = vpack.c.bf16 %v274_v47, %v271_v44  ;;  %v4607_v51 = vpack.c.bf16 %v281_v46, %v278_v48  ;;  %v4609_v56 = vpack.c.bf16 %v280_v53, %v277_v52  ;;  %v289_v3 = vld [vmem:[%s9280_s1 + $0x180] sm:$0xff]  ;;  %vm5842_vm5 = vmpackc.low %vm180_vm3, %vm5516_vm4  ;;  %v255_v38 = vld [vmem:[%s9280_s1 + $0x70] sm:$0xff] }
  0x28   :  { %4590 = vmatpush1.bf16.msra.mxu1 %v4589_v9  ;;  %v4611_v57 = vpack.c.bf16 %v287_v55, %v284_v54  ;;  %v4613_v62 = vpack.c.bf16 %v286_v59, %v283_v58  ;;  %v4615_v63 = vpack.c.bf16 %v293_v61, %v290_v60  ;;  %v9295_v7 = vmov 0.0|0.0   ;;  %v264_v52 = vld [vmem:[%s9280_s1 + $0xb8] sm:$0xff]  ;;  %v267_v58 = vld [vmem:[%s9280_s1 + $0xd0] sm:$0xff]  ;;  %v270_v59 = vld [vmem:[%s9280_s1 + $0xe8] sm:$0xff] }
  0x29   :  { %4592 = vmatprep.subr.bf16.mxu1 %v4591_v12  ;;  %vm213_vm6 = vcmask 228352   ;;  %vm295_vm7 = vcmask 97280   ;;  %vm220_vm8 = vcmask 457728   ;;  %vm227_vm9 = vcmask 687104  }
  0x2a   :  { %199 = vrot.lane.b32.xlu0 %v187_v6, %s5515_s16  ;;  %201 = vrot.lane.b32.xlu1 %v190_v10, %s5515_s16  ;;  %v4618_v6 = vpack.c.bf16 %v292_v4, %v289_v3  ;;  %vm234_vm10 = vcmask 916480   ;;  %v4622_v25 = vpack.c.bf16 %v246_v15, %v243_v14  ;;  %v4634_v3 = vpack.c.bf16 %v270_v59, %v267_v58  ;;  %v279_v15 = vld [vmem:[%s9280_s1 + $0x130] sm:$0xff]  ;;  %v1246_v59 = vld [vmem:[%s9282_s3 + $0x20] sm:$0xff] }
  0x2b   :  { %vm549_vm11 = vcmask 523264   ;;  %vm1090_vm12 = vcmask 1041409   ;;  %vm1072_vm13 = vcmask 1042434   ;;  %vm1074_vm14 = vcmask 1043459  }
  0x2c   :  { %4594 = vmatpush1.bf16.msra.mxu1 %v4593_v21  ;;  %vm1076_vm15 = vcmask 1044484   ;;  %vm1078_vm0 = vcmask 1045509   ;;  %vm1080_vm3 = vcmask 1046534   ;;  %vm1082_vm4 = vcmask 1047559  }
  0x2d   :  { %4596 = vmatprep.subr.bf16.mxu1 %v4595_v24 }
  0x2e   :  { %5447 = vrot.lane.b32.xlu0 %v5446_v19, %s5512_s28  ;;  %137 = vrot.lane.b32.xlu1 %v126_v22, %s5514_s30 }
  0x30   :  { %4598 = vmatpush1.bf16.msra.mxu1 %v4597_v31 }
  0x31   :  { %4600 = vmatprep.subr.bf16.mxu1 %v4599_v34 }
  0x32   :  { %170 = vrot.lane.b32.xlu0 %v159_v29, %s5513_s29  ;;  %203 = vrot.lane.b32.xlu1 %v192_v32, %s5515_s16 }
  0x34   :  { %4602 = vmatpush1.bf16.msra.mxu1 %v4601_v41 }
  0x35   :  { %4604 = vmatprep.subr.bf16.mxu1 %v4603_v43 }
  0x36   :  { %139 = vrot.lane.b32.xlu0 %v128_v39, %s5514_s30  ;;  %172 = vrot.lane.b32.xlu1 %v161_v42, %s5513_s29  ;;  %v258_v39 = vld [vmem:[%s9280_s1 + $0x88] sm:$0xff] }
  0x37   :  { %v4628_v47 = vpack.c.bf16 %v258_v39, %v255_v38 }
  0x38   :  { %4606 = vmatpush1.bf16.msra.mxu1 %v4605_v50 }
  0x39   :  { %4608 = vmatprep.subr.bf16.mxu1 %v4607_v51  ;;  %v261_v51 = vld [vmem:[%s9280_s1 + $0xa0] sm:$0xff] }
  0x3a   :  { %205 = vrot.lane.b32.xlu0 %v194_v49, %s5515_s16 }
  0x3c   :  { %4610 = vmatpush1.bf16.msra.mxu1 %v4609_v56  ;;  %v4631_v56 = vpack.c.bf16 %v264_v52, %v261_v51  ;;  %v1245_v51 = vld [vmem:[%s9282_s3 + $0x18] sm:$0xff]  ;;  %v1242_v52 = vld [vmem:[%s9282_s3] sm:$0xff] }
  0x3d   :  { %4612 = vmatprep.subr.bf16.mxu1 %v4611_v57 }
  0x40   :  { %4614 = vmatpush1.bf16.msra.mxu1 %v4613_v62 }
  0x41   :  { %4617 = vmatprep.subr.msk.bf16.mxu1 %vm5842_vm5, %v4615_v63 }
  0x44   :  { %4620 = vmatpush1.bf16.msk.msra.mxu1 %vm5842_vm5, %v4618_v6 }
  0x45   :  { %4621 = vmatprep.subr.bf16.mxu1 %v9295_v7 }
  0x8c   :  { %v5418_v8 = vpop.permute.xlu0 %5417  ;;  %v5428_v9 = vpop.permute.xlu1 %5427 }
  0x8d   :  { %v5420_v10 = vunpack.i.h.bf16 %v5418_v8  ;;  %v5419_v11 = vunpack.i.l.bf16 %v5418_v8  ;;  %v5429_v12 = vunpack.i.l.bf16 %v5428_v9  ;;  %v5430_v23 = vunpack.i.h.bf16 %v5428_v9  ;;  %v273_v8 = vld [vmem:[%s9280_s1 + $0x100] sm:$0xff]  ;;  %v276_v9 = vld [vmem:[%s9280_s1 + $0x118] sm:$0xff] }
  0x8f   :  { %v215_v21 = vsel %vm213_vm6, %v5624_v1, %v5420_v10  ;;  %v214_v22 = vsel %vm213_vm6, %v5619_v0, %v5419_v11  ;;  %v249_v1 = vld [vmem:[%s9280_s1 + $0x40] sm:$0xff]  ;;  %v252_v0 = vld [vmem:[%s9280_s1 + $0x58] sm:$0xff] }
  0x90   :  { %v5423_v13 = vpop.permute.xlu0 %5422  ;;  %v5857_v20 = vpop.permute.xlu1 %195  ;;  %v4625_v34 = vpack.c.bf16 %v252_v0, %v249_v1  ;;  %v291_v1 = vld [vmem:[%s9280_s1 + $0x190] sm:$0xff]  ;;  %v294_v0 = vld [vmem:[%s9280_s1 + $0x1a8] sm:$0xf] }
  0x91   :  { %v5425_v18 = vunpack.i.h.bf16 %v5423_v13  ;;  %v5424_v19 = vunpack.i.l.bf16 %v5423_v13  ;;  %4254 = vmatprep.mubr.msk.f32.mxu1 %vm295_vm7, %v5857_v20  ;;  %v4637_v13 = vpack.c.bf16 %v276_v9, %v273_v8  ;;  %v1255_v8 = vld [vmem:[%s9282_s3 + $0x68] sm:$0xff]  ;;  %v1257_v9 = vld [vmem:[%s9282_s3 + $0x78] sm:$0xff] }
  0x93   :  { %v221_v24 = vsel %vm220_vm8, %v214_v22, %v5424_v19  ;;  %v222_v26 = vsel %vm220_vm8, %v215_v21, %v5425_v18  ;;  %v282_v18 = vld [vmem:[%s9280_s1 + $0x148] sm:$0xff] }
  0x94   :  { %v5867_v27 = vpop.permute.xlu0 %197  ;;  %v228_v28 = vsel %vm227_vm9, %v221_v24, %v5429_v12  ;;  %v5433_v29 = vpop.permute.xlu1 %5432  ;;  %v229_v33 = vsel %vm227_vm9, %v222_v26, %v5430_v23  ;;  %v4640_v22 = vpack.c.bf16 %v282_v18, %v279_v15  ;;  %v285_v24 = vld [vmem:[%s9280_s1 + $0x160] sm:$0xff] }
  0x95   :  { %v5878_v30 = vsel %vm234_vm10, %v228_v28, %v5857_v20  ;;  %v5435_v31 = vunpack.i.h.bf16 %v5433_v29  ;;  %v5434_v32 = vunpack.i.l.bf16 %v5433_v29  ;;  %v4646_v29 = vpack.c.bf16 %v294_v0, %v291_v1  ;;  %v1269_v1 = vld [vmem:[%s9282_s3 + $0xd8] sm:$0xff] }
  0x96   :  { %382 = vmatmul.mubr.f32.vlgmr.msra.gmra.mrb[0].mxu1 %v5878_v30 }
  0x97   :  { %4623 = vmatpush1.bf16.msra.mxu1 %v4622_v25  ;;  %4255 = vmatprep.mubr.msk.f32.mxu1 %vm295_vm7, %v5867_v27  ;;  %v217_v35 = vsel %vm213_vm6, %v5651_v16, %v5435_v31  ;;  %v216_v36 = vsel %vm213_vm6, %v5629_v2, %v5434_v32  ;;  %v5897_v16 = vsel %vm234_vm10, %v229_v33, %v5867_v27  ;;  %v288_v25 = vld [vmem:[%s9280_s1 + $0x178] sm:$0xff]  ;;  %s5518_s1 = smov 64  }
  0x98   :  { %v5438_v37 = vpop.permute.xlu0 %5437  ;;  %4624 = vmatprep.subr.bf16.mxu1 %v9295_v7  ;;  %v5443_v42 = vpop.permute.xlu1 %5442  ;;  %v4643_v28 = vpack.c.bf16 %v288_v25, %v285_v24  ;;  %v1262_v25 = vld [vmem:[%s9282_s3 + $0xa0] sm:$0xff] }
  0x99   :  { %v5440_v40 = vunpack.i.h.bf16 %v5438_v37  ;;  %v5439_v41 = vunpack.i.l.bf16 %v5438_v37  ;;  %v5445_v43 = vunpack.i.h.bf16 %v5443_v42  ;;  %v5444_v2 = vunpack.i.l.bf16 %v5443_v42 }
  0x9a   :  { %388 = vmatmul.mubr.f32.gmra.mrb[2].mxu1 %v5897_v16 }
  0x9b   :  { %4626 = vmatpush1.bf16.msra.mxu1 %v4625_v34  ;;  %v223_v44 = vsel %vm220_vm8, %v216_v36, %v5439_v41  ;;  %v224_v48 = vsel %vm220_vm8, %v217_v35, %v5440_v40 }
  0x9c   :  { %v5902_v46 = vpop.permute.xlu0 %199  ;;  %4627 = vmatprep.subr.bf16.mxu1 %v9295_v7  ;;  %v230_v49 = vsel %vm227_vm9, %v223_v44, %v5444_v2  ;;  %v231_v50 = vsel %vm227_vm9, %v224_v48, %v5445_v43  ;;  %v202_v54 = vpop.permute.xlu1 %201 }
  0x9d   :  { %4256 = vmatprep.mubr.msk.f32.mxu1 %vm295_vm7, %v5902_v46  ;;  %v237_v53 = vsel %vm234_vm10, %v230_v49, %v5902_v46  ;;  %v238_v55 = vsel %vm234_vm10, %v231_v50, %v202_v54  ;;  %v1243_v50 = vld [vmem:[%s9282_s3 + $0x8] sm:$0xff] }
  0x9e   :  { %394 = vmatmul.mubr.f32.gmra.mrb[4].mxu1 %v237_v53 }
  0x9f   :  { %4629 = vmatpush1.bf16.msra.mxu1 %v4628_v47  ;;  %4257 = vmatprep.mubr.msk.f32.mxu1 %vm295_vm7, %v202_v54 }
  0xa0   :  { %v5448_v57 = vpop.permute.xlu0 %5447  ;;  %4630 = vmatprep.subr.bf16.mxu1 %v9295_v7  ;;  %v138_v61 = vpop.permute.xlu1 %137 }
  0xa1   :  { %v5449_v60 = vunpack.i.l.bf16 %v5448_v57  ;;  %v5450_v62 = vunpack.i.h.bf16 %v5448_v57 }
  0xa2   :  { %400 = vmatmul.mubr.f32.gmra.mrb[6].mxu1 %v238_v55 }
  0xa3   :  { %4632 = vmatpush1.bf16.msra.mxu1 %v4631_v56  ;;  %v218_v63 = vsel %vm213_vm6, %v5656_v17, %v5449_v60  ;;  %v219_v17 = vsel %vm213_vm6, %v5690_v45, %v5450_v62  ;;  %v1249_v56 = vld [vmem:[%s9282_s3 + $0x38] sm:$0xff]  ;;  %v1248_v60 = vld [vmem:[%s9282_s3 + $0x30] sm:$0xff] }
  0xa4   :  { %v225_v4 = vsel %vm220_vm8, %v218_v63, %v138_v61  ;;  %v171_v6 = vpop.permute.xlu0 %170  ;;  %4633 = vmatprep.subr.bf16.mxu1 %v9295_v7  ;;  %v204_v11 = vpop.permute.xlu1 %203  ;;  %v1251_v61 = vld [vmem:[%s9282_s3 + $0x48] sm:$0xff]  ;;  %v1253_v62 = vld [vmem:[%s9282_s3 + $0x58] sm:$0xff]  ;;  %v4655_v63 = vpack.c.bf16 %v1248_v60, %v1246_v59 }
  0xa5   :  { %v232_v10 = vsel %vm227_vm9, %v225_v4, %v171_v6  ;;  %4258 = vmatprep.mubr.msk.f32.mxu1 %vm295_vm7, %v204_v11  ;;  %v1250_v4 = vld [vmem:[%s9282_s3 + $0x40] sm:$0xff]  ;;  %v1252_v6 = vld [vmem:[%s9282_s3 + $0x50] sm:$0xff]  ;;  %v1285_v59 = vld [vmem:[%s9282_s3 + $0x158] sm:$0xff] }
  0xa6   :  { %v239_v12 = vsel %vm234_vm10, %v232_v10, %v204_v11  ;;  %v4659_v10 = vpack.c.bf16 %v1252_v6, %v1250_v4  ;;  %v1289_v4 = vld [vmem:[%s9282_s3 + $0x178] sm:$0xff] }
  0xa7   :  { %4635 = vmatpush1.bf16.msra.mxu1 %v4634_v3  ;;  %v4657_v3 = vpack.c.bf16 %v1253_v62, %v1251_v61  ;;  %v1282_v62 = vld [vmem:[%s9282_s3 + $0x140] sm:$0xff] }
  0xa8   :  { %v140_v14 = vpop.permute.xlu0 %139  ;;  %4636 = vmatprep.subr.bf16.mxu1 %v9295_v7  ;;  %406 = vmatmul.mubr.f32.gmra.mrb[8].mxu1 %v239_v12  ;;  %v173_v19 = vpop.permute.xlu1 %172 }
  0xa9   :  { %v226_v45 = vsel %vm220_vm8, %v219_v17, %v140_v14  ;;  %v1254_v17 = vld [vmem:[%s9282_s3 + $0x60] sm:$0xff]  ;;  %v1261_v14 = vld [vmem:[%s9282_s3 + $0x98] sm:$0xff] }
  0xaa   :  { %v233_v21 = vsel %vm227_vm9, %v226_v45, %v173_v19  ;;  %v1258_v45 = vld [vmem:[%s9282_s3 + $0x80] sm:$0xff]  ;;  %v1260_v19 = vld [vmem:[%s9282_s3 + $0x90] sm:$0xff] }
  0xab   :  { %4638 = vmatpush1.bf16.msra.mxu1 %v4637_v13  ;;  %v1259_v13 = vld [vmem:[%s9282_s3 + $0x88] sm:$0xff] }
  0xac   :  { %v206_v23 = vpop.permute.xlu0 %205  ;;  %4639 = vmatprep.subr.bf16.mxu1 %v9295_v7  ;;  %v4665_v18 = vpack.c.bf16 %v1261_v14, %v1259_v13  ;;  %v1290_v14 = vld [vmem:[%s9282_s3 + $0x180] sm:$0xff] }
  0xad   :  { %4259 = vmatprep.mubr.msk.f32.mxu1 %vm295_vm7, %v206_v23  ;;  %v240_v26 = vsel %vm234_vm10, %v233_v21, %v206_v23  ;;  %v1263_v21 = vld [vmem:[%s9282_s3 + $0xa8] sm:$0xff] }
  0xae   :  { %412 = vmatmul.mubr.f32.gmra.mrb[10].mxu1 %v240_v26 }
  0xaf   :  { %4641 = vmatpush1.bf16.msra.mxu1 %v4640_v22  ;;  %4261 = vmatprep.mubr.msk.f32.mxu1 %vm295_vm7, %v5857_v20  ;;  %v1265_v22 = vld [vmem:[%s9282_s3 + $0xb8] sm:$0xff] }
  0xb0   :  { %4642 = vmatprep.subr.bf16.mxu1 %v9295_v7  ;;  %v4669_v24 = vpack.c.bf16 %v1265_v22, %v1263_v21  ;;  %v582_v21 = vlaneseq }
  0xb3   :  { %4644 = vmatpush1.bf16.msra.mxu1 %v4643_v28  ;;  %v1267_v28 = vld [vmem:[%s9282_s3 + $0xc8] sm:$0xff] }
  0xb4   :  { %4645 = vmatprep.subr.bf16.mxu1 %v9295_v7 }
  0xb7   :  { %4648 = vmatpush1.bf16.msk.msra.mxu1 %vm5842_vm5, %v4646_v29  ;;  %v4673_v29 = vpack.c.bf16 %v1269_v1, %v1267_v28  ;;  %v6196_v1 = vshrl.u32 %v582_v21, 7  ;;  %vm1127_vm5 = vcmask 1040384  }
  0xb8   :  { %vm6683_vm6 = vmneg %vm1127_vm5 }
  0xb9   :  { %9323 = vst [vmem:[#allocation8_spill] sm:$0xff] %v6196_v1  ;;  %v6250_v21 = vsub.s32 2, %v6196_v1 }
  0xba   :  { %483 = vmatmul.mubr.f32.vlgmr.msra.gmra.mrb[12].mxu1 %v5878_v30 }
  0xbb   :  { %4262 = vmatprep.mubr.msk.f32.mxu1 %vm295_vm7, %v5867_v27 }
  0xbe   :  { %488 = vmatmul.mubr.f32.gmra.mrb[14].mxu1 %v5897_v16 }
  0xbf   :  { %4263 = vmatprep.mubr.msk.f32.mxu1 %vm295_vm7, %v5902_v46 }
  0xc2   :  { %493 = vmatmul.mubr.f32.gmra.mrb[16].mxu1 %v237_v53  ;;  %v4649_v53 = vpack.c.bf16 %v1245_v51, %v1243_v50  ;;  %v1274_v50 = vld [vmem:[%s9282_s3 + $0x100] sm:$0xff]  ;;  %v1276_v51 = vld [vmem:[%s9282_s3 + $0x110] sm:$0xff] }
  0xc3   :  { %4264 = vmatprep.mubr.msk.f32.mxu1 %vm295_vm7, %v202_v54  ;;  %v1244_v54 = vld [vmem:[%s9282_s3 + $0x10] sm:$0xff] }
  0xc4   :  { %v4651_v57 = vpack.c.bf16 %v1244_v54, %v1242_v52  ;;  %4650 = vmatprep.subr.bf16.mxu0 %v4649_v53  ;;  %v1279_v52 = vld [vmem:[%s9282_s3 + $0x128] sm:$0xff]  ;;  %v1281_v53 = vld [vmem:[%s9282_s3 + $0x138] sm:$0xff]  ;;  %v4683_v54 = vpack.c.bf16 %v1276_v51, %v1274_v50  ;;  %v5519_v50 = vmov 1983009808  }
  0xc5   :  { %v631_v51 = vunpack.c.l.s4 %v5519_v50 }
  0xc6   :  { %498 = vmatmul.mubr.f32.gmra.mrb[18].mxu1 %v238_v55  ;;  %v1247_v55 = vld [vmem:[%s9282_s3 + $0x28] sm:$0xff]  ;;  %4652 = vmatpush1.bf16.msra.mxu0 %v4651_v57  ;;  %v1280_v57 = vld [vmem:[%s9282_s3 + $0x130] sm:$0xff] }
  0xc7   :  { %4265 = vmatprep.mubr.msk.f32.mxu1 %vm295_vm7, %v204_v11  ;;  %v4653_v58 = vpack.c.bf16 %v1249_v56, %v1247_v55  ;;  %v4661_v11 = vpack.c.bf16 %v1257_v9, %v1255_v8  ;;  %v4685_v55 = vpack.c.bf16 %v1281_v53, %v1279_v52  ;;  %v1278_v56 = vld [vmem:[%s9282_s3 + $0x120] sm:$0xff] }
  0xc8   :  { %v4687_v60 = vpack.c.bf16 %v1280_v57, %v1278_v56  ;;  %v1286_v9 = vld [vmem:[%s9282_s3 + $0x160] sm:$0xff] }
  0xc9   :  { %4654 = vmatprep.subr.bf16.mxu0 %v4653_v58  ;;  %v1283_v58 = vld [vmem:[%s9282_s3 + $0x148] sm:$0xff] }
  0xca   :  { %503 = vmatmul.mubr.f32.gmra.mrb[20].mxu1 %v239_v12  ;;  %4656 = vmatpush1.bf16.msra.mxu0 %v4655_v63  ;;  %v1256_v12 = vld [vmem:[%s9282_s3 + $0x70] sm:$0xff]  ;;  %v4689_v61 = vpack.c.bf16 %v1285_v59, %v1283_v58  ;;  %v632_v59 = vunpack.c.0.s8 %v631_v51 }
  0xcb   :  { %4266 = vmatprep.mubr.msk.f32.mxu1 %vm295_vm7, %v206_v23  ;;  %4658 = vmatprep.subr.bf16.mxu0 %v4657_v3  ;;  %v4663_v15 = vpack.c.bf16 %v1256_v12, %v1254_v17  ;;  %v4667_v23 = vpack.c.bf16 %v1260_v19, %v1258_v45  ;;  %v1284_v63 = vld [vmem:[%s9282_s3 + $0x150] sm:$0xff]  ;;  %v1287_v3 = vld [vmem:[%s9282_s3 + $0x168] sm:$0xff]  ;;  %v1293_v17 = vld [vmem:[%s9282_s3 + $0x198] sm:$0xff] }
  0xcc   :  { %v4691_v6 = vpack.c.bf16 %v1284_v63, %v1282_v62  ;;  %v4693_v8 = vpack.c.bf16 %v1289_v4, %v1287_v3  ;;  %v1297_v45 = vld [vmem:[%s9282_s3 + $0x1b8] sm:$0xff] }
  0xce   :  { %508 = vmatmul.mubr.f32.gmra.mrb[22].mxu1 %v240_v26  ;;  %4660 = vmatpush1.bf16.msra.mxu0 %v4659_v10  ;;  %v1264_v26 = vld [vmem:[%s9282_s3 + $0xb0] sm:$0xff] }
  0xcf   :  { %4662 = vmatprep.subr.bf16.mxu0 %v4661_v11  ;;  %v4671_v0 = vpack.c.bf16 %v1264_v26, %v1262_v25  ;;  %v1288_v10 = vld [vmem:[%s9282_s3 + $0x170] sm:$0xff]  ;;  %v1291_v11 = vld [vmem:[%s9282_s3 + $0x188] sm:$0xff]  ;;  %v1301_v26 = vld [vmem:[%s9282_s3 + $0x1d8] sm:$0xff] }
  0xd0   :  { %v4695_v12 = vpack.c.bf16 %v1288_v10, %v1286_v9  ;;  %v4697_v13 = vpack.c.bf16 %v1293_v17, %v1291_v11  ;;  %v1299_v25 = vld [vmem:[%s9282_s3 + $0x1c8] sm:$0xff] }
  0xd2   :  { %4664 = vmatpush1.bf16.msra.mxu0 %v4663_v15  ;;  %v1292_v15 = vld [vmem:[%s9282_s3 + $0x190] sm:$0xff] }
  0xd3   :  { %4666 = vmatprep.subr.bf16.mxu0 %v4665_v18  ;;  %v1295_v18 = vld [vmem:[%s9282_s3 + $0x1a8] sm:$0xff]  ;;  %v4699_v19 = vpack.c.bf16 %v1292_v15, %v1290_v14 }
  0xd4   :  { %v4701_v22 = vpack.c.bf16 %v1297_v45, %v1295_v18 }
  0xd6   :  { %4668 = vmatpush1.bf16.msra.mxu0 %v4667_v23  ;;  %v1294_v23 = vld [vmem:[%s9282_s3 + $0x1a0] sm:$0xff] }
  0xd7   :  { %4670 = vmatprep.subr.bf16.mxu0 %v4669_v24  ;;  %v1296_v24 = vld [vmem:[%s9282_s3 + $0x1b0] sm:$0xff] }
  0xd8   :  { %v4703_v28 = vpack.c.bf16 %v1296_v24, %v1294_v23 }
  0xda   :  { %4672 = vmatpush1.bf16.msra.mxu0 %v4671_v0  ;;  %v4705_v0 = vpack.c.bf16 %v1301_v26, %v1299_v25 }
  0xdb   :  { %4674 = vmatprep.subr.bf16.mxu0 %v4673_v29  ;;  %v1298_v29 = vld [vmem:[%s9282_s3 + $0x1c0] sm:$0xff] }
 0x169   :  { %v5980_v5 = vpop.f32.mrb[0].mxu1 }
 0x16a   :  { %v5982_v20 = vpop.f32.mrb[1].mxu1 }
 0x16b   :  { %525 = vrot.lane.b32.xlu1 %v5982_v20, %s5518_s1 }
 0x16d   :  { %v5986_v27 = vpop.f32.mrb[2].mxu1 }
 0x16e   :  { %v5988_v30 = vpop.f32.mrb[3].mxu1 }
 0x16f   :  { %529 = vrot.lane.b32.xlu1 %v5988_v30, %s5518_s1 }
 0x171   :  { %v5992_v31 = vpop.f32.mrb[4].mxu1 }
 0x172   :  { %v5994_v32 = vpop.f32.mrb[5].mxu1 }
 0x175   :  { %v5996_v33 = vpop.f32.mrb[6].mxu1 }
 0x176   :  { %v5998_v34 = vpop.f32.mrb[7].mxu1 }
 0x177   :  { %537 = vrot.lane.b32.xlu1 %v5998_v34, %s5518_s1 }
 0x17b   :  { %533 = vrot.lane.b32.xlu1 %v5994_v32, %s5518_s1  ;;  %v6004_v35 = vpop.f32.mrb[8].mxu1 }
 0x17c   :  { %v6006_v36 = vpop.f32.mrb[9].mxu1 }
 0x17f   :  { %541 = vrot.lane.b32.xlu1 %v6006_v36, %s5518_s1 }
 0x181   :  { %v6010_v37 = vpop.f32.mrb[10].mxu1 }
 0x182   :  { %v6012_v38 = vpop.f32.mrb[11].mxu1 }
 0x183   :  { %545 = vrot.lane.b32.xlu1 %v6012_v38, %s5518_s1 }
 0x18d   :  { %v484_v39 = vpop.f32.mrb[12].mxu1 }
 0x18e   :  { %527 = vrot.lane.b32.xlu0 %v484_v39, %s5518_s1  ;;  %v486_v40 = vpop.f32.mrb[13].mxu1  ;;  %v1266_v39 = vld [vmem:[%s9282_s3 + $0xc0] sm:$0xff] }
 0x18f   :  { %v1268_v40 = vld [vmem:[%s9282_s3 + $0xd0] sm:$0xff] }
 0x191   :  { %v489_v41 = vpop.f32.mrb[14].mxu1 }
 0x192   :  { %531 = vrot.lane.b32.xlu0 %v489_v41, %s5518_s1  ;;  %v491_v42 = vpop.f32.mrb[15].mxu1  ;;  %v1271_v41 = vld [vmem:[%s9282_s3 + $0xe8] sm:$0xff] }
 0x193   :  { %v1273_v42 = vld [vmem:[%s9282_s3 + $0xf8] sm:$0xff] }
 0x195   :  { %v494_v16 = vpop.f32.mrb[16].mxu1 }
 0x196   :  { %535 = vrot.lane.b32.xlu0 %v494_v16, %s5518_s1  ;;  %v496_v43 = vpop.f32.mrb[17].mxu1  ;;  %v4675_v16 = vpack.c.bf16 %v1268_v40, %v1266_v39  ;;  %v1300_v39 = vld [vmem:[%s9282_s3 + $0x1d0] sm:$0xff] }
 0x197   :  { %v4677_v43 = vpack.c.bf16 %v1273_v42, %v1271_v41  ;;  %v1303_v41 = vld [vmem:[%s9282_s3 + $0x1e8] sm:$0xff]  ;;  %v1305_v42 = vld [vmem:[%s9282_s3 + $0x1f8] sm:$0xff] }
 0x198   :  { %4676 = vmatpush1.bf16.msra.mxu0 %v4675_v16  ;;  %v4707_v16 = vpack.c.bf16 %v1300_v39, %v1298_v29 }
 0x199   :  { %v499_v2 = vpop.f32.mrb[18].mxu1  ;;  %4678 = vmatprep.subr.bf16.mxu0 %v4677_v43  ;;  %v6211_v43 = vsub.s32 1, %v6196_v1 }
 0x19a   :  { %539 = vrot.lane.b32.xlu0 %v499_v2, %s5518_s1  ;;  %v501_v44 = vpop.f32.mrb[19].mxu1  ;;  %v1270_v2 = vld [vmem:[%s9282_s3 + $0xe0] sm:$0xff] }
 0x19b   :  { %v1272_v44 = vld [vmem:[%s9282_s3 + $0xf0] sm:$0xff] }
 0x19d   :  { %v504_v47 = vpop.f32.mrb[20].mxu1 }
 0x19e   :  { %543 = vrot.lane.b32.xlu0 %v504_v47, %s5518_s1  ;;  %v506_v48 = vpop.f32.mrb[21].mxu1  ;;  %v1275_v47 = vld [vmem:[%s9282_s3 + $0x108] sm:$0xff] }
 0x19f   :  { %v1277_v48 = vld [vmem:[%s9282_s3 + $0x118] sm:$0xff] }
 0x1a1   :  { %v509_v46 = vpop.f32.mrb[22].mxu1 }
 0x1a2   :  { %547 = vrot.lane.b32.xlu0 %v509_v46, %s5518_s1  ;;  %v511_v49 = vpop.f32.mrb[23].mxu1  ;;  %v4679_v46 = vpack.c.bf16 %v1272_v44, %v1270_v2  ;;  %v4709_v2 = vpack.c.bf16 %v1305_v42, %v1303_v41  ;;  %v1302_v44 = vld [vmem:[%s9282_s3 + $0x1e0] sm:$0xff] }
 0x1a3   :  { %v4681_v49 = vpack.c.bf16 %v1277_v48, %v1275_v47  ;;  %v1304_v47 = vld [vmem:[%s9282_s3 + $0x1f0] sm:$0xff]  ;;  %v580_v48 = vld [vmem:[%s9281_s2] sm:$0x3]  ;;  %s5523_s2 = smov [#allocation5]  }
 0x1a4   :  { %4680 = vmatpush1.bf16.msra.mxu0 %v4679_v46  ;;  %v6223_v46 = vsub.s32 0, %v6196_v1  ;;  %v4711_v52 = vpack.c.bf16 %v1304_v47, %v1302_v44  ;;  %v6226_v53 = vrot.slane %v580_v48, %v6211_v43 }
 0x1a5   :  { %4682 = vmatprep.subr.bf16.mxu0 %v4681_v49 }
 0x1a8   :  { %4684 = vmatpush1.bf16.msra.mxu0 %v4683_v54  ;;  %v6229_v54 = vrot.slane %v580_v48, %v6223_v46 }
 0x1a9   :  { %4686 = vmatprep.subr.bf16.mxu0 %v4685_v55 }
 0x1ac   :  { %4688 = vmatpush1.bf16.msra.mxu0 %v4687_v60 }
 0x1ad   :  { %4690 = vmatprep.subr.bf16.mxu0 %v4689_v61 }
 0x1b0   :  { %4692 = vmatpush1.bf16.msra.mxu0 %v4691_v6 }
 0x1b1   :  { %4694 = vmatprep.subr.bf16.mxu0 %v4693_v8  ;;  %v6239_v8 = vsub.s32 %v632_v59, %v6196_v1 }
 0x1b4   :  { %4696 = vmatpush1.bf16.msra.mxu0 %v4695_v12 }
 0x1b5   :  { %4698 = vmatprep.subr.bf16.mxu0 %v4697_v13 }
 0x1b8   :  { %4700 = vmatpush1.bf16.msra.mxu0 %v4699_v19 }
 0x1b9   :  { %4702 = vmatprep.subr.bf16.mxu0 %v4701_v22 }
 0x1bc   :  { %4704 = vmatpush1.bf16.msra.mxu0 %v4703_v28 }
 0x1bd   :  { %4706 = vmatprep.subr.bf16.mxu0 %v4705_v0 }
 0x1c0   :  { %4708 = vmatpush1.bf16.msra.mxu0 %v4707_v16 }
 0x1c1   :  { %4710 = vmatprep.subr.bf16.mxu0 %v4709_v2 }
 0x1c4   :  { %4712 = vmatpush1.bf16.msra.mxu0 %v4711_v52 }
 0x1dd   :  { %v526_v40 = vpop.permute.xlu1 %525 }
 0x1e1   :  { %v530_v49 = vpop.permute.xlu1 %529 }
 0x1e9   :  { %v538_v58 = vpop.permute.xlu1 %537 }
 0x200   :  { %v528_v55 = vpop.permute.xlu0 %527 }
 0x201   :  { %v550_v56 = vsel %vm549_vm11, %v526_v40, %v528_v55  ;;  %v569_v57 = vmax.f32 %v5982_v20, %v528_v55 }
 0x202   :  { %v568_v60 = vmax.f32 %v5980_v5, %v550_v56  ;;  %v534_v5 = vpop.permute.xlu1 %533 }
 0x203   :  { %v593_v61 = vadd.f32 %v6226_v53, %v569_v57 }
 0x204   :  { %v592_v62 = vadd.f32 %v6229_v54, %v568_v60  ;;  %v532_v63 = vpop.permute.xlu0 %531 }
 0x205   :  { %v605_v3 = vmax.f32 %v593_v61, 0.0  ;;  %v551_v4 = vsel %vm549_vm11, %v530_v49, %v532_v63  ;;  %v571_v6 = vmax.f32 %v5988_v30, %v532_v63 }
 0x206   :  { %v604_v9 = vmax.f32 %v592_v62, 0.0  ;;  %v570_v20 = vmax.f32 %v5986_v27, %v551_v4  ;;  %v542_v47 = vpop.permute.xlu1 %541 }
 0x207   :  { %v595_v10 = vadd.f32 %v6226_v53, %v571_v6 }
 0x208   :  { %v628_v11 = vcombine.low %v604_v9, %v605_v3  ;;  %v629_v17 = vcombine.high %v604_v9, %v605_v3  ;;  %v594_v12 = vadd.f32 %v6229_v54, %v570_v20  ;;  %v536_v13 = vpop.permute.xlu0 %535 }
 0x209   :  { %v607_v14 = vmax.f32 %v595_v10, 0.0  ;;  %v552_v15 = vsel %vm549_vm11, %v534_v5, %v536_v13  ;;  %v573_v18 = vmax.f32 %v5994_v32, %v536_v13 }
 0x20a   :  { %v636_v30 = vrot.slane %v628_v11, %v6239_v8  ;;  %v643_v45 = vrot.slane %v629_v17, %v6239_v8  ;;  %v606_v19 = vmax.f32 %v594_v12, 0.0  ;;  %v572_v27 = vmax.f32 %v5992_v31, %v552_v15  ;;  %v546_v15 = vpop.permute.xlu1 %545 }
 0x20b   :  { %v597_v22 = vadd.f32 %v6226_v53, %v573_v18 }
 0x20c   :  { %v644_v23 = vcombine.high %v636_v30, %v636_v30  ;;  %v645_v24 = vcombine.high %v643_v45, %v643_v45  ;;  %v4267_v25 = vrot.slane %v636_v30, 9  ;;  %v4269_v26 = vrot.slane %v643_v45, 9  ;;  %v540_v28 = vpop.permute.xlu0 %539 }
 0x20d   :  { %v646_v0 = vcombine.low %v606_v19, %v607_v14  ;;  %v647_v29 = vcombine.high %v606_v19, %v607_v14  ;;  %v596_v32 = vadd.f32 %v6229_v54, %v572_v27  ;;  %v609_v39 = vmax.f32 %v597_v22, 0.0 }
 0x20e   :  { %v4268_v40 = vrot.slane %v644_v23, 9  ;;  %v4270_v41 = vrot.slane %v645_v24, 9  ;;  %v6254_v42 = vmax.f32 %v636_v30, %v4267_v25  ;;  %v6256_v31 = vmax.f32 %v643_v45, %v4269_v26 }
 0x20f   :  { %v654_v16 = vrot.slane %v646_v0, %v6239_v8  ;;  %v661_v2 = vrot.slane %v647_v29, %v6239_v8  ;;  %v608_v44 = vmax.f32 %v596_v32, 0.0  ;;  %v553_v51 = vsel %vm549_vm11, %v538_v58, %v540_v28 }
 0x210   :  { %9324 = vst [vmem:[#allocation9_spill] sm:$0xff] %v6256_v31  ;;  %v6260_v48 = vmax.f32 %v644_v23, %v4268_v40  ;;  %v6262_v49 = vmax.f32 %v645_v24, %v4270_v41  ;;  %v6266_v50 = vrot.slane %v6254_v42, %v6223_v46  ;;  %v544_v52 = vpop.permute.xlu0 %543  ;;  %v6271_v55 = vrot.slane %v6254_v42, %v6250_v21 }
 0x211   :  { %v6275_v56 = vrot.slane %v6256_v31, %v6223_v46  ;;  %v662_v57 = vcombine.high %v654_v16, %v654_v16  ;;  %v4271_v59 = vrot.slane %v654_v16, 9  ;;  %v6283_v61 = vrot.slane %v6256_v31, %v6250_v21 }
 0x212   :  { %9325 = vst [vmem:[#allocation10_spill] sm:$0xff] %v6260_v48  ;;  %9326 = vst [vmem:[#allocation11_spill] sm:$0xff] %v6262_v49  ;;  %v6279_v60 = vrot.slane %v6260_v48, %v6223_v46  ;;  %v4273_v58 = vrot.slane %v661_v2, 9  ;;  %v664_v62 = vcombine.low %v608_v44, %v609_v39  ;;  %v6287_v63 = vrot.slane %v6260_v48, %v6250_v21 }
 0x213   :  { %v4272_v3 = vrot.slane %v662_v57, 9  ;;  %v665_v4 = vcombine.high %v608_v44, %v609_v39  ;;  %v574_v6 = vmax.f32 %v5996_v33, %v553_v51  ;;  %v6290_v9 = vmax.f32 %v654_v16, %v4271_v59 }
 0x214   :  { %v672_v20 = vrot.slane %v664_v62, %v6239_v8  ;;  %v575_v10 = vmax.f32 %v5998_v34, %v540_v28  ;;  %v554_v5 = vsel %vm549_vm11, %v542_v47, %v544_v52  ;;  %v548_v11 = vpop.permute.xlu0 %547  ;;  %v6295_v17 = vmax.f32 %v661_v2, %v4273_v58 }
 0x215   :  { %9327 = vst [vmem:[#allocation12_spill] sm:$0xff] %v6290_v9  ;;  %v6298_v12 = vrot.slane %v665_v4, %v6239_v8  ;;  %v598_v13 = vadd.f32 %v6229_v54, %v574_v6  ;;  %v576_v14 = vmax.f32 %v6004_v35, %v554_v5  ;;  %v577_v45 = vmax.f32 %v6006_v36, %v544_v52 }
 0x216   :  { %9328 = vst [vmem:[#allocation13_spill] sm:$0xff] %v6295_v17  ;;  %v680_v33 = vcombine.high %v672_v20, %v672_v20  ;;  %v4275_v18 = vrot.slane %v672_v20, 9  ;;  %v599_v30 = vadd.f32 %v6226_v53, %v575_v10  ;;  %v555_v22 = vsel %vm549_vm11, %v546_v15, %v548_v11 }
 0x217   :  { %v4277_v34 = vrot.slane %v6298_v12, 9  ;;  %v610_v19 = vmax.f32 %v598_v13, 0.0  ;;  %v600_v27 = vadd.f32 %v6229_v54, %v576_v14  ;;  %v6307_v23 = vmax.f32 %v662_v57, %v4272_v3 }
 0x218   :  { %v4276_v24 = vrot.slane %v680_v33, 9  ;;  %v611_v25 = vmax.f32 %v599_v30, 0.0  ;;  %v601_v35 = vadd.f32 %v6226_v53, %v577_v45  ;;  %v6310_v26 = vmax.f32 %v672_v20, %v4275_v18 }
 0x219   :  { %9329 = vst [vmem:[#allocation14_spill] sm:$0xff] %v6307_v23  ;;  %v612_v28 = vmax.f32 %v600_v27, 0.0  ;;  %v578_v0 = vmax.f32 %v6010_v37, %v555_v22  ;;  %v579_v36 = vmax.f32 %v6012_v38, %v548_v11  ;;  %v6315_v29 = vmax.f32 %v6298_v12, %v4277_v34 }
 0x21a   :  { %9330 = vst [vmem:[#allocation15_spill] sm:$0xff] %v6310_v26  ;;  %v682_v32 = vcombine.low %v610_v19, %v611_v25  ;;  %v683_v39 = vcombine.high %v610_v19, %v611_v25  ;;  %v613_v40 = vmax.f32 %v601_v35, 0.0  ;;  %v6317_v41 = vmax.f32 %v680_v33, %v4276_v24 }
 0x21b   :  { %9331 = vst [vmem:[#allocation16_spill] sm:$0xff] %v6315_v29  ;;  %v602_v16 = vadd.f32 %v6229_v54, %v578_v0  ;;  %v603_v44 = vadd.f32 %v6226_v53, %v579_v36  ;;  %v663_v47 = vcombine.high %v661_v2, %v661_v2  ;;  %v6325_v62 = vrot.slane %v6262_v49, %v6223_v46 }
 0x21c   :  { %9332 = vst [vmem:[#allocation17_spill] sm:$0xff] %v6317_v41  ;;  %v690_v51 = vrot.slane %v682_v32, %v6239_v8  ;;  %v697_v37 = vrot.slane %v683_v39, %v6239_v8  ;;  %v700_v52 = vcombine.low %v612_v28, %v613_v40  ;;  %v701_v38 = vcombine.high %v612_v28, %v613_v40 }
 0x21d   :  { %v614_v57 = vmax.f32 %v602_v16, 0.0  ;;  %v615_v59 = vmax.f32 %v603_v44, 0.0  ;;  %v4274_v58 = vrot.slane %v663_v47, 9  ;;  %v6344_v27 = vrot.slane %v6290_v9, %v6223_v46 }
 0x21e   :  { %v698_v54 = vcombine.high %v690_v51, %v690_v51  ;;  %v699_v3 = vcombine.high %v697_v37, %v697_v37  ;;  %v4279_v53 = vrot.slane %v690_v51, 9  ;;  %v4281_v2 = vrot.slane %v697_v37, 9 }
 0x21f   :  { %v708_v4 = vrot.slane %v700_v52, %v6239_v8  ;;  %v715_v6 = vrot.slane %v701_v38, %v6239_v8  ;;  %v718_v20 = vcombine.low %v614_v57, %v615_v59  ;;  %v719_v10 = vcombine.high %v614_v57, %v615_v59 }
 0x220   :  { %v4280_v5 = vrot.slane %v698_v54, 9  ;;  %v4282_v11 = vrot.slane %v699_v3, 9  ;;  %v6329_v13 = vmax.f32 %v690_v51, %v4279_v53  ;;  %v6331_v14 = vmax.f32 %v697_v37, %v4281_v2 }
 0x221   :  { %v716_v15 = vcombine.high %v708_v4, %v708_v4  ;;  %v4283_v33 = vrot.slane %v708_v4, 9  ;;  %v4285_v18 = vrot.slane %v715_v6, 9  ;;  %v726_v30 = vrot.slane %v718_v20, %v6239_v8 }
 0x222   :  { %9333 = vst [vmem:[#allocation18_spill] sm:$0xff] %v6329_v13  ;;  %9334 = vst [vmem:[#allocation19_spill] sm:$0xff] %v6331_v14  ;;  %v6334_v45 = vmax.f32 %v698_v54, %v4280_v5  ;;  %v6336_v34 = vmax.f32 %v699_v3, %v4282_v11  ;;  %v6340_v19 = vrot.slane %v6329_v13, %v6223_v46 }
 0x223   :  { %v6348_v22 = vrot.slane %v6329_v13, %v6250_v21  ;;  %v6352_v24 = vrot.slane %v6331_v14, %v6223_v46  ;;  %v6356_v25 = vrot.slane %v6331_v14, %v6250_v21  ;;  %v4284_v35 = vrot.slane %v716_v15, 9 }
 0x224   :  { %9335 = vst [vmem:[#allocation20_spill] sm:$0xff] %v6334_v45  ;;  %9336 = vst [vmem:[#allocation21_spill] sm:$0xff] %v6336_v34  ;;  %v6360_v28 = vrot.slane %v6334_v45, %v6223_v46  ;;  %v6364_v0 = vrot.slane %v6334_v45, %v6250_v21  ;;  %v6366_v36 = vmax.f32 %v708_v4, %v4283_v33  ;;  %v4287_v16 = vrot.slane %v726_v30, 9 }
 0x225   :  { %v733_v32 = vrot.slane %v719_v10, %v6239_v8  ;;  %v6369_v39 = vmax.f32 %v715_v6, %v4285_v18  ;;  %v734_v40 = vcombine.high %v726_v30, %v726_v30  ;;  %v6371_v44 = vmax.f32 %v663_v47, %v4274_v58 }
 0x226   :  { %9337 = vst [vmem:[#allocation22_spill] sm:$0xff] %v6366_v36  ;;  %v6373_v51 = vmax.f32 %v716_v15, %v4284_v35  ;;  %v6377_v52 = vrot.slane %v6307_v23, %v6223_v46  ;;  %v1136_v38 = vsel %vm1090_vm12, %v6279_v60, %v6266_v50  ;;  %v6382_v59 = vmax.f32 %v726_v30, %v4287_v16 }
 0x227   :  { %9338 = vst [vmem:[#allocation23_spill] sm:$0xff] %v6369_v39  ;;  %9339 = vst [vmem:[#allocation24_spill] sm:$0xff] %v6371_v44  ;;  %v4289_v37 = vrot.slane %v733_v32, 9  ;;  %v4288_v57 = vrot.slane %v734_v40, 9  ;;  %v6386_v54 = vrot.slane %v6295_v17, %v6223_v46  ;;  %v1137_v47 = vsel %vm1072_vm13, %v6275_v56, %v1136_v38 }
 0x228   :  { %9340 = vst [vmem:[#allocation25_spill] sm:$0xff] %v6373_v51  ;;  %9341 = vst [vmem:[#allocation26_spill] sm:$0xff] %v6382_v59  ;;  %v939_v58 = vrot.slane %v6371_v44, %v6223_v46  ;;  %v1138_v3 = vsel %vm1074_vm14, %v6325_v62, %v1137_v47  ;;  %v947_v53 = vrot.slane %v6310_v26, %v6223_v46 }
 0x229   :  { %v681_v2 = vcombine.high %v6298_v12, %v6298_v12  ;;  %v6398_v4 = vmax.f32 %v734_v40, %v4288_v57  ;;  %v6400_v20 = vmax.f32 %v733_v32, %v4289_v37  ;;  %v1139_v10 = vsel %vm1076_vm15, %v6344_v27, %v1138_v3 }
 0x22a   :  { %v6406_v5 = vrot.slane %v6317_v41, %v6223_v46  ;;  %v1140_v11 = vsel %vm1078_vm0, %v6377_v52, %v1139_v10  ;;  %v6411_v15 = vsel %vm1090_vm12, %v947_v53, %v939_v58  ;;  %v717_v18 = vcombine.high %v715_v6, %v715_v6 }
 0x22b   :  { %9342 = vst [vmem:[#allocation27_spill] sm:$0xff] %v6398_v4  ;;  %v4278_v33 = vrot.slane %v681_v2, 9  ;;  %v1141_v12 = vsel %vm1080_vm3, %v6386_v54, %v1140_v11  ;;  %v6417_v30 = vrot.slane %v6315_v29, %v6223_v46  ;;  %v6423_v40 = vrot.slane %v6336_v34, %v6223_v46 }
 0x22c   :  { %v1150_v35 = vsel %vm1090_vm12, %v6406_v5, %v947_v53  ;;  %v1142_v16 = vsel %vm1082_vm4, %v939_v58, %v1141_v12  ;;  %v4286_v38 = vrot.slane %v717_v18, 9  ;;  %v6430_v6 = vrot.slane %v6366_v36, %v6223_v46 }
 0x22d   :  { %v6426_v37 = vmax.f32 %v681_v2, %v4278_v33  ;;  %1176 = vrot.lane.b32.xlu1 %v1142_v16, %s5518_s1  ;;  %v1151_v57 = vsel %vm1072_vm13, %v6417_v30, %v1150_v35  ;;  %v6437_v47 = vrot.slane %v6373_v51, %v6223_v46  ;;  %v6441_v3 = vrot.slane %v6369_v39, %v6223_v46 }
 0x22e   :  { %v1156_v58 = vsel %vm1090_vm12, %v6360_v28, %v6340_v19  ;;  %v6450_v2 = vmax.f32 %v717_v18, %v4286_v38  ;;  %v1043_v11 = vrot.slane %v6382_v59, %v6223_v46  ;;  %v911_v12 = vrot.slane %v6262_v49, %v6250_v21 }
 0x22f   :  { %9343 = vst [vmem:[#allocation28_spill] sm:$0xff] %v6426_v37  ;;  %v6448_v53 = vrot.slane %v6426_v37, %v6223_v46  ;;  %v1157_v10 = vsel %vm1072_vm13, %v6352_v24, %v1156_v58  ;;  %v6462_v35 = vrot.slane %v6290_v9, %v6250_v21  ;;  %v6466_v18 = vrot.slane %v6307_v23, %v6250_v21 }
 0x230   :  { %9344 = vst [vmem:[#allocation29_spill] sm:$0xff] %v6450_v2  ;;  %v1158_v33 = vsel %vm1074_vm14, %v6423_v40, %v1157_v10  ;;  %v1035_v38 = vrot.slane %v6450_v2, %v6223_v46  ;;  %v943_v10 = vrot.slane %v6371_v44, %v6250_v21  ;;  %v951_v1 = vrot.slane %v6310_v26, %v6250_v21 }
 0x231   :  { %v1152_v16 = vsel %vm1074_vm14, %v6448_v53, %v1151_v57  ;;  %v1159_v58 = vsel %vm1076_vm15, %v6430_v6, %v1158_v33  ;;  %v1143_v57 = vsel %vm1090_vm12, %v6287_v63, %v6271_v55  ;;  %v735_v14 = vcombine.high %v733_v32, %v733_v32 }
 0x232   :  { %1180 = vrot.lane.b32.xlu0 %v1152_v16, %s5518_s1  ;;  %v1160_v7 = vsel %vm1078_vm0, %v6437_v47, %v1159_v58  ;;  %v6487_v33 = vsel %vm1090_vm12, %v1043_v11, %v1035_v38  ;;  %v1144_v16 = vsel %vm1072_vm13, %v6283_v61, %v1143_v57  ;;  %v6493_v58 = vrot.slane %v6398_v4, %v6223_v46 }
 0x233   :  { %v1161_v45 = vsel %vm1080_vm3, %v6441_v3, %v1160_v7  ;;  %v1095_v26 = vsel %vm1090_vm12, %v951_v1, %v943_v10  ;;  %v1145_v44 = vsel %vm1074_vm14, %v911_v12, %v1144_v16  ;;  %v4290_v32 = vrot.slane %v735_v14, 9 }
 0x234   :  { %v1162_v13 = vsel %vm1082_vm4, %v1035_v38, %v1161_v45  ;;  %v935_v7 = vrot.slane %v6295_v17, %v6250_v21  ;;  %v1146_v49 = vsel %vm1076_vm15, %v6462_v35, %v1145_v44  ;;  %v6505_v57 = vrot.slane %v6400_v20, %v6223_v46 }
 0x235   :  { %1184 = vrot.lane.b32.xlu1 %v1162_v13, %s5518_s1  ;;  %v1170_v45 = vsel %vm1090_vm12, %v6493_v58, %v1043_v11  ;;  %v1147_v38 = vsel %vm1078_vm0, %v6466_v18, %v1146_v49  ;;  %v6511_v16 = vmax.f32 %v735_v14, %v4290_v32  ;;  %v1007_v13 = vrot.slane %v6336_v34, %v6250_v21 }
 0x236   :  { %v1015_v17 = vrot.slane %v6366_v36, %v6250_v21  ;;  %v1148_v44 = vsel %vm1080_vm3, %v935_v7, %v1147_v38  ;;  %v1171_v23 = vsel %vm1072_vm13, %v6505_v57, %v1170_v45  ;;  %v1023_v31 = vrot.slane %v6373_v51, %v6250_v21 }
 0x237   :  { %v1039_v11 = vrot.slane %v6450_v2, %v6250_v21  ;;  %v1149_v49 = vsel %vm1082_vm4, %v943_v10, %v1148_v44  ;;  %v6527_v14 = vrot.slane %v6511_v16, %v6223_v46  ;;  %v1163_v32 = vsel %vm1090_vm12, %v6364_v0, %v6348_v22 }
 0x238   :  { %v1047_v38 = vrot.slane %v6382_v59, %v6250_v21  ;;  %v1164_v45 = vsel %vm1072_vm13, %v6356_v25, %v1163_v32  ;;  %v959_v2 = vrot.slane %v6317_v41, %v6250_v21  ;;  %v967_v10 = vrot.slane %v6315_v29, %v6250_v21 }
 0x239   :  { %1178 = vrot.lane.b32.xlu1 %v1149_v49, %s5518_s1  ;;  %v1172_v44 = vsel %vm1074_vm14, %v6527_v14, %v1171_v23  ;;  %v1165_v51 = vsel %vm1074_vm14, %v1007_v13, %v1164_v45  ;;  %v1055_v59 = vrot.slane %v6398_v4, %v6250_v21  ;;  %v1031_v49 = vrot.slane %v6369_v39, %v6250_v21  ;;  %v1307_v23 = vld [vmem:[%s9282_s3 + $0x208] sm:$0xff]  ;;  %v1309_v45 = vld [vmem:[%s9282_s3 + $0x218] sm:$0xff] }
 0x23a   :  { %v1115_v36 = vsel %vm1090_vm12, %v1047_v38, %v1039_v11  ;;  %1188 = vrot.lane.b32.xlu0 %v1172_v44, %s5518_s1  ;;  %v1166_v32 = vsel %vm1076_vm15, %v1015_v17, %v1165_v51  ;;  %v975_v29 = vrot.slane %v6426_v37, %v6250_v21  ;;  %v1153_v41 = vsel %vm1090_vm12, %v959_v2, %v951_v1 }
 0x23b   :  { %v1167_v44 = vsel %vm1078_vm0, %v1023_v31, %v1166_v32  ;;  %v1154_v4 = vsel %vm1072_vm13, %v967_v10, %v1153_v41  ;;  %v1173_v39 = vsel %vm1090_vm12, %v1055_v59, %v1047_v38  ;;  %v1084_v51 = vsel %vm1072_vm13, %v6287_v63, %v6271_v55 }
 0x23c   :  { %v1168_v1 = vsel %vm1080_vm3, %v1031_v49, %v1167_v44  ;;  %v1063_v37 = vrot.slane %v6400_v20, %v6250_v21  ;;  %v1085_v34 = vsel %vm1074_vm14, %v6283_v61, %v1084_v51  ;;  %v1155_v32 = vsel %vm1074_vm14, %v975_v29, %v1154_v4 }
 0x23d   :  { %v1169_v48 = vsel %vm1082_vm4, %v1039_v11, %v1168_v1  ;;  %v1086_v41 = vsel %vm1076_vm15, %v911_v12, %v1085_v34  ;;  %v4713_v9 = vpack.c.bf16 %v1309_v45, %v1307_v23  ;;  %v1073_v61 = vsel %vm1072_vm13, %v6279_v60, %v6266_v50  ;;  %v1311_v23 = vld [vmem:[%s9282_s3 + $0x228] sm:$0xff]  ;;  %v1313_v45 = vld [vmem:[%s9282_s3 + $0x238] sm:$0xff] }
 0x23e   :  { %1186 = vrot.lane.b32.xlu1 %v1169_v48, %s5518_s1  ;;  %1182 = vrot.lane.b32.xlu0 %v1155_v32, %s5518_s1  ;;  %v1174_v55 = vsel %vm1072_vm13, %v1063_v37, %v1173_v39  ;;  %v1087_v63 = vsel %vm1078_vm0, %v6462_v35, %v1086_v41  ;;  %v1071_v11 = vrot.slane %v6511_v16, %v6250_v21  ;;  %v1877_v1 = vld [vmem:[%s9284_s5 + $0x278] sm:$0xff] }
 0x23f   :  { %v1088_v34 = vsel %vm1080_vm3, %v6466_v18, %v1087_v63  ;;  %4714 = vmatprep.subr.bf16.mxu0 %v4713_v9  ;;  %v1075_v48 = vsel %vm1074_vm14, %v6275_v56, %v1073_v61  ;;  %v1096_v4 = vsel %vm1072_vm13, %v959_v2, %v1095_v26  ;;  %v1099_v26 = vsel %vm1072_vm13, %v6360_v28, %v6340_v19  ;;  %v1310_v63 = vld [vmem:[%s9282_s3 + $0x220] sm:$0xff]  ;;  %v1312_v61 = vld [vmem:[%s9282_s3 + $0x230] sm:$0xff] }
 0x240   :  { %v1089_v39 = vsel %vm1082_vm4, %v935_v7, %v1088_v34  ;;  %v1077_v12 = vsel %vm1076_vm15, %v6325_v62, %v1075_v48  ;;  %v1097_v35 = vsel %vm1074_vm14, %v967_v10, %v1096_v4  ;;  %v1175_v50 = vsel %vm1074_vm14, %v1071_v11, %v1174_v55  ;;  %v1317_v34 = vld [vmem:[%s9282_s3 + $0x258] sm:$0xff] }
 0x241   :  { %v1079_v60 = vsel %vm1078_vm0, %v6344_v27, %v1077_v12  ;;  %v6597_v18 = vsel %vm1076_vm15, %v975_v29, %v1097_v35  ;;  %v1105_v62 = vsel %vm1072_vm13, %v6364_v0, %v6348_v22  ;;  %v1100_v29 = vsel %vm1074_vm14, %v6352_v24, %v1099_v26  ;;  %v1314_v12 = vld [vmem:[%s9282_s3 + $0x240] sm:$0xff]  ;;  %v1316_v35 = vld [vmem:[%s9282_s3 + $0x250] sm:$0xff] }
 0x242   :  { %1190 = vrot.lane.b32.xlu0 %v1175_v50, %s5518_s1  ;;  %v1081_v56 = vsel %vm1080_vm3, %v6377_v52, %v1079_v60  ;;  %v1106_v27 = vsel %vm1074_vm14, %v6356_v25, %v1105_v62  ;;  %v1101_v52 = vsel %vm1076_vm15, %v6423_v40, %v1100_v29  ;;  %v1112_v24 = vsel %vm1072_vm13, %v6493_v58, %v6487_v33  ;;  %v1319_v50 = vld [vmem:[%s9282_s3 + $0x268] sm:$0xff]  ;;  %v1321_v60 = vld [vmem:[%s9282_s3 + $0x278] sm:$0xff] }
 0x243   :  { %v1083_v9 = vsel %vm1082_vm4, %v6386_v54, %v1081_v56  ;;  %v1107_v2 = vsel %vm1076_vm15, %v1007_v13, %v1106_v27  ;;  %v1102_v54 = vsel %vm1078_vm0, %v6430_v6, %v1101_v52  ;;  %v1116_v25 = vsel %vm1072_vm13, %v1055_v59, %v1115_v36 }
 0x244   :  { %v1108_v19 = vsel %vm1078_vm0, %v1015_v17, %v1107_v2  ;;  %v1103_v22 = vsel %vm1080_vm3, %v6437_v47, %v1102_v54  ;;  %v1113_v17 = vsel %vm1074_vm14, %v6505_v57, %v1112_v24  ;;  %v1117_v47 = vsel %vm1074_vm14, %v1063_v37, %v1116_v25  ;;  %v1318_v2 = vld [vmem:[%s9282_s3 + $0x260] sm:$0xff]  ;;  %v1320_v54 = vld [vmem:[%s9282_s3 + $0x270] sm:$0xff] }
 0x245   :  { %v1109_v28 = vsel %vm1080_vm3, %v1023_v31, %v1108_v19  ;;  %v1104_v40 = vsel %vm1082_vm4, %v6441_v3, %v1103_v22  ;;  %v1114_v6 = vsel %vm1076_vm15, %v6527_v14, %v1113_v17  ;;  %v1118_v33 = vsel %vm1076_vm15, %v1071_v11, %v1117_v47  ;;  %v1315_v11 = vld [vmem:[%s9282_s3 + $0x248] sm:$0xff]  ;;  %v1325_v22 = vld [vmem:[%s9282_s3 + $0x298] sm:$0xff] }
 0x246   :  { %v1110_v0 = vsel %vm1082_vm4, %v1031_v49, %v1109_v28  ;;  %v6633_v31 = vsel %vm1127_vm5, 0.0, %v1104_v40  ;;  %v6640_v36 = vsel %vm147_vm1, %v1114_v6, 0.0  ;;  %v1092_v59 = vsel %vm1072_vm13, %v6406_v5, %v6411_v15  ;;  %v1308_v49 = vld [vmem:[%s9282_s3 + $0x210] sm:$0xff]  ;;  %v1323_v28 = vld [vmem:[%s9282_s3 + $0x288] sm:$0xff] }
 0x247   :  { %v1128_v3 = vsel %vm1127_vm5, 0.0, %v1083_v9  ;;  %v1214_v58 = vrot.slane %v6633_v31, 2  ;;  %v1093_v7 = vsel %vm1074_vm14, %v6417_v30, %v1092_v59  ;;  %v1215_v57 = vrot.slane %v6640_v36, 2  ;;  %v1324_v6 = vld [vmem:[%s9282_s3 + $0x290] sm:$0xff]  ;;  %v1327_v59 = vld [vmem:[%s9282_s3 + $0x2a8] sm:$0xff] }
 0x248   :  { %v1094_v37 = vsel %vm1076_vm15, %v6448_v53, %v1093_v7  ;;  %v1208_v5 = vrot.slane %v1128_v3, 2  ;;  %v1306_v53 = vld [vmem:[%s9282_s3 + $0x200] sm:$0xff]  ;;  %v6680_v51 = vsel %vm1127_vm5, 0.0, %v1089_v39  ;;  %v4717_v55 = vpack.c.bf16 %v1313_v45, %v1311_v23 }
 0x249   :  { %v1132_v13 = vsel %vm147_vm1, %v1094_v37, 0.0  ;;  %v6656_v14 = vsel %vm114_vm2, %v1214_v58, %v1215_v57  ;;  %v4715_v32 = vpack.c.bf16 %v1308_v49, %v1306_v53  ;;  %v4719_v48 = vpack.c.bf16 %v1312_v61, %v1310_v63  ;;  %v1333_v53 = vld [vmem:[%s9282_s3 + $0x2d8] sm:$0xff]  ;;  %v1335_v63 = vld [vmem:[%s9282_s3 + $0x2e8] sm:$0xff] }
 0x24a   :  { %v1209_v15 = vrot.slane %v1132_v13, 2  ;;  %v4291_v38 = vcombine.low %v1132_v13, %v6633_v31  ;;  %v4721_v39 = vpack.c.bf16 %v1317_v34, %v1315_v11  ;;  %v6720_v56 = vsel %vm147_vm1, %v6597_v18, 0.0  ;;  %v1337_v61 = vld [vmem:[%s9282_s3 + $0x2f8] sm:$0xff] }
 0x24b   :  { %v4723_v29 = vpack.c.bf16 %v1316_v35, %v1314_v12  ;;  %v4725_v18 = vpack.c.bf16 %v1321_v60, %v1319_v50  ;;  %v4727_v25 = vpack.c.bf16 %v1320_v54, %v1318_v2  ;;  %v4729_v17 = vpack.c.bf16 %v1325_v22, %v1323_v28  ;;  %v1338_v60 = vld [vmem:[%s9282_s3 + $0x300] sm:$0xff]  ;;  %v1344_v54 = vld [vmem:[%s9282_s3 + $0x330] sm:$0xff]  ;;  %v1349_v28 = vld [vmem:[%s9282_s3 + $0x358] sm:$0xff] }
 0x24c   :  { %v6660_v10 = vsel %vm114_vm2, %v1208_v5, %v1209_v15  ;;  %v6663_v30 = vcombine.low %v1209_v15, %v6656_v14  ;;  %v1326_v5 = vld [vmem:[%s9282_s3 + $0x2a0] sm:$0xff]  ;;  %v1328_v15 = vld [vmem:[%s9282_s3 + $0x2b0] sm:$0xff] }
 0x24d   :  { %v4735_v49 = vpack.c.bf16 %v1328_v15, %v1326_v5  ;;  %v1342_v2 = vld [vmem:[%s9282_s3 + $0x320] sm:$0xff]  ;;  %v1356_v15 = vld [vmem:[%s9282_s3 + $0x390] sm:$0xff] }
 0x24e   :  { %v4751_v22 = vpack.c.bf16 %v1344_v54, %v1342_v2  ;;  %v1354_v5 = vld [vmem:[%s9282_s3 + $0x380] sm:$0xff]  ;;  %v1372_v54 = vld [vmem:[%s9282_s3 + $0x410] sm:$0xff] }
 0x24f   :  { %v1370_v2 = vld [vmem:[%s9282_s3 + $0x400] sm:$0xff] }
 0x29f   :  { %v6677_v44 = vpop.permute.xlu1 %1176 }
 0x2a0   :  { %v1220_v41 = vsel %vm549_vm11, %v6680_v51, %v6677_v44 }
 0x2a1   :  { %1495 = vmatprep.mubr.f32.mxu0 %v1220_v41  ;;  %v1332_v41 = vld [vmem:[%s9282_s3 + $0x2d0] sm:$0xff] }
 0x2a2   :  { %4300 = vmatmul.mubr.msk.f32.vlgmr.msra.gmra.mrb[0].mxu0 %vm6683_vm6, %v1083_v9  ;;  %v6723_v9 = vsel %vm1127_vm5, 0.0, %v1110_v0  ;;  %v6748_v0 = vsel %vm147_vm1, %v1118_v33, 0.0  ;;  %v1329_v33 = vld [vmem:[%s9282_s3 + $0x2b8] sm:$0xff] }
 0x2a3   :  { %4716 = vmatpush1.bf16.msra.mxu0 %v4715_v32  ;;  %v4733_v13 = vpack.c.bf16 %v1329_v33, %v1327_v59  ;;  %v1330_v32 = vld [vmem:[%s9282_s3 + $0x2c0] sm:$0xff]  ;;  %v1352_v33 = vld [vmem:[%s9282_s3 + $0x370] sm:$0xff] }
 0x2a4   :  { %v6704_v4 = vpop.permute.xlu0 %1180  ;;  %4718 = vmatprep.subr.bf16.mxu0 %v4717_v55  ;;  %v4739_v34 = vpack.c.bf16 %v1332_v41, %v1330_v32  ;;  %v1350_v59 = vld [vmem:[%s9282_s3 + $0x360] sm:$0xff]  ;;  %v1360_v32 = vld [vmem:[%s9282_s3 + $0x3b0] sm:$0xff]  ;;  %v1363_v41 = vld [vmem:[%s9282_s3 + $0x3c8] sm:$0xff] }
 0x2a5   :  { %v1221_v62 = vsel %vm549_vm11, %v6720_v56, %v6704_v4 }
 0x2a7   :  { %v6725_v26 = vpop.permute.xlu1 %1184  ;;  %4720 = vmatpush1.bf16.msra.mxu0 %v4719_v48  ;;  %v1334_v48 = vld [vmem:[%s9282_s3 + $0x2e0] sm:$0xff] }
 0x2a8   :  { %v1222_v27 = vsel %vm549_vm11, %v6723_v9, %v6725_v26  ;;  %4722 = vmatprep.subr.bf16.mxu0 %v4721_v39  ;;  %v1336_v39 = vld [vmem:[%s9282_s3 + $0x2f0] sm:$0xff] }
 0x2a9   :  { %v1236_v52 = vcombine.high %v6633_v31, %v1222_v27  ;;  %v4292_v19 = vcombine.low %v1221_v62, %v1222_v27  ;;  %v1322_v31 = vld [vmem:[%s9282_s3 + $0x280] sm:$0xff]  ;;  %v4743_v35 = vpack.c.bf16 %v1336_v39, %v1334_v48  ;;  %v1340_v62 = vld [vmem:[%s9282_s3 + $0x310] sm:$0xff]  ;;  %v1367_v39 = vld [vmem:[%s9282_s3 + $0x3e8] sm:$0xff] }
 0x2aa   :  { %v4731_v58 = vpack.c.bf16 %v1324_v6, %v1322_v31  ;;  %v1353_v31 = vld [vmem:[%s9282_s3 + $0x378] sm:$0xff]  ;;  %v1364_v48 = vld [vmem:[%s9282_s3 + $0x3d0] sm:$0xff] }
 0x2ab   :  { %1501 = vmatprep.mubr.f32.mxu0 %v4292_v19  ;;  %v4295_v24 = vcombine.low %v1236_v52, %v6640_v36  ;;  %4724 = vmatpush1.bf16.msra.mxu0 %v4723_v29  ;;  %v1343_v29 = vld [vmem:[%s9282_s3 + $0x328] sm:$0xff]  ;;  %v4747_v52 = vpack.c.bf16 %v1340_v62, %v1338_v60  ;;  %v1366_v60 = vld [vmem:[%s9282_s3 + $0x3e0] sm:$0xff]  ;;  %v1368_v62 = vld [vmem:[%s9282_s3 + $0x3f0] sm:$0xff] }
 0x2ac   :  { %4726 = vmatprep.subr.bf16.mxu0 %v4725_v18  ;;  %v1189_v40 = vpop.permute.xlu0 %1188  ;;  %1502 = vmatmul.mubr.f32.gmra.mrb[2].mxu0 %v4291_v38  ;;  %v1331_v38 = vld [vmem:[%s9282_s3 + $0x2c8] sm:$0xff] }
 0x2ad   :  { %v1223_v47 = vsel %vm549_vm11, %v6748_v0, %v1189_v40  ;;  %v4737_v45 = vpack.c.bf16 %v1333_v53, %v1331_v38  ;;  %v1347_v19 = vld [vmem:[%s9282_s3 + $0x348] sm:$0xff]  ;;  %v1361_v53 = vld [vmem:[%s9282_s3 + $0x3b8] sm:$0xff] }
 0x2ae   :  { %v1240_v3 = vcombine.low %v6640_v36, %v1223_v47  ;;  %v1339_v36 = vld [vmem:[%s9282_s3 + $0x308] sm:$0xff] }
 0x2af   :  { %4728 = vmatpush1.bf16.msra.mxu0 %v4727_v25  ;;  %v1346_v25 = vld [vmem:[%s9282_s3 + $0x340] sm:$0xff]  ;;  %v1359_v38 = vld [vmem:[%s9282_s3 + $0x3a8] sm:$0xff] }
 0x2b0   :  { %4730 = vmatprep.subr.bf16.mxu0 %v4729_v17  ;;  %v6765_v7 = vpop.permute.xlu0 %1182  ;;  %v4296_v37 = vcombine.high %v1222_v27, %v1240_v3  ;;  %v1345_v27 = vld [vmem:[%s9282_s3 + $0x338] sm:$0xff]  ;;  %v1351_v17 = vld [vmem:[%s9282_s3 + $0x368] sm:$0xff] }
 0x2b1   :  { %v4749_v18 = vpack.c.bf16 %v1345_v27, %v1343_v29  ;;  %v4757_v47 = vpack.c.bf16 %v1353_v31, %v1351_v17  ;;  %v1355_v3 = vld [vmem:[%s9282_s3 + $0x388] sm:$0xff]  ;;  %v1373_v27 = vld [vmem:[%s9282_s3 + $0x418] sm:$0xff]  ;;  %v1376_v17 = vld [vmem:[%s9282_s3 + $0x430] sm:$0xff] }
 0x2b2   :  { %1507 = vmatprep.mubr.f32.mxu0 %v4296_v37  ;;  %v4759_v37 = vpack.c.bf16 %v1352_v33, %v1350_v59  ;;  %v1371_v29 = vld [vmem:[%s9282_s3 + $0x408] sm:$0xff]  ;;  %v1381_v33 = vld [vmem:[%s9282_s3 + $0x458] sm:$0xff] }
 0x2b3   :  { %4732 = vmatpush1.bf16.msra.mxu0 %v4731_v58  ;;  %v1357_v58 = vld [vmem:[%s9282_s3 + $0x398] sm:$0xff]  ;;  %v1379_v59 = vld [vmem:[%s9282_s3 + $0x448] sm:$0xff] }
 0x2b4   :  { %4734 = vmatprep.subr.bf16.mxu0 %v4733_v13  ;;  %1508 = vmatmul.mubr.f32.gmra.mrb[4].mxu0 %v4295_v24  ;;  %v1191_v23 = vpop.permute.xlu0 %1190  ;;  %v4753_v24 = vpack.c.bf16 %v1349_v28, %v1347_v19  ;;  %v4761_v13 = vpack.c.bf16 %v1357_v58, %v1355_v3  ;;  %v1375_v19 = vld [vmem:[%s9282_s3 + $0x428] sm:$0xff]  ;;  %v1377_v28 = vld [vmem:[%s9282_s3 + $0x438] sm:$0xff]  ;;  %v1212_v58 = vrot.slane %v6720_v56, 2 }
 0x2b5   :  { %1578 = vmatprep.mubr.f32.mxu0 %v6660_v10  ;;  %v6787_v55 = vsel %vm549_vm11, %v1189_v40, %v1191_v23  ;;  %v4741_v10 = vpack.c.bf16 %v1337_v61, %v1335_v63  ;;  %v1348_v40 = vld [vmem:[%s9282_s3 + $0x350] sm:$0xff]  ;;  %v4765_v23 = vpack.c.bf16 %v1361_v53, %v1359_v38  ;;  %v1365_v63 = vld [vmem:[%s9282_s3 + $0x3d8] sm:$0xff]  ;;  %v1382_v53 = vld [vmem:[%s9282_s3 + $0x460] sm:$0xff] }
 0x2b6   :  { %v6798_v11 = vcombine.low %v6787_v55, %v1215_v57  ;;  %v1341_v57 = vld [vmem:[%s9282_s3 + $0x318] sm:$0xff]  ;;  %v4755_v6 = vpack.c.bf16 %v1348_v40, %v1346_v25  ;;  %v4781_v25 = vpack.c.bf16 %v1377_v28, %v1375_v19  ;;  %v1374_v40 = vld [vmem:[%s9282_s3 + $0x420] sm:$0xff] }
 0x2b7   :  { %4736 = vmatpush1.bf16.msra.mxu0 %v4735_v49  ;;  %v4745_v50 = vpack.c.bf16 %v1341_v57, %v1339_v36  ;;  %v4763_v49 = vpack.c.bf16 %v1356_v15, %v1354_v5  ;;  %v1369_v36 = vld [vmem:[%s9282_s3 + $0x3f8] sm:$0xff]  ;;  %v1211_v5 = vrot.slane %v6680_v51, 2 }
 0x2b8   :  { %4738 = vmatprep.subr.bf16.mxu0 %v4737_v45  ;;  %v4298_v12 = vcombine.high %v6656_v14, %v6798_v11  ;;  %v1358_v45 = vld [vmem:[%s9282_s3 + $0x3a0] sm:$0xff]  ;;  %v9319_v11 = vmov 0.0   ;;  %v1941_v19 = vld [vmem:[%s9284_s5 + $0x478] sm:$0xff] }
 0x2b9   :  { %v4767_v61 = vpack.c.bf16 %v1360_v32, %v1358_v45  ;;  %v1213_v51 = vsel %vm114_vm2, %v1211_v5, %v1212_v58  ;;  %v1806_v5 = vld [vmem:[%s9284_s5 + $0x40] sm:$0xff] }
 0x2bb   :  { %4740 = vmatpush1.bf16.msra.mxu0 %v4739_v34  ;;  %v4769_v34 = vpack.c.bf16 %v1365_v63, %v1363_v41 }
 0x2bc   :  { %4742 = vmatprep.subr.bf16.mxu0 %v4741_v10  ;;  %v1362_v10 = vld [vmem:[%s9282_s3 + $0x3c0] sm:$0xff] }
 0x2bd   :  { %v4771_v57 = vpack.c.bf16 %v1364_v48, %v1362_v10  ;;  %v1926_v10 = vld [vmem:[%s9284_s5 + $0x400] sm:$0xff]  ;;  %v1928_v48 = vld [vmem:[%s9284_s5 + $0x410] sm:$0xff] }
 0x2bf   :  { %4744 = vmatpush1.bf16.msra.mxu0 %v4743_v35  ;;  %v1179_v35 = vpop.permute.xlu1 %1178 }
 0x2c0   :  { %4746 = vmatprep.subr.bf16.mxu0 %v4745_v50  ;;  %v4773_v50 = vpack.c.bf16 %v1369_v36, %v1367_v39  ;;  %v1192_v31 = vsel %vm549_vm11, %v6677_v44, %v1179_v35  ;;  %v4783_v44 = vpack.c.bf16 %v1376_v17, %v1374_v40  ;;  %v4923_v39 = vpack.c.bf16 %v1928_v48, %v1926_v10  ;;  %v1931_v36 = vld [vmem:[%s9284_s5 + $0x428] sm:$0xff]  ;;  %v1930_v35 = vld [vmem:[%s9284_s5 + $0x420] sm:$0xff]  ;;  %v1820_v10 = vld [vmem:[%s9284_s5 + $0xb0] sm:$0xff] }
 0x2c1   :  { %v1799_v17 = vld [vmem:[%s9284_s5 + $0x8] sm:$0xff] }
 0x2c2   :  { %v1823_v48 = vld [vmem:[%s9284_s5 + $0xc8] sm:$0xff] }
 0x2c3   :  { %4748 = vmatpush1.bf16.msra.mxu0 %v4747_v52  ;;  %v4775_v52 = vpack.c.bf16 %v1368_v62, %v1366_v60  ;;  %v1932_v60 = vld [vmem:[%s9284_s5 + $0x430] sm:$0xff]  ;;  %v1935_v62 = vld [vmem:[%s9284_s5 + $0x448] sm:$0xff] }
 0x2c4   :  { %4750 = vmatprep.subr.bf16.mxu0 %v4749_v18  ;;  %v4777_v18 = vpack.c.bf16 %v1373_v27, %v1371_v29  ;;  %v1937_v29 = vld [vmem:[%s9284_s5 + $0x458] sm:$0xff]  ;;  %v4927_v27 = vpack.c.bf16 %v1932_v60, %v1930_v35  ;;  %v1822_v35 = vld [vmem:[%s9284_s5 + $0xc0] sm:$0xff]  ;;  %v1827_v60 = vld [vmem:[%s9284_s5 + $0xe8] sm:$0xff] }
 0x2c7   :  { %4752 = vmatpush1.bf16.msra.mxu0 %v4751_v22  ;;  %v1187_v22 = vpop.permute.xlu1 %1186 }
 0x2c8   :  { %4754 = vmatprep.subr.bf16.mxu0 %v4753_v24  ;;  %v4779_v24 = vpack.c.bf16 %v1372_v54, %v1370_v2  ;;  %v1936_v2 = vld [vmem:[%s9284_s5 + $0x450] sm:$0xff]  ;;  %v1939_v54 = vld [vmem:[%s9284_s5 + $0x468] sm:$0xff] }
 0x2cb   :  { %4756 = vmatpush1.bf16.msra.mxu0 %v4755_v6  ;;  %v1194_v6 = vsel %vm549_vm11, %v6725_v26, %v1187_v22  ;;  %v4785_v26 = vpack.c.bf16 %v1381_v33, %v1379_v59  ;;  %v4933_v22 = vpack.c.bf16 %v1941_v19, %v1939_v54  ;;  %v1800_v59 = vld [vmem:[%s9284_s5 + $0x10] sm:$0xff]  ;;  %v1803_v33 = vld [vmem:[%s9284_s5 + $0x28] sm:$0xff]  ;;  %v1833_v54 = vld [vmem:[%s9284_s5 + $0x118] sm:$0xff] }
 0x2cc   :  { %4758 = vmatprep.subr.bf16.mxu0 %v4757_v47  ;;  %v1193_v47 = vsel %vm549_vm11, %v6704_v4, %v6765_v7  ;;  %v1378_v4 = vld [vmem:[%s9282_s3 + $0x440] sm:$0xff]  ;;  %v1380_v7 = vld [vmem:[%s9282_s3 + $0x450] sm:$0xff] }
 0x2cd   :  { %v4293_v3 = vcombine.low %v1193_v47, %v1194_v6  ;;  %v4787_v15 = vpack.c.bf16 %v1380_v7, %v1378_v4  ;;  %v1802_v4 = vld [vmem:[%s9284_s5 + $0x20] sm:$0xff]  ;;  %v1804_v7 = vld [vmem:[%s9284_s5 + $0x30] sm:$0xff] }
 0x2cf   :  { %4760 = vmatpush1.bf16.msra.mxu0 %v4759_v37  ;;  %v1383_v37 = vld [vmem:[%s9282_s3 + $0x468] sm:$0xff] }
 0x2d0   :  { %4762 = vmatprep.subr.bf16.mxu0 %v4761_v13  ;;  %v1238_v13 = vcombine.high %v1194_v6, %v6656_v14  ;;  %v1798_v6 = vld [vmem:[%s9284_s5] sm:$0xff] }
 0x2d2   :  { %v4297_v56 = vcombine.low %v1238_v13, %v6787_v55  ;;  %v1218_v55 = vrot.slane %v6748_v0, 2  ;;  %v1929_v0 = vld [vmem:[%s9284_s5 + $0x418] sm:$0xff] }
 0x2d3   :  { %4764 = vmatpush1.bf16.msra.mxu0 %v4763_v49  ;;  %v1384_v49 = vld [vmem:[%s9282_s3 + $0x470] sm:$0xff] }
 0x2d4   :  { %4766 = vmatprep.subr.bf16.mxu0 %v4765_v23  ;;  %v4791_v14 = vpack.c.bf16 %v1384_v49, %v1382_v53  ;;  %v1217_v23 = vrot.slane %v6723_v9, 2  ;;  %v1927_v9 = vld [vmem:[%s9284_s5 + $0x408] sm:$0xff] }
 0x2d6   :  { %v1219_v32 = vsel %vm114_vm2, %v1217_v23, %v1218_v55 }
 0x2d7   :  { %4768 = vmatpush1.bf16.msra.mxu0 %v4767_v61  ;;  %v1239_v41 = vcombine.high %v1219_v32, %v1219_v32  ;;  %v1407_v63 = vcombine.low %v1212_v58, %v1219_v32  ;;  %v1807_v58 = vld [vmem:[%s9284_s5 + $0x48] sm:$0xff]  ;;  %v1814_v32 = vld [vmem:[%s9284_s5 + $0x80] sm:$0xff] }
 0x2d8   :  { %4770 = vmatprep.subr.bf16.mxu0 %v4769_v34  ;;  %v4921_v34 = vpack.c.bf16 %v1929_v0, %v1927_v9 }
 0x2d9   :  { %v1412_v61 = vcombine.low %v1239_v41, %v1218_v55  ;;  %v1817_v55 = vld [vmem:[%s9284_s5 + $0x98] sm:$0xff]  ;;  %v1816_v41 = vld [vmem:[%s9284_s5 + $0x90] sm:$0xff] }
 0x2da   :  { %v4811_v9 = vpack.c.bf16 %v1816_v41, %v1814_v32  ;;  %v1852_v32 = vld [vmem:[%s9284_s5 + $0x1b0] sm:$0xff]  ;;  %v1855_v41 = vld [vmem:[%s9284_s5 + $0x1c8] sm:$0xff] }
 0x2db   :  { %4772 = vmatpush1.bf16.msra.mxu0 %v4771_v57  ;;  %v1933_v57 = vld [vmem:[%s9284_s5 + $0x438] sm:$0xff] }
 0x2dc   :  { %4774 = vmatprep.subr.bf16.mxu0 %v4773_v50  ;;  %v4925_v50 = vpack.c.bf16 %v1933_v57, %v1931_v36 }
 0x2df   :  { %4776 = vmatpush1.bf16.msra.mxu0 %v4775_v52  ;;  %v4929_v52 = vpack.c.bf16 %v1937_v29, %v1935_v62  ;;  %v1829_v62 = vld [vmem:[%s9284_s5 + $0xf8] sm:$0xff] }
 0x2e0   :  { %4778 = vmatprep.subr.bf16.mxu0 %v4777_v18  ;;  %v1934_v18 = vld [vmem:[%s9284_s5 + $0x440] sm:$0xff] }
 0x2e1   :  { %v4931_v28 = vpack.c.bf16 %v1936_v2, %v1934_v18  ;;  %v1828_v18 = vld [vmem:[%s9284_s5 + $0xf0] sm:$0xff]  ;;  %v1831_v2 = vld [vmem:[%s9284_s5 + $0x108] sm:$0xff] }
 0x2e2   :  { %1579 = vmatmul.mubr.f32.vlgmr.msra.gmra.mrb[0].mxu0 %v1192_v31  ;;  %v1801_v31 = vld [vmem:[%s9284_s5 + $0x18] sm:$0xff] }
 0x2e3   :  { %1584 = vmatprep.mubr.f32.mxu0 %v6663_v30  ;;  %4780 = vmatpush1.bf16.msra.mxu0 %v4779_v24  ;;  %v1385_v30 = vld [vmem:[%s9282_s3 + $0x478] sm:$0xff]  ;;  %v1938_v24 = vld [vmem:[%s9284_s5 + $0x460] sm:$0xff]  ;;  %v4793_v47 = vpack.c.bf16 %v1801_v31, %v1799_v17 }
 0x2e4   :  { %4782 = vmatprep.subr.bf16.mxu0 %v4781_v25  ;;  %v4789_v38 = vpack.c.bf16 %v1385_v30, %v1383_v37  ;;  %v1940_v25 = vld [vmem:[%s9284_s5 + $0x470] sm:$0xff]  ;;  %v1809_v37 = vld [vmem:[%s9284_s5 + $0x58] sm:$0xff]  ;;  %v4799_v30 = vpack.c.bf16 %v1804_v7, %v1802_v4  ;;  %v1843_v7 = vld [vmem:[%s9284_s5 + $0x168] sm:$0xff] }
 0x2e5   :  { %v4935_v40 = vpack.c.bf16 %v1940_v25, %v1938_v24  ;;  %4794 = vmatprep.subr.bf16.mxu1 %v4793_v47  ;;  %v4801_v13 = vpack.c.bf16 %v1809_v37, %v1807_v58  ;;  %v1832_v24 = vld [vmem:[%s9284_s5 + $0x110] sm:$0xff]  ;;  %v1835_v25 = vld [vmem:[%s9284_s5 + $0x128] sm:$0xff]  ;;  %v1845_v58 = vld [vmem:[%s9284_s5 + $0x178] sm:$0xff] }
 0x2e6   :  { %1585 = vmatmul.mubr.f32.gmra.mrb[2].mxu0 %v4293_v3  ;;  %v4795_v3 = vpack.c.bf16 %v1800_v59, %v1798_v6  ;;  %v1834_v6 = vld [vmem:[%s9284_s5 + $0x120] sm:$0xff]  ;;  %v1836_v47 = vld [vmem:[%s9284_s5 + $0x130] sm:$0xff]  ;;  %v1839_v59 = vld [vmem:[%s9284_s5 + $0x148] sm:$0xff] }
 0x2e7   :  { %1590 = vmatprep.mubr.f32.mxu0 %v4298_v12  ;;  %4784 = vmatpush1.bf16.msra.mxu0 %v4783_v44  ;;  %v1232_v12 = vcombine.high %v1213_v51, %v1213_v51  ;;  %v1805_v44 = vld [vmem:[%s9284_s5 + $0x38] sm:$0xff]  ;;  %v1840_v4 = vld [vmem:[%s9284_s5 + $0x150] sm:$0xff] }
 0x2e8   :  { %4786 = vmatprep.subr.bf16.mxu0 %v4785_v26  ;;  %v4797_v26 = vpack.c.bf16 %v1805_v44, %v1803_v33  ;;  %4796 = vmatpush1.bf16.msra.mxu1 %v4795_v3  ;;  %v1841_v33 = vld [vmem:[%s9284_s5 + $0x158] sm:$0xff]  ;;  %v4831_v44 = vpack.c.bf16 %v1836_v47, %v1834_v6 }
 0x2e9   :  { %v1402_v45 = vcombine.low %v1213_v51, %v1232_v12  ;;  %v1810_v51 = vld [vmem:[%s9284_s5 + $0x60] sm:$0xff]  ;;  %v1815_v12 = vld [vmem:[%s9284_s5 + $0x88] sm:$0xff]  ;;  %v4833_v3 = vpack.c.bf16 %v1841_v33, %v1839_v59 }
 0x2ea   :  { %1591 = vmatmul.mubr.f32.gmra.mrb[4].mxu0 %v4297_v56  ;;  %4798 = vmatprep.subr.bf16.mxu1 %v4797_v26  ;;  %v1811_v56 = vld [vmem:[%s9284_s5 + $0x68] sm:$0xff]  ;;  %v1838_v26 = vld [vmem:[%s9284_s5 + $0x140] sm:$0xff] }
 0x2eb   :  { %4788 = vmatpush1.bf16.msra.mxu0 %v4787_v15  ;;  %1661 = vmatprep.mubr.f32.mxu0 %v9319_v11  ;;  %v1808_v15 = vld [vmem:[%s9284_s5 + $0x50] sm:$0xff]  ;;  %v4835_v37 = vpack.c.bf16 %v1840_v4, %v1838_v26 }
 0x2ec   :  { %4790 = vmatprep.subr.bf16.mxu0 %v4789_v38  ;;  %v1813_v38 = vld [vmem:[%s9284_s5 + $0x78] sm:$0xff]  ;;  %4800 = vmatpush1.bf16.msra.mxu1 %v4799_v30  ;;  %v4803_v53 = vpack.c.bf16 %v1808_v15, %v1806_v5  ;;  %v4837_v30 = vpack.c.bf16 %v1845_v58, %v1843_v7  ;;  %v1844_v5 = vld [vmem:[%s9284_s5 + $0x170] sm:$0xff]  ;;  %v1847_v15 = vld [vmem:[%s9284_s5 + $0x188] sm:$0xff] }
 0x2ed   :  { %4802 = vmatprep.subr.bf16.mxu1 %v4801_v13  ;;  %v4805_v49 = vpack.c.bf16 %v1813_v38, %v1811_v56  ;;  %v1842_v13 = vld [vmem:[%s9284_s5 + $0x160] sm:$0xff]  ;;  %v1849_v56 = vld [vmem:[%s9284_s5 + $0x198] sm:$0xff] }
 0x2ee   :  { %v4839_v38 = vpack.c.bf16 %v1844_v5, %v1842_v13 }
 0x2ef   :  { %4792 = vmatpush1.bf16.msra.mxu0 %v4791_v14  ;;  %v1812_v14 = vld [vmem:[%s9284_s5 + $0x70] sm:$0xff] }
 0x2f0   :  { %4922 = vmatprep.subr.bf16.mxu0 %v4921_v34  ;;  %4804 = vmatpush1.bf16.msra.mxu1 %v4803_v53  ;;  %v4807_v23 = vpack.c.bf16 %v1812_v14, %v1810_v51  ;;  %v1818_v34 = vld [vmem:[%s9284_s5 + $0xa0] sm:$0xff]  ;;  %v4841_v53 = vpack.c.bf16 %v1849_v56, %v1847_v15  ;;  %v1848_v51 = vld [vmem:[%s9284_s5 + $0x190] sm:$0xff]  ;;  %v1851_v14 = vld [vmem:[%s9284_s5 + $0x1a8] sm:$0xff] }
 0x2f1   :  { %4806 = vmatprep.subr.bf16.mxu1 %v4805_v49  ;;  %v4815_v36 = vpack.c.bf16 %v1820_v10, %v1818_v34  ;;  %v1846_v49 = vld [vmem:[%s9284_s5 + $0x180] sm:$0xff]  ;;  %v1856_v34 = vld [vmem:[%s9284_s5 + $0x1d0] sm:$0xff]  ;;  %v1859_v10 = vld [vmem:[%s9284_s5 + $0x1e8] sm:$0xff] }
 0x2f2   :  { %4301 = vmatmul.mubr.msk.f32.vlgmr.msra.gmra.mrb[0].mxu0 %vm549_vm11, %v1402_v45  ;;  %v4809_v45 = vpack.c.bf16 %v1817_v55, %v1815_v12  ;;  %v1853_v12 = vld [vmem:[%s9284_s5 + $0x1b8] sm:$0xff]  ;;  %v4843_v55 = vpack.c.bf16 %v1848_v51, %v1846_v49 }
 0x2f3   :  { %1667 = vmatprep.mubr.f32.mxu0 %v9319_v11  ;;  %4924 = vmatpush1.bf16.msra.mxu0 %v4923_v39  ;;  %v1825_v39 = vld [vmem:[%s9284_s5 + $0xd8] sm:$0xff] }
 0x2f4   :  { %4926 = vmatprep.subr.bf16.mxu0 %v4925_v50  ;;  %4808 = vmatpush1.bf16.msra.mxu1 %v4807_v23  ;;  %v4817_v57 = vpack.c.bf16 %v1825_v39, %v1823_v48  ;;  %v1824_v50 = vld [vmem:[%s9284_s5 + $0xd0] sm:$0xff]  ;;  %v4845_v23 = vpack.c.bf16 %v1853_v12, %v1851_v14  ;;  %v1861_v48 = vld [vmem:[%s9284_s5 + $0x1f8] sm:$0xff] }
 0x2f5   :  { %4810 = vmatprep.subr.bf16.mxu1 %v4809_v45  ;;  %v4819_v29 = vpack.c.bf16 %v1824_v50, %v1822_v35  ;;  %v1850_v45 = vld [vmem:[%s9284_s5 + $0x1a0] sm:$0xff]  ;;  %v1860_v35 = vld [vmem:[%s9284_s5 + $0x1f0] sm:$0xff] }
 0x2f6   :  { %4302 = vmatmul.mubr.msk.f32.gmra.mrb[2].mxu0 %vm549_vm11, %v1407_v63  ;;  %v1819_v63 = vld [vmem:[%s9284_s5 + $0xa8] sm:$0xff] }
 0x2f7   :  { %1673 = vmatprep.mubr.f32.mxu0 %v9319_v11  ;;  %4928 = vmatpush1.bf16.msra.mxu0 %v4927_v27  ;;  %v4821_v27 = vpack.c.bf16 %v1829_v62, %v1827_v60  ;;  %v1863_v60 = vld [vmem:[%s9284_s5 + $0x208] sm:$0xff]  ;;  %v1865_v62 = vld [vmem:[%s9284_s5 + $0x218] sm:$0xff] }
 0x2f8   :  { %4930 = vmatprep.subr.bf16.mxu0 %v4929_v52  ;;  %4812 = vmatpush1.bf16.msra.mxu1 %v4811_v9  ;;  %v1826_v52 = vld [vmem:[%s9284_s5 + $0xe0] sm:$0xff] }
 0x2f9   :  { %v4823_v19 = vpack.c.bf16 %v1828_v18, %v1826_v52 }
 0x2fa   :  { %4303 = vmatmul.mubr.msk.f32.gmra.mrb[4].mxu0 %vm549_vm11, %v1412_v61  ;;  %v1821_v61 = vld [vmem:[%s9284_s5 + $0xb8] sm:$0xff] }
 0x2fb   :  { %2217 = vmatprep.mubr.f32.mxu0 %v9319_v11  ;;  %4932 = vmatpush1.bf16.msra.mxu0 %v4931_v28  ;;  %v4813_v0 = vpack.c.bf16 %v1821_v61, %v1819_v63  ;;  %v4825_v28 = vpack.c.bf16 %v1833_v54, %v1831_v2  ;;  %v1857_v63 = vld [vmem:[%s9284_s5 + $0x1d8] sm:$0xff]  ;;  %v4847_v61 = vpack.c.bf16 %v1852_v32, %v1850_v45 }
 0x2fc   :  { %4934 = vmatprep.subr.bf16.mxu0 %v4933_v22  ;;  %v1830_v22 = vld [vmem:[%s9284_s5 + $0x100] sm:$0xff]  ;;  %v4849_v9 = vpack.c.bf16 %v1857_v63, %v1855_v41 }
 0x2fd   :  { %4814 = vmatprep.subr.bf16.mxu1 %v4813_v0  ;;  %v4827_v17 = vpack.c.bf16 %v1832_v24, %v1830_v22  ;;  %v1854_v0 = vld [vmem:[%s9284_s5 + $0x1c0] sm:$0xff] }
 0x2fe   :  { %4816 = vmatpush1.bf16.msra.mxu1 %v4815_v36  ;;  %v4851_v39 = vpack.c.bf16 %v1856_v34, %v1854_v0  ;;  %v4853_v36 = vpack.c.bf16 %v1861_v48, %v1859_v10 }
 0x2ff   :  { %4936 = vmatpush1.bf16.msra.mxu0 %v4935_v40  ;;  %4818 = vmatprep.subr.bf16.mxu1 %v4817_v57  ;;  %v1837_v40 = vld [vmem:[%s9284_s5 + $0x138] sm:$0xff]  ;;  %v1858_v57 = vld [vmem:[%s9284_s5 + $0x1e0] sm:$0xff] }
 0x300   :  { %v4829_v31 = vpack.c.bf16 %v1837_v40, %v1835_v25  ;;  %v4855_v50 = vpack.c.bf16 %v1860_v35, %v1858_v57 }
 0x302   :  { %4820 = vmatpush1.bf16.msra.mxu1 %v4819_v29  ;;  %v1386_v29 = vld [vmem:[%s9283_s4] sm:$0x3] }
 0x303   :  { %4822 = vmatprep.subr.bf16.mxu1 %v4821_v27  ;;  %v4857_v27 = vpack.c.bf16 %v1865_v62, %v1863_v60  ;;  %v1391_v52 = vrot.slane %v1386_v29, %v6223_v46  ;;  %v1395_v18 = vrot.slane %v1386_v29, %v6211_v43 }
 0x306   :  { %4824 = vmatpush1.bf16.msra.mxu1 %v4823_v19 }
 0x307   :  { %4826 = vmatprep.subr.bf16.mxu1 %v4825_v28 }
 0x30a   :  { %4828 = vmatpush1.bf16.msra.mxu1 %v4827_v17 }
 0x30b   :  { %4830 = vmatprep.subr.bf16.mxu1 %v4829_v31 }
 0x30e   :  { %4832 = vmatpush1.bf16.msra.mxu1 %v4831_v44 }
 0x30f   :  { %4834 = vmatprep.subr.bf16.mxu1 %v4833_v3 }
 0x312   :  { %4836 = vmatpush1.bf16.msra.mxu1 %v4835_v37 }
 0x313   :  { %4838 = vmatprep.subr.bf16.mxu1 %v4837_v30 }
 0x316   :  { %4840 = vmatpush1.bf16.msra.mxu1 %v4839_v38 }
 0x317   :  { %4842 = vmatprep.subr.bf16.mxu1 %v4841_v53 }
 0x31a   :  { %4844 = vmatpush1.bf16.msra.mxu1 %v4843_v55 }
 0x31b   :  { %4846 = vmatprep.subr.bf16.mxu1 %v4845_v23 }
 0x31e   :  { %4848 = vmatpush1.bf16.msra.mxu1 %v4847_v61 }
 0x31f   :  { %4850 = vmatprep.subr.bf16.mxu1 %v4849_v9 }
 0x322   :  { %4852 = vmatpush1.bf16.msra.mxu1 %v4851_v39 }
 0x323   :  { %4854 = vmatprep.subr.bf16.mxu1 %v4853_v36 }
 0x326   :  { %4856 = vmatpush1.bf16.msra.mxu1 %v4855_v50 }
 0x327   :  { %4858 = vmatprep.subr.bf16.mxu1 %v4857_v27 }
 0x3c5   :  { %v1663_v2 = vpop.f32.mrb[0].mxu0 }
 0x3c6   :  { %v5353_v54 = vadd.f32 %v1663_v2, %v1391_v52  ;;  %v1665_v19 = vpop.f32.mrb[1].mxu0 }
 0x3c7   :  { %v5354_v28 = vadd.f32 %v1665_v19, %v1395_v18 }
 0x3c8   :  { %v1680_v22 = vmax.f32 %v5353_v54, 0.0 }
 0x3c9   :  { %v1669_v24 = vpop.f32.mrb[2].mxu0  ;;  %v1681_v25 = vmax.f32 %v5354_v28, 0.0 }
 0x3ca   :  { %v5355_v40 = vadd.f32 %v1669_v24, %v1391_v52  ;;  %v1671_v17 = vpop.f32.mrb[3].mxu0  ;;  %1732 = vrot.lane.b32.xlu1 %v1680_v22, %s5518_s1  ;;  %v7230_v33 = vrot.slane %v1680_v22, 7 }
 0x3cb   :  { %v5356_v31 = vadd.f32 %v1671_v17, %v1395_v18  ;;  %v1705_v44 = vrot.slane %v1681_v25, 7 }
 0x3cc   :  { %v1682_v6 = vmax.f32 %v5355_v40, 0.0  ;;  %v1724_v53 = vsel %vm1127_vm5, 0.0, %v7230_v33 }
 0x3cd   :  { %v1683_v47 = vmax.f32 %v5356_v31, 0.0  ;;  %v1675_v59 = vpop.f32.mrb[4].mxu0  ;;  %v1725_v56 = vsel %vm1127_vm5, 0.0, %v1705_v44  ;;  %v1764_v34 = vrot.slane %v1724_v53, 2  ;;  %v1875_v53 = vld [vmem:[%s9284_s5 + $0x268] sm:$0xff] }
 0x3ce   :  { %v5357_v3 = vadd.f32 %v1675_v59, %v1391_v52  ;;  %v1677_v26 = vpop.f32.mrb[5].mxu0  ;;  %v1767_v32 = vrot.slane %v1725_v56, 2  ;;  %v1867_v59 = vld [vmem:[%s9284_s5 + $0x228] sm:$0xff] }
 0x3cf   :  { %v5358_v4 = vadd.f32 %v1677_v26, %v1395_v18  ;;  %v1694_v7 = vcombine.low %v1682_v6, %v1683_v47  ;;  %v1695_v58 = vcombine.high %v1682_v6, %v1683_v47  ;;  %v4304_v37 = vcombine.low %v1683_v47, %v1683_v47  ;;  %v1862_v6 = vld [vmem:[%s9284_s5 + $0x200] sm:$0xff] }
 0x3d0   :  { %v1684_v30 = vmax.f32 %v5357_v3, 0.0 }
 0x3d1   :  { %v1685_v13 = vmax.f32 %v5358_v4, 0.0  ;;  %1736 = vrot.lane.b32.xlu0 %v1694_v7, %s5518_s1  ;;  %v1706_v5 = vrot.slane %v1694_v7, 7  ;;  %v1708_v15 = vrot.slane %v4304_v37, 7 }
 0x3d2   :  { %v4305_v38 = vcombine.low %v1695_v58, %v1684_v30  ;;  %v1866_v58 = vld [vmem:[%s9284_s5 + $0x220] sm:$0xff] }
 0x3d3   :  { %v1696_v49 = vcombine.low %v1684_v30, %v1685_v13  ;;  %v1697_v51 = vcombine.high %v1684_v30, %v1685_v13  ;;  %v1709_v14 = vsel %vm1127_vm5, %v1705_v44, %v1708_v15  ;;  %v4307_v12 = vcombine.high %v1685_v13, %v1685_v13  ;;  %v1869_v44 = vld [vmem:[%s9284_s5 + $0x238] sm:$0xff]  ;;  %v1871_v30 = vld [vmem:[%s9284_s5 + $0x248] sm:$0xff] }
 0x3d4   :  { %v1710_v55 = vrot.slane %v4305_v38, 7  ;;  %1740 = vrot.lane.b32.xlu1 %v4305_v38, %s5518_s1  ;;  %v7239_v23 = vsel %vm147_vm1, %v1709_v14, 0.0  ;;  %v1707_v45 = vsel %vm1127_vm5, %v7230_v33, %v1706_v5  ;;  %v4861_v7 = vpack.c.bf16 %v1869_v44, %v1867_v59  ;;  %v1873_v13 = vld [vmem:[%s9284_s5 + $0x258] sm:$0xff]  ;;  %v1872_v38 = vld [vmem:[%s9284_s5 + $0x250] sm:$0xff]  ;;  %v1874_v14 = vld [vmem:[%s9284_s5 + $0x260] sm:$0xff] }
 0x3d5   :  { %v1712_v41 = vrot.slane %v1697_v51, 7  ;;  %1744 = vrot.lane.b32.xlu0 %v1697_v51, %s5518_s1  ;;  %v1768_v63 = vrot.slane %v7239_v23, 2  ;;  %v4306_v61 = vcombine.high %v1683_v47, %v1696_v49  ;;  %v7249_v0 = vsel %vm147_vm1, %v1707_v45, 0.0  ;;  %v1864_v47 = vld [vmem:[%s9284_s5 + $0x210] sm:$0xff]  ;;  %v1879_v45 = vld [vmem:[%s9284_s5 + $0x288] sm:$0xff]  ;;  %v1886_v59 = vld [vmem:[%s9284_s5 + $0x2c0] sm:$0xff] }
 0x3d6   :  { %v7246_v9 = vsel %vm1127_vm5, 0.0, %v1710_v55  ;;  %v1714_v39 = vrot.slane %v4307_v12, 7  ;;  %v1765_v50 = vrot.slane %v7249_v0, 2  ;;  %v4859_v26 = vpack.c.bf16 %v1864_v47, %v1862_v6  ;;  %v1888_v44 = vld [vmem:[%s9284_s5 + $0x2d0] sm:$0xff] }
 0x3d7   :  { %v1769_v10 = vsel %vm114_vm2, %v1767_v32, %v1768_v63  ;;  %v1711_v48 = vrot.slane %v4306_v61, 7  ;;  %v1713_v36 = vsel %vm1127_vm5, %v1710_v55, %v1712_v41  ;;  %v4308_v60 = vcombine.low %v7249_v0, %v7246_v9  ;;  %v1881_v32 = vld [vmem:[%s9284_s5 + $0x298] sm:$0xff] }
 0x3d8   :  { %1734 = vrot.lane.b32.xlu1 %v1681_v25, %s5518_s1  ;;  %v1788_v57 = vcombine.high %v1769_v10, %v1769_v10  ;;  %v7255_v35 = vsel %vm147_vm1, %v1713_v36, 0.0  ;;  %v1770_v27 = vrot.slane %v7246_v9, 2  ;;  %v7267_v19 = vsel %vm114_vm2, %v1764_v34, %v1765_v50 }
 0x3d9   :  { %1738 = vrot.lane.b32.xlu0 %v4304_v37, %s5518_s1  ;;  %v1727_v62 = vsel %vm1127_vm5, 0.0, %v1711_v48  ;;  %v1715_v29 = vsel %vm1127_vm5, %v1711_v48, %v1714_v39  ;;  %v1771_v52 = vrot.slane %v7255_v35, 2  ;;  %v1868_v37 = vld [vmem:[%s9284_s5 + $0x230] sm:$0xff]  ;;  %v4865_v15 = vpack.c.bf16 %v1873_v13, %v1871_v30  ;;  %v1897_v30 = vld [vmem:[%s9284_s5 + $0x318] sm:$0xff] }
 0x3da   :  { %v1958_v18 = vcombine.low %v1769_v10, %v1788_v57  ;;  %v1773_v2 = vrot.slane %v1727_v62, 2  ;;  %v1731_v54 = vsel %vm147_vm1, %v1715_v29, 0.0  ;;  %v4863_v5 = vpack.c.bf16 %v1868_v37, %v1866_v58  ;;  %v1883_v29 = vld [vmem:[%s9284_s5 + $0x2a8] sm:$0xff]  ;;  %v1892_v58 = vld [vmem:[%s9284_s5 + $0x2f0] sm:$0xff] }
 0x3db   :  { %v1774_v28 = vrot.slane %v1731_v54, 2  ;;  %v7272_v22 = vsel %vm114_vm2, %v1770_v27, %v1771_v52  ;;  %v4869_v51 = vpack.c.bf16 %v1877_v1, %v1875_v53  ;;  %v4873_v57 = vpack.c.bf16 %v1881_v32, %v1879_v45  ;;  %v1885_v27 = vld [vmem:[%s9284_s5 + $0x2b8] sm:$0xff]  ;;  %v1895_v37 = vld [vmem:[%s9284_s5 + $0x308] sm:$0xff] }
 0x3dc   :  { %4318 = vmatmul.mubr.msk.f32.vlgmr.msra.gmra.mrb[6].mxu0 %vm549_vm11, %v1958_v18  ;;  %1742 = vrot.lane.b32.xlu1 %v4306_v61, %s5518_s1  ;;  %v7277_v24 = vcombine.low %v1765_v50, %v7272_v22  ;;  %v1878_v50 = vld [vmem:[%s9284_s5 + $0x280] sm:$0xff]  ;;  %v1901_v53 = vld [vmem:[%s9284_s5 + $0x338] sm:$0xff] }
 0x3dd   :  { %1746 = vrot.lane.b32.xlu0 %v4307_v12, %s5518_s1  ;;  %2223 = vmatprep.mubr.f32.mxu0 %v9319_v11  ;;  %v1775_v25 = vsel %vm114_vm2, %v1773_v2, %v1774_v28  ;;  %v1876_v12 = vld [vmem:[%s9284_s5 + $0x270] sm:$0xff]  ;;  %v1905_v45 = vld [vmem:[%s9284_s5 + $0x358] sm:$0xff]  ;;  %vm5521_vm2 = vmmov 0  }
 0x3de   :  { %v1963_v40 = vcombine.low %v1768_v63, %v1775_v25  ;;  %v1795_v17 = vcombine.high %v1775_v25, %v1775_v25  ;;  %v4871_v39 = vpack.c.bf16 %v1876_v12, %v1874_v14  ;;  %v1882_v25 = vld [vmem:[%s9284_s5 + $0x2a0] sm:$0xff]  ;;  %v1900_v14 = vld [vmem:[%s9284_s5 + $0x330] sm:$0xff]  ;;  %v1903_v12 = vld [vmem:[%s9284_s5 + $0x348] sm:$0xff] }
 0x3e0   :  { %4319 = vmatmul.mubr.msk.f32.gmra.mrb[8].mxu0 %vm549_vm11, %v1963_v40  ;;  %v1968_v31 = vcombine.low %v1795_v17, %v1774_v28  ;;  %v4877_v28 = vpack.c.bf16 %v1885_v27, %v1883_v29  ;;  %v1884_v40 = vld [vmem:[%s9284_s5 + $0x2b0] sm:$0xff]  ;;  %v1887_v17 = vld [vmem:[%s9284_s5 + $0x2c8] sm:$0xff]  ;;  %v1910_v27 = vld [vmem:[%s9284_s5 + $0x380] sm:$0xff] }
 0x3e1   :  { %2229 = vmatprep.mubr.f32.mxu0 %v9319_v11 }
 0x3e4   :  { %4320 = vmatmul.mubr.msk.f32.gmra.mrb[10].mxu0 %vm549_vm11, %v1968_v31  ;;  %v4879_v31 = vpack.c.bf16 %v1884_v40, %v1882_v25 }
 0x43c   :  { %v7297_v3 = vpop.permute.xlu1 %1732 }
 0x43d   :  { %v1776_v4 = vsel %vm549_vm11, %v1725_v56, %v7297_v3  ;;  %v1870_v56 = vld [vmem:[%s9284_s5 + $0x240] sm:$0xff] }
 0x43e   :  { %2051 = vmatprep.mubr.f32.mxu1 %v1776_v4  ;;  %v4867_v49 = vpack.c.bf16 %v1872_v38, %v1870_v56  ;;  %v1896_v56 = vld [vmem:[%s9284_s5 + $0x310] sm:$0xff]  ;;  %v1899_v38 = vld [vmem:[%s9284_s5 + $0x328] sm:$0xff] }
 0x43f   :  { %4317 = vmatmul.mubr.msk.f32.vlgmr.msra.gmra.mrb[24].mxu1 %vm6683_vm6, %v7230_v33 }
 0x440   :  { %4860 = vmatpush1.bf16.msra.mxu1 %v4859_v26  ;;  %v4883_v26 = vpack.c.bf16 %v1888_v44, %v1886_v59  ;;  %v1918_v44 = vld [vmem:[%s9284_s5 + $0x3c0] sm:$0xff] }
 0x441   :  { %4862 = vmatprep.subr.bf16.mxu1 %v4861_v7  ;;  %v1890_v7 = vld [vmem:[%s9284_s5 + $0x2e0] sm:$0xff] }
 0x442   :  { %v4887_v13 = vpack.c.bf16 %v1892_v58, %v1890_v7 }
 0x443   :  { %v7328_v33 = vpop.permute.xlu0 %1736 }
 0x444   :  { %4864 = vmatpush1.bf16.msra.mxu1 %v4863_v5  ;;  %v1777_v41 = vsel %vm549_vm11, %v7239_v23, %v7328_v33  ;;  %v1880_v23 = vld [vmem:[%s9284_s5 + $0x290] sm:$0xff]  ;;  %v4889_v5 = vpack.c.bf16 %v1897_v30, %v1895_v37  ;;  %v1922_v37 = vld [vmem:[%s9284_s5 + $0x3e0] sm:$0xff] }
 0x445   :  { %4866 = vmatprep.subr.bf16.mxu1 %v4865_v15  ;;  %v1894_v15 = vld [vmem:[%s9284_s5 + $0x300] sm:$0xff]  ;;  %v1924_v30 = vld [vmem:[%s9284_s5 + $0x3f0] sm:$0xff] }
 0x446   :  { %v7336_v55 = vpop.permute.xlu1 %1740  ;;  %v4891_v1 = vpack.c.bf16 %v1896_v56, %v1894_v15 }
 0x447   :  { %v1778_v63 = vsel %vm549_vm11, %v1727_v62, %v7336_v55  ;;  %v1745_v61 = vpop.permute.xlu0 %1744 }
 0x448   :  { %v1792_v34 = vcombine.high %v7246_v9, %v1778_v63  ;;  %v1779_v10 = vsel %vm549_vm11, %v1731_v54, %v1745_v61  ;;  %4868 = vmatpush1.bf16.msra.mxu1 %v4867_v49  ;;  %v4309_v48 = vcombine.low %v1777_v41, %v1778_v63  ;;  %v4875_v54 = vpack.c.bf16 %v1880_v23, %v1878_v50  ;;  %v1889_v9 = vld [vmem:[%s9284_s5 + $0x2d8] sm:$0xff]  ;;  %v1911_v50 = vld [vmem:[%s9284_s5 + $0x388] sm:$0xff] }
 0x449   :  { %v1796_v36 = vcombine.low %v7255_v35, %v1779_v10  ;;  %4870 = vmatprep.subr.bf16.mxu1 %v4869_v51  ;;  %v4881_v47 = vpack.c.bf16 %v1889_v9, %v1887_v17  ;;  %v4893_v49 = vpack.c.bf16 %v1901_v53, %v1899_v38  ;;  %v1898_v51 = vld [vmem:[%s9284_s5 + $0x320] sm:$0xff]  ;;  %v4897_v41 = vpack.c.bf16 %v1905_v45, %v1903_v12  ;;  %v1909_v10 = vld [vmem:[%s9284_s5 + $0x378] sm:$0xff]  ;;  %v1916_v9 = vld [vmem:[%s9284_s5 + $0x3b0] sm:$0xff] }
 0x44a   :  { %2057 = vmatprep.mubr.f32.mxu1 %v4309_v48  ;;  %v4312_v62 = vcombine.low %v1792_v34, %v7255_v35  ;;  %v1893_v35 = vld [vmem:[%s9284_s5 + $0x2f8] sm:$0xff]  ;;  %v4895_v32 = vpack.c.bf16 %v1900_v14, %v1898_v51  ;;  %v1907_v34 = vld [vmem:[%s9284_s5 + $0x368] sm:$0xff]  ;;  %v1914_v17 = vld [vmem:[%s9284_s5 + $0x3a0] sm:$0xff]  ;;  %v1735_v7 = vpop.permute.xlu1 %1734 }
 0x44b   :  { %v7365_v18 = vpop.permute.xlu0 %1738  ;;  %2058 = vmatmul.mubr.f32.gmra.mrb[26].mxu1 %v4308_v60  ;;  %v4313_v2 = vcombine.high %v1778_v63, %v1796_v36  ;;  %v1902_v63 = vld [vmem:[%s9284_s5 + $0x340] sm:$0xff]  ;;  %v1913_v23 = vld [vmem:[%s9284_s5 + $0x398] sm:$0xff]  ;;  %v1748_v15 = vsel %vm549_vm11, %v7297_v3, %v1735_v7  ;;  %v2780_v14 = vld [vmem:[%s9286_s7 + $0x10] sm:$0xff] }
 0x44c   :  { %4872 = vmatpush1.bf16.msra.mxu1 %v4871_v39  ;;  %v4901_v39 = vpack.c.bf16 %v1909_v10, %v1907_v34  ;;  %v1906_v36 = vld [vmem:[%s9284_s5 + $0x360] sm:$0xff]  ;;  %v4905_v29 = vpack.c.bf16 %v1913_v23, %v1911_v50  ;;  %v1749_v38 = vsel %vm549_vm11, %v7328_v33, %v7365_v18  ;;  %v2783_v12 = vld [vmem:[%s9286_s7 + $0x28] sm:$0xff]  ;;  %v2785_v45 = vld [vmem:[%s9286_s7 + $0x38] sm:$0xff] }
 0x44d   :  { %2063 = vmatprep.mubr.f32.mxu1 %v4313_v2  ;;  %4874 = vmatprep.subr.bf16.mxu1 %v4873_v57  ;;  %v1908_v57 = vld [vmem:[%s9284_s5 + $0x370] sm:$0xff]  ;;  %v2787_v34 = vld [vmem:[%s9286_s7 + $0x48] sm:$0xff]  ;;  %v2789_v10 = vld [vmem:[%s9286_s7 + $0x58] sm:$0xff] }
 0x44e   :  { %v1912_v2 = vld [vmem:[%s9284_s5 + $0x390] sm:$0xff]  ;;  %v2791_v50 = vld [vmem:[%s9286_s7 + $0x68] sm:$0xff]  ;;  %v2793_v23 = vld [vmem:[%s9286_s7 + $0x78] sm:$0xff] }
 0x44f   :  { %v1747_v0 = vpop.permute.xlu0 %1746  ;;  %2064 = vmatmul.mubr.f32.gmra.mrb[28].mxu1 %v4312_v62  ;;  %v4903_v62 = vpack.c.bf16 %v1908_v57, %v1906_v36  ;;  %v4907_v25 = vpack.c.bf16 %v1912_v2, %v1910_v27  ;;  %v2786_v36 = vld [vmem:[%s9286_s7 + $0x40] sm:$0xff]  ;;  %v2788_v57 = vld [vmem:[%s9286_s7 + $0x50] sm:$0xff] }
 0x450   :  { %v7383_v60 = vsel %vm549_vm11, %v1745_v61, %v1747_v0  ;;  %4876 = vmatpush1.bf16.msra.mxu1 %v4875_v54  ;;  %2134 = vmatprep.mubr.f32.mxu1 %v7267_v19  ;;  %v1891_v19 = vld [vmem:[%s9284_s5 + $0x2e8] sm:$0xff]  ;;  %v1904_v61 = vld [vmem:[%s9284_s5 + $0x350] sm:$0xff]  ;;  %v2790_v27 = vld [vmem:[%s9286_s7 + $0x60] sm:$0xff] }
 0x451   :  { %v7389_v6 = vcombine.low %v7383_v60, %v1771_v52  ;;  %4878 = vmatprep.subr.bf16.mxu1 %v4877_v28  ;;  %v4885_v4 = vpack.c.bf16 %v1893_v35, %v1891_v19  ;;  %v4899_v48 = vpack.c.bf16 %v1904_v61, %v1902_v63  ;;  %v1915_v54 = vld [vmem:[%s9284_s5 + $0x3a8] sm:$0xff]  ;;  %v1917_v28 = vld [vmem:[%s9284_s5 + $0x3b8] sm:$0xff]  ;;  %v1920_v19 = vld [vmem:[%s9284_s5 + $0x3d0] sm:$0xff] }
 0x452   :  { %v4909_v40 = vpack.c.bf16 %v1917_v28, %v1915_v54  ;;  %v1919_v0 = vld [vmem:[%s9284_s5 + $0x3c8] sm:$0xff]  ;;  %v2782_v63 = vld [vmem:[%s9286_s7 + $0x20] sm:$0xff]  ;;  %v2784_v61 = vld [vmem:[%s9286_s7 + $0x30] sm:$0xff] }
 0x453   :  { %v4315_v52 = vcombine.high %v7272_v22, %v7389_v6  ;;  %v1923_v35 = vld [vmem:[%s9284_s5 + $0x3e8] sm:$0xff]  ;;  %v2778_v6 = vld [vmem:[%s9286_s7] sm:$0xff]  ;;  %v2792_v2 = vld [vmem:[%s9286_s7 + $0x70] sm:$0xff] }
 0x454   :  { %4880 = vmatpush1.bf16.msra.mxu1 %v4879_v31  ;;  %v1921_v31 = vld [vmem:[%s9284_s5 + $0x3d8] sm:$0xff]  ;;  %v2795_v54 = vld [vmem:[%s9286_s7 + $0x88] sm:$0xff] }
 0x455   :  { %4882 = vmatprep.subr.bf16.mxu1 %v4881_v47  ;;  %v4911_v47 = vpack.c.bf16 %v1916_v9, %v1914_v17  ;;  %v4913_v59 = vpack.c.bf16 %v1921_v31, %v1919_v0  ;;  %v2797_v28 = vld [vmem:[%s9286_s7 + $0x98] sm:$0xff]  ;;  %v2794_v17 = vld [vmem:[%s9286_s7 + $0x80] sm:$0xff]  ;;  %v2796_v9 = vld [vmem:[%s9286_s7 + $0x90] sm:$0xff] }
 0x456   :  { %v2799_v0 = vld [vmem:[%s9286_s7 + $0xa8] sm:$0xff]  ;;  %v2801_v31 = vld [vmem:[%s9286_s7 + $0xb8] sm:$0xff] }
 0x458   :  { %4884 = vmatpush1.bf16.msra.mxu1 %v4883_v26  ;;  %v1925_v26 = vld [vmem:[%s9284_s5 + $0x3f8] sm:$0xff] }
 0x459   :  { %4886 = vmatprep.subr.bf16.mxu1 %v4885_v4  ;;  %v4915_v4 = vpack.c.bf16 %v1920_v19, %v1918_v44  ;;  %v4917_v58 = vpack.c.bf16 %v1925_v26, %v1923_v35  ;;  %v2798_v44 = vld [vmem:[%s9286_s7 + $0xa0] sm:$0xff]  ;;  %v2800_v19 = vld [vmem:[%s9286_s7 + $0xb0] sm:$0xff]  ;;  %v2803_v35 = vld [vmem:[%s9286_s7 + $0xc8] sm:$0xff] }
 0x45a   :  { %v2805_v26 = vld [vmem:[%s9286_s7 + $0xd8] sm:$0xff] }
 0x45b   :  { %v4961_v7 = vpack.c.bf16 %v2805_v26, %v2803_v35 }
 0x45c   :  { %4888 = vmatpush1.bf16.msra.mxu1 %v4887_v13  ;;  %v4919_v13 = vpack.c.bf16 %v1924_v30, %v1922_v37  ;;  %v2804_v37 = vld [vmem:[%s9286_s7 + $0xd0] sm:$0xff]  ;;  %v2807_v30 = vld [vmem:[%s9286_s7 + $0xe8] sm:$0xff] }
 0x45d   :  { %4890 = vmatprep.subr.bf16.mxu1 %v4889_v5  ;;  %v1743_v5 = vpop.permute.xlu1 %1742 }
 0x45e   :  { %v1750_v56 = vsel %vm549_vm11, %v7336_v55, %v1743_v5 }
 0x45f   :  { %v1794_v53 = vcombine.high %v1750_v56, %v7272_v22  ;;  %v2779_v22 = vld [vmem:[%s9286_s7 + $0x8] sm:$0xff] }
 0x460   :  { %4892 = vmatpush1.bf16.msra.mxu1 %v4891_v1  ;;  %v4310_v1 = vcombine.low %v1749_v38, %v1750_v56  ;;  %v2806_v56 = vld [vmem:[%s9286_s7 + $0xe0] sm:$0xff]  ;;  %v2808_v38 = vld [vmem:[%s9286_s7 + $0xf0] sm:$0xff] }
 0x461   :  { %4894 = vmatprep.subr.bf16.mxu1 %v4893_v49  ;;  %v4314_v3 = vcombine.low %v1794_v53, %v7383_v60  ;;  %v2781_v60 = vld [vmem:[%s9286_s7 + $0x18] sm:$0xff]  ;;  %v2811_v53 = vld [vmem:[%s9286_s7 + $0x108] sm:$0xff] }
 0x464   :  { %4896 = vmatpush1.bf16.msra.mxu1 %v4895_v32  ;;  %v4939_v32 = vpack.c.bf16 %v2780_v14, %v2778_v6  ;;  %v2812_v6 = vld [vmem:[%s9286_s7 + $0x110] sm:$0xff]  ;;  %v2817_v14 = vld [vmem:[%s9286_s7 + $0x138] sm:$0xff] }
 0x465   :  { %4898 = vmatprep.subr.bf16.mxu1 %v4897_v41  ;;  %v4941_v41 = vpack.c.bf16 %v2785_v45, %v2783_v12 }
 0x468   :  { %4900 = vmatpush1.bf16.msra.mxu1 %v4899_v48  ;;  %v4943_v48 = vpack.c.bf16 %v2784_v61, %v2782_v63  ;;  %v2819_v63 = vld [vmem:[%s9286_s7 + $0x148] sm:$0xff]  ;;  %v2821_v61 = vld [vmem:[%s9286_s7 + $0x158] sm:$0xff] }
 0x469   :  { %4902 = vmatprep.subr.bf16.mxu1 %v4901_v39  ;;  %v4945_v39 = vpack.c.bf16 %v2789_v10, %v2787_v34  ;;  %v4977_v10 = vpack.c.bf16 %v2821_v61, %v2819_v63 }
 0x46c   :  { %4904 = vmatpush1.bf16.msra.mxu1 %v4903_v62  ;;  %v4947_v62 = vpack.c.bf16 %v2788_v57, %v2786_v36  ;;  %v2823_v36 = vld [vmem:[%s9286_s7 + $0x168] sm:$0xff]  ;;  %v2825_v57 = vld [vmem:[%s9286_s7 + $0x178] sm:$0xff] }
 0x46d   :  { %4906 = vmatprep.subr.bf16.mxu1 %v4905_v29  ;;  %v4949_v29 = vpack.c.bf16 %v2793_v23, %v2791_v50  ;;  %v4981_v23 = vpack.c.bf16 %v2825_v57, %v2823_v36 }
 0x470   :  { %4908 = vmatpush1.bf16.msra.mxu1 %v4907_v25  ;;  %v4951_v25 = vpack.c.bf16 %v2792_v2, %v2790_v27  ;;  %v2827_v27 = vld [vmem:[%s9286_s7 + $0x188] sm:$0xff]  ;;  %v2829_v2 = vld [vmem:[%s9286_s7 + $0x198] sm:$0xff] }
 0x471   :  { %4910 = vmatprep.subr.bf16.mxu1 %v4909_v40  ;;  %v4953_v40 = vpack.c.bf16 %v2797_v28, %v2795_v54  ;;  %v4985_v28 = vpack.c.bf16 %v2829_v2, %v2827_v27 }
 0x474   :  { %4912 = vmatpush1.bf16.msra.mxu1 %v4911_v47  ;;  %v4955_v47 = vpack.c.bf16 %v2796_v9, %v2794_v17  ;;  %v2831_v17 = vld [vmem:[%s9286_s7 + $0x1a8] sm:$0xff]  ;;  %v2833_v9 = vld [vmem:[%s9286_s7 + $0x1b8] sm:$0xff] }
 0x475   :  { %4914 = vmatprep.subr.bf16.mxu1 %v4913_v59  ;;  %v4957_v59 = vpack.c.bf16 %v2801_v31, %v2799_v0  ;;  %v4989_v31 = vpack.c.bf16 %v2833_v9, %v2831_v17  ;;  %v9350_v9 = vld [vmem:[#allocation14_spill] sm:$0xff] }
 0x478   :  { %4916 = vmatpush1.bf16.msra.mxu1 %v4915_v4  ;;  %v4959_v4 = vpack.c.bf16 %v2800_v19, %v2798_v44  ;;  %v2835_v44 = vld [vmem:[%s9286_s7 + $0x1c8] sm:$0xff]  ;;  %v2837_v19 = vld [vmem:[%s9286_s7 + $0x1d8] sm:$0xff] }
 0x479   :  { %4918 = vmatprep.subr.bf16.mxu1 %v4917_v58  ;;  %v2802_v58 = vld [vmem:[%s9286_s7 + $0xc0] sm:$0xff]  ;;  %v4993_v26 = vpack.c.bf16 %v2837_v19, %v2835_v44 }
 0x47a   :  { %v4963_v5 = vpack.c.bf16 %v2804_v37, %v2802_v58  ;;  %v2839_v58 = vld [vmem:[%s9286_s7 + $0x1e8] sm:$0xff]  ;;  %v2841_v37 = vld [vmem:[%s9286_s7 + $0x1f8] sm:$0xff] }
 0x47b   :  { %v9352_v44 = vld [vmem:[#allocation11_spill] sm:$0xff] }
 0x47c   :  { %4920 = vmatpush1.bf16.msra.mxu1 %v4919_v13  ;;  %v2809_v13 = vld [vmem:[%s9286_s7 + $0xf8] sm:$0xff] }
 0x47f   :  { %2135 = vmatmul.mubr.f32.vlgmr.msra.gmra.mrb[24].mxu1 %v1748_v15  ;;  %v4965_v15 = vpack.c.bf16 %v2809_v13, %v2807_v30  ;;  %v4997_v13 = vpack.c.bf16 %v2841_v37, %v2839_v58 }
 0x480   :  { %2140 = vmatprep.mubr.f32.mxu1 %v7277_v24 }
 0x483   :  { %2141 = vmatmul.mubr.f32.gmra.mrb[26].mxu1 %v4310_v1  ;;  %v2813_v1 = vld [vmem:[%s9286_s7 + $0x118] sm:$0xff] }
 0x484   :  { %2146 = vmatprep.mubr.f32.mxu1 %v4315_v52  ;;  %v4937_v52 = vpack.c.bf16 %v2781_v60, %v2779_v22  ;;  %v4969_v22 = vpack.c.bf16 %v2813_v1, %v2811_v53  ;;  %v2810_v60 = vld [vmem:[%s9286_s7 + $0x100] sm:$0xff] }
 0x485   :  { %v4971_v12 = vpack.c.bf16 %v2812_v6, %v2810_v60 }
 0x486   :  { %4938 = vmatprep.subr.bf16.mxu0 %v4937_v52  ;;  %v2815_v52 = vld [vmem:[%s9286_s7 + $0x128] sm:$0xff] }
 0x487   :  { %2147 = vmatmul.mubr.f32.gmra.mrb[28].mxu1 %v4314_v3  ;;  %4940 = vmatpush1.bf16.msra.mxu0 %v4939_v32  ;;  %v4967_v3 = vpack.c.bf16 %v2808_v38, %v2806_v56  ;;  %v4973_v45 = vpack.c.bf16 %v2817_v14, %v2815_v52  ;;  %v2814_v32 = vld [vmem:[%s9286_s7 + $0x120] sm:$0xff] }
 0x488   :  { %4942 = vmatprep.subr.bf16.mxu0 %v4941_v41  ;;  %v2816_v41 = vld [vmem:[%s9286_s7 + $0x130] sm:$0xff]  ;;  %v1942_v38 = vld [vmem:[%s9285_s6] sm:$0x3] }
 0x489   :  { %v4975_v34 = vpack.c.bf16 %v2816_v41, %v2814_v32  ;;  %v1947_v53 = vrot.slane %v1942_v38, %v6223_v46  ;;  %v1951_v1 = vrot.slane %v1942_v38, %v6211_v43 }
 0x48b   :  { %4944 = vmatpush1.bf16.msra.mxu0 %v4943_v48  ;;  %v2818_v48 = vld [vmem:[%s9286_s7 + $0x140] sm:$0xff] }
 0x48c   :  { %4946 = vmatprep.subr.bf16.mxu0 %v4945_v39  ;;  %v2820_v39 = vld [vmem:[%s9286_s7 + $0x150] sm:$0xff] }
 0x48d   :  { %v4979_v50 = vpack.c.bf16 %v2820_v39, %v2818_v48 }
 0x48f   :  { %4948 = vmatpush1.bf16.msra.mxu0 %v4947_v62  ;;  %v2822_v62 = vld [vmem:[%s9286_s7 + $0x160] sm:$0xff] }
 0x490   :  { %4950 = vmatprep.subr.bf16.mxu0 %v4949_v29  ;;  %v2824_v29 = vld [vmem:[%s9286_s7 + $0x170] sm:$0xff] }
 0x491   :  { %v4983_v54 = vpack.c.bf16 %v2824_v29, %v2822_v62  ;;  %v9347_v62 = vld [vmem:[#allocation12_spill] sm:$0xff] }
 0x493   :  { %4952 = vmatpush1.bf16.msra.mxu0 %v4951_v25  ;;  %v2826_v25 = vld [vmem:[%s9286_s7 + $0x180] sm:$0xff] }
 0x494   :  { %4954 = vmatprep.subr.bf16.mxu0 %v4953_v40  ;;  %v2828_v40 = vld [vmem:[%s9286_s7 + $0x190] sm:$0xff] }
 0x495   :  { %v4987_v0 = vpack.c.bf16 %v2828_v40, %v2826_v25  ;;  %v9349_v40 = vld [vmem:[#allocation9_spill] sm:$0xff] }
 0x497   :  { %4956 = vmatpush1.bf16.msra.mxu0 %v4955_v47  ;;  %v2830_v47 = vld [vmem:[%s9286_s7 + $0x1a0] sm:$0xff] }
 0x498   :  { %4958 = vmatprep.subr.bf16.mxu0 %v4957_v59  ;;  %v2832_v59 = vld [vmem:[%s9286_s7 + $0x1b0] sm:$0xff] }
 0x499   :  { %v4991_v35 = vpack.c.bf16 %v2832_v59, %v2830_v47 }
 0x49b   :  { %4960 = vmatpush1.bf16.msra.mxu0 %v4959_v4  ;;  %v2834_v4 = vld [vmem:[%s9286_s7 + $0x1c0] sm:$0xff] }
 0x49c   :  { %4962 = vmatprep.subr.bf16.mxu0 %v4961_v7  ;;  %v2836_v7 = vld [vmem:[%s9286_s7 + $0x1d0] sm:$0xff] }
 0x49d   :  { %v4995_v30 = vpack.c.bf16 %v2836_v7, %v2834_v4 }
 0x49f   :  { %4964 = vmatpush1.bf16.msra.mxu0 %v4963_v5  ;;  %v2838_v5 = vld [vmem:[%s9286_s7 + $0x1e0] sm:$0xff] }
 0x4a0   :  { %4966 = vmatprep.subr.bf16.mxu0 %v4965_v15  ;;  %v2840_v15 = vld [vmem:[%s9286_s7 + $0x1f0] sm:$0xff] }
 0x4a1   :  { %v4999_v56 = vpack.c.bf16 %v2840_v15, %v2838_v5 }
 0x4a3   :  { %4968 = vmatpush1.bf16.msra.mxu0 %v4967_v3 }
 0x4a4   :  { %4970 = vmatprep.subr.bf16.mxu0 %v4969_v22 }
 0x4a7   :  { %4972 = vmatpush1.bf16.msra.mxu0 %v4971_v12 }
 0x4a8   :  { %4974 = vmatprep.subr.bf16.mxu0 %v4973_v45 }
 0x4ab   :  { %4976 = vmatpush1.bf16.msra.mxu0 %v4975_v34 }
 0x4ac   :  { %4978 = vmatprep.subr.bf16.mxu0 %v4977_v10 }
 0x4af   :  { %v7520_v49 = vpop.f32.mrb[6].mxu0  ;;  %4980 = vmatpush1.bf16.msra.mxu0 %v4979_v50 }
 0x4b0   :  { %v7522_v55 = vpop.f32.mrb[7].mxu0  ;;  %4982 = vmatprep.subr.bf16.mxu0 %v4981_v23 }
 0x4b3   :  { %v7524_v51 = vpop.f32.mrb[8].mxu0  ;;  %4984 = vmatpush1.bf16.msra.mxu0 %v4983_v54 }
 0x4b4   :  { %v7526_v33 = vpop.f32.mrb[9].mxu0  ;;  %4986 = vmatprep.subr.bf16.mxu0 %v4985_v28  ;;  %v9348_v28 = vld [vmem:[#allocation10_spill] sm:$0xff] }
 0x4b7   :  { %v7528_v24 = vpop.f32.mrb[10].mxu0  ;;  %4988 = vmatpush1.bf16.msra.mxu0 %v4987_v0  ;;  %v9351_v0 = vld [vmem:[#allocation13_spill] sm:$0xff] }
 0x4b8   :  { %v7530_v18 = vpop.f32.mrb[11].mxu0  ;;  %4990 = vmatprep.subr.bf16.mxu0 %v4989_v31 }
 0x4bb   :  { %4992 = vmatpush1.bf16.msra.mxu0 %v4991_v35  ;;  %v9353_v35 = vld [vmem:[#allocation24_spill] sm:$0xff] }
 0x4bc   :  { %4994 = vmatprep.subr.bf16.mxu0 %v4993_v26 }
 0x4bf   :  { %4996 = vmatpush1.bf16.msra.mxu0 %v4995_v30 }
 0x4c0   :  { %4998 = vmatprep.subr.bf16.mxu0 %v4997_v13 }
 0x4c3   :  { %5000 = vmatpush1.bf16.msra.mxu0 %v4999_v56 }
 0x552   :  { %v2136_v3 = vpop.f32.mrb[24].mxu1 }
 0x553   :  { %v5359_v22 = vadd.f32 %v2136_v3, %v1947_v53  ;;  %v2138_v60 = vpop.f32.mrb[25].mxu1 }
 0x554   :  { %v5361_v6 = vadd.f32 %v2138_v60, %v1951_v1 }
 0x555   :  { %v5360_v52 = vadd.f32 %v5359_v22, %v7520_v49 }
 0x556   :  { %v5362_v14 = vadd.f32 %v5361_v6, %v7522_v55  ;;  %v2142_v12 = vpop.f32.mrb[26].mxu1 }
 0x557   :  { %v5363_v45 = vadd.f32 %v2142_v12, %v1947_v53  ;;  %v2144_v32 = vpop.f32.mrb[27].mxu1 }
 0x558   :  { %v2242_v41 = vcombine.low %v5360_v52, %v5362_v14  ;;  %v2243_v63 = vcombine.high %v5360_v52, %v5362_v14  ;;  %v5365_v61 = vadd.f32 %v2144_v32, %v1951_v1 }
 0x559   :  { %v5364_v34 = vadd.f32 %v5363_v45, %v7524_v51 }
 0x55a   :  { %v2250_v10 = vrot.slane %v2242_v41, %v6239_v8  ;;  %v2257_v43 = vrot.slane %v2243_v63, %v6239_v8  ;;  %v5366_v48 = vadd.f32 %v5365_v61, %v7526_v33  ;;  %v2148_v39 = vpop.f32.mrb[28].mxu1 }
 0x55b   :  { %v2150_v36 = vpop.f32.mrb[29].mxu1  ;;  %v5367_v30 = vadd.f32 %v2148_v39, %v1947_v53  ;;  %v9354_v39 = vld [vmem:[#allocation15_spill] sm:$0xff] }
 0x55c   :  { %v2258_v57 = vcombine.high %v2250_v10, %v2250_v10  ;;  %v2259_v49 = vcombine.high %v2257_v43, %v2257_v43  ;;  %v2296_v50 = vrot.slane %v2250_v10, 1  ;;  %v2298_v55 = vrot.slane %v2257_v43, 1 }
 0x55d   :  { %v2332_v23 = vadd.f32 %v2250_v10, %v6254_v42  ;;  %v2336_v29 = vadd.f32 %v2257_v43, %v9347_v62  ;;  %v2260_v27 = vcombine.low %v5364_v34, %v5366_v48  ;;  %v2261_v2 = vcombine.high %v5364_v34, %v5366_v48 }
 0x55e   :  { %v2297_v54 = vrot.slane %v2258_v57, 1  ;;  %v2299_v51 = vrot.slane %v2259_v49, 1  ;;  %v2333_v25 = vadd.f32 %v2296_v50, %v9348_v28  ;;  %v2334_v17 = vadd.f32 %v2258_v57, %v9349_v40  ;;  %v9357_v28 = vld [vmem:[#allocation19_spill] sm:$0xff] }
 0x55f   :  { %v2337_v33 = vadd.f32 %v2298_v55, %v9350_v9  ;;  %v2338_v31 = vadd.f32 %v2259_v49, %v9351_v0  ;;  %v2356_v47 = vmax.f32 %v2332_v23, 0.0  ;;  %v2360_v59 = vmax.f32 %v2336_v29, 0.0  ;;  %v9355_v23 = vld [vmem:[#allocation18_spill] sm:$0xff]  ;;  %v9358_v0 = vld [vmem:[#allocation21_spill] sm:$0xff] }
 0x560   :  { %v2335_v19 = vadd.f32 %v2297_v54, %v9352_v44  ;;  %v2339_v42 = vadd.f32 %v2299_v51, %v9353_v35  ;;  %v2357_v26 = vmax.f32 %v2333_v25, 0.0  ;;  %v2358_v4 = vmax.f32 %v2334_v17, 0.0  ;;  %v9356_v54 = vld [vmem:[#allocation20_spill] sm:$0xff] }
 0x561   :  { %v2361_v7 = vmax.f32 %v2337_v33, 0.0  ;;  %v2362_v58 = vmax.f32 %v2338_v31, 0.0  ;;  %v2399_v37 = vrot.slane %v2356_v47, %v6223_v46  ;;  %v7745_v15 = vrot.slane %v2356_v47, %v6250_v21 }
 0x562   :  { %v2359_v13 = vmax.f32 %v2335_v19, 0.0  ;;  %v2363_v5 = vmax.f32 %v2339_v42, 0.0  ;;  %v2407_v56 = vrot.slane %v2357_v26, %v6223_v46  ;;  %v7749_v38 = vrot.slane %v2357_v26, %v6250_v21 }
 0x563   :  { %v7752_v3 = vrot.slane %v2358_v4, %v6223_v46  ;;  %v7755_v22 = vrot.slane %v2358_v4, %v6250_v21  ;;  %v7758_v60 = vrot.slane %v2360_v59, %v6223_v46  ;;  %v7767_v52 = vrot.slane %v2360_v59, %v6250_v21 }
 0x564   :  { %v7761_v53 = vrot.slane %v2359_v13, %v6223_v46  ;;  %v7764_v6 = vrot.slane %v2359_v13, %v6250_v21  ;;  %v7770_v14 = vrot.slane %v2361_v7, %v6223_v46  ;;  %v7773_v12 = vrot.slane %v2361_v7, %v6250_v21 }
 0x565   :  { %v7776_v45 = vrot.slane %v2362_v58, %v6223_v46  ;;  %v7779_v32 = vsel %vm1090_vm12, %v2407_v56, %v2399_v37  ;;  %v7782_v41 = vrot.slane %v2260_v27, %v6239_v8  ;;  %v2275_v61 = vrot.slane %v2261_v2, %v6239_v8 }
 0x566   :  { %v7787_v63 = vsel %vm1090_vm12, %v7764_v6, %v7755_v22  ;;  %v5368_v34 = vadd.f32 %v5367_v30, %v7528_v24  ;;  %v5369_v10 = vadd.f32 %v2150_v36, %v1951_v1  ;;  %v7792_v43 = vrot.slane %v2362_v58, %v6250_v21 }
 0x567   :  { %v2300_v48 = vrot.slane %v7782_v41, 1  ;;  %v2340_v57 = vadd.f32 %v7782_v41, %v9354_v39  ;;  %v2574_v49 = vsel %vm1090_vm12, %v7752_v3, %v2407_v56  ;;  %v2277_v50 = vcombine.high %v2275_v61, %v2275_v61  ;;  %v9359_v39 = vld [vmem:[#allocation22_spill] sm:$0xff] }
 0x568   :  { %v2302_v55 = vrot.slane %v2275_v61, 1  ;;  %v7800_v62 = vadd.f32 %v2275_v61, %v9355_v23  ;;  %v5370_v29 = vadd.f32 %v5369_v10, %v7530_v18  ;;  %v7804_v1 = vrot.slane %v2363_v5, %v6223_v46  ;;  %v9361_v23 = vld [vmem:[#allocation23_spill] sm:$0xff] }
 0x569   :  { %v2364_v24 = vmax.f32 %v2340_v57, 0.0  ;;  %v2575_v36 = vsel %vm1072_vm13, %v7761_v53, %v2574_v49  ;;  %v7809_v27 = vrot.slane %v2363_v5, %v6250_v21  ;;  %v2303_v2 = vrot.slane %v2277_v50, 1 }
 0x56a   :  { %v2345_v51 = vadd.f32 %v2302_v55, %v9356_v54  ;;  %v2346_v25 = vadd.f32 %v2277_v50, %v9357_v28  ;;  %v2368_v40 = vmax.f32 %v7800_v62, 0.0  ;;  %v2278_v17 = vcombine.low %v5368_v34, %v5370_v29  ;;  %v9360_v50 = vld [vmem:[#allocation25_spill] sm:$0xff]  ;;  %v9363_v54 = vld [vmem:[#allocation27_spill] sm:$0xff] }
 0x56b   :  { %v2279_v9 = vcombine.high %v5368_v34, %v5370_v29  ;;  %v2576_v18 = vsel %vm1074_vm14, %v7758_v60, %v2575_v36  ;;  %v2581_v33 = vsel %vm1090_vm12, %v7755_v22, %v7749_v38  ;;  %v2347_v31 = vadd.f32 %v2303_v2, %v9358_v0  ;;  %v9362_v36 = vld [vmem:[#allocation26_spill] sm:$0xff] }
 0x56c   :  { %v2369_v47 = vmax.f32 %v2345_v51, 0.0  ;;  %v2370_v59 = vmax.f32 %v2346_v25, 0.0  ;;  %v7821_v44 = vrot.slane %v2364_v24, %v6223_v46  ;;  %v7826_v19 = vrot.slane %v2368_v40, %v6250_v21 }
 0x56d   :  { %v2286_v35 = vrot.slane %v2278_v17, %v6239_v8  ;;  %v2293_v42 = vrot.slane %v2279_v9, %v6239_v8  ;;  %v2577_v26 = vsel %vm1076_vm15, %v7770_v14, %v2576_v18  ;;  %v2371_v4 = vmax.f32 %v2347_v31, 0.0  ;;  %v9364_v9 = vld [vmem:[#allocation29_spill] sm:$0xff] }
 0x56e   :  { %v7833_v7 = vrot.slane %v2369_v47, %v6223_v46  ;;  %v7836_v58 = vrot.slane %v2369_v47, %v6250_v21  ;;  %v7839_v37 = vrot.slane %v2370_v59, %v6223_v46  ;;  %v7842_v30 = vrot.slane %v2370_v59, %v6250_v21 }
 0x56f   :  { %v2294_v13 = vcombine.high %v2286_v35, %v2286_v35  ;;  %v7844_v5 = vcombine.high %v2293_v42, %v2293_v42  ;;  %v2304_v56 = vrot.slane %v2286_v35, 1  ;;  %v7847_v61 = vrot.slane %v2371_v4, %v6223_v46 }
 0x570   :  { %v7850_v34 = vrot.slane %v2371_v4, %v6250_v21  ;;  %v2306_v10 = vrot.slane %v2293_v42, 1  ;;  %v2348_v57 = vadd.f32 %v2286_v35, %v9359_v39  ;;  %v2352_v2 = vadd.f32 %v2293_v42, %v9362_v36 }
 0x571   :  { %v2305_v49 = vrot.slane %v2294_v13, 1  ;;  %v2349_v55 = vadd.f32 %v2304_v56, %v9360_v50  ;;  %v2350_v29 = vadd.f32 %v2294_v13, %v9361_v23  ;;  %v2578_v25 = vsel %vm1078_vm0, %v7776_v45, %v2577_v26 }
 0x572   :  { %v7857_v51 = vadd.f32 %v2306_v10, %v9363_v54  ;;  %v2372_v28 = vmax.f32 %v2348_v57, 0.0  ;;  %v7862_v17 = vrot.slane %v2364_v24, %v6250_v21  ;;  %v2376_v47 = vmax.f32 %v2352_v2, 0.0  ;;  %v9365_v54 = vld [vmem:[#allocation17_spill] sm:$0xff] }
 0x573   :  { %v2351_v18 = vadd.f32 %v2305_v49, %v9364_v9  ;;  %v2373_v0 = vmax.f32 %v2349_v55, 0.0  ;;  %v2374_v31 = vmax.f32 %v2350_v29, 0.0  ;;  %v2579_v4 = vsel %vm1080_vm3, %v7804_v1, %v2578_v25 }
 0x574   :  { %v2377_v59 = vmax.f32 %v7857_v51, 0.0  ;;  %v7867_v35 = vrot.slane %v2372_v28, %v6223_v46  ;;  %v7870_v42 = vrot.slane %v2372_v28, %v6250_v21  ;;  %v2580_v39 = vsel %vm1082_vm4, %v7821_v44, %v2579_v4 }
 0x575   :  { %v2375_v26 = vmax.f32 %v2351_v18, 0.0  ;;  %v7875_v24 = vrot.slane %v2373_v0, %v6223_v46  ;;  %v7878_v13 = vrot.slane %v2373_v0, %v6250_v21  ;;  %v7881_v56 = vrot.slane %v2374_v31, %v6223_v46  ;;  %2602 = vrot.lane.b32.xlu1 %v2580_v39, %s5518_s1 }
 0x576   :  { %v7884_v10 = vrot.slane %v2374_v31, %v6250_v21  ;;  %v2582_v57 = vsel %vm1072_vm13, %v7764_v6, %v2581_v33  ;;  %v7891_v49 = vrot.slane %v2376_v47, %v6223_v46  ;;  %v2588_v29 = vsel %vm1090_vm12, %v7839_v37, %v7833_v7 }
 0x577   :  { %v7894_v50 = vrot.slane %v2375_v26, %v6250_v21  ;;  %v2583_v55 = vsel %vm1074_vm14, %v7767_v52, %v2582_v57  ;;  %v7900_v23 = vrot.slane %v2375_v26, %v6223_v46  ;;  %v2589_v36 = vsel %vm1072_vm13, %v7847_v61, %v2588_v29 }
 0x578   :  { %v2584_v33 = vsel %vm1076_vm15, %v7773_v12, %v2583_v55  ;;  %v7911_v2 = vcombine.high %v7782_v41, %v7782_v41  ;;  %v2341_v51 = vadd.f32 %v2300_v48, %v9365_v54  ;;  %v2590_v25 = vsel %vm1074_vm14, %v7867_v35, %v2589_v36  ;;  %v9366_v48 = vld [vmem:[#allocation16_spill] sm:$0xff] }
 0x579   :  { %v2585_v28 = vsel %vm1078_vm0, %v7792_v43, %v2584_v33  ;;  %v2691_v9 = vsel %vm1090_vm12, %v7767_v52, %v7764_v6  ;;  %v7924_v18 = vrot.slane %v2376_v47, %v6250_v21  ;;  %v2591_v41 = vsel %vm1076_vm15, %v7875_v24, %v2590_v25 }
 0x57a   :  { %v2586_v0 = vsel %vm1080_vm3, %v7809_v27, %v2585_v28  ;;  %v2342_v31 = vadd.f32 %v7911_v2, %v9366_v48  ;;  %v2365_v4 = vmax.f32 %v2341_v51, 0.0  ;;  %v2592_v39 = vsel %vm1078_vm0, %v7881_v56, %v2591_v41 }
 0x57b   :  { %v2587_v26 = vsel %vm1082_vm4, %v7862_v17, %v2586_v0  ;;  %v2692_v47 = vsel %vm1072_vm13, %v7773_v12, %v2691_v9  ;;  %v2595_v57 = vsel %vm1090_vm12, %v7842_v30, %v7836_v58  ;;  %v2593_v55 = vsel %vm1080_vm3, %v7900_v23, %v2592_v39 }
 0x57c   :  { %2604 = vrot.lane.b32.xlu1 %v2587_v26, %s5518_s1  ;;  %v2366_v29 = vmax.f32 %v2342_v31, 0.0  ;;  %v7945_v33 = vrot.slane %v2365_v4, %v6250_v21  ;;  %v2693_v36 = vsel %vm1074_vm14, %v7792_v43, %v2692_v47  ;;  %v2594_v54 = vsel %vm1082_vm4, %v7891_v49, %v2593_v55 }
 0x57d   :  { %v2694_v51 = vsel %vm1076_vm15, %v7809_v27, %v2693_v36  ;;  %v2596_v28 = vsel %vm1072_vm13, %v7850_v34, %v2595_v57  ;;  %v7956_v25 = vrot.slane %v2365_v4, %v6223_v46  ;;  %2606 = vrot.lane.b32.xlu0 %v2594_v54, %s5518_s1  ;;  %v2684_v26 = vsel %vm1090_vm12, %v7758_v60, %v7761_v53 }
 0x57e   :  { %v7960_v9 = vrot.slane %v2366_v29, %v6250_v21  ;;  %v2695_v0 = vsel %vm1078_vm0, %v7862_v17, %v2694_v51  ;;  %v2597_v41 = vsel %vm1074_vm14, %v7870_v42, %v2596_v28  ;;  %v7967_v48 = vrot.slane %v2366_v29, %v6223_v46 }
 0x57f   :  { %v2696_v31 = vsel %vm1080_vm3, %v7945_v33, %v2695_v0  ;;  %v2598_v4 = vsel %vm1076_vm15, %v7878_v13, %v2597_v41  ;;  %v2354_v39 = vadd.f32 %v7844_v5, %v6400_v20  ;;  %v2685_v55 = vsel %vm1072_vm13, %v7770_v14, %v2684_v26 }
 0x580   :  { %v2697_v47 = vsel %vm1082_vm4, %v7960_v9, %v2696_v31  ;;  %v2599_v57 = vsel %vm1078_vm0, %v7884_v10, %v2598_v4  ;;  %v7985_v29 = vrot.slane %v2377_v59, %v6223_v46  ;;  %v2686_v20 = vsel %vm1074_vm14, %v7776_v45, %v2685_v55 }
 0x581   :  { %2714 = vrot.lane.b32.xlu1 %v2697_v47, %s5518_s1  ;;  %v2600_v36 = vsel %vm1080_vm3, %v7894_v50, %v2599_v57  ;;  %v2378_v54 = vmax.f32 %v2354_v39, 0.0  ;;  %v7993_v51 = vrot.slane %v2377_v59, %v6250_v21  ;;  %v2687_v0 = vsel %vm1076_vm15, %v7804_v1, %v2686_v20  ;;  %v2843_v20 = vld [vmem:[%s9286_s7 + $0x208] sm:$0xff] }
 0x582   :  { %v2601_v28 = vsel %vm1082_vm4, %v7924_v18, %v2600_v36  ;;  %v2698_v41 = vsel %vm1090_vm12, %v7867_v35, %v7847_v61  ;;  %v2705_v31 = vsel %vm1090_vm12, %v7870_v42, %v7850_v34  ;;  %v2688_v4 = vsel %vm1078_vm0, %v7821_v44, %v2687_v0 }
 0x583   :  { %v8008_v59 = vrot.slane %v2378_v54, %v6223_v46  ;;  %v8011_v26 = vrot.slane %v2378_v54, %v6250_v21  ;;  %v2699_v39 = vsel %vm1072_vm13, %v7875_v24, %v2698_v41  ;;  %v2689_v47 = vsel %vm1080_vm3, %v7956_v25, %v2688_v4  ;;  %v2845_v54 = vld [vmem:[%s9286_s7 + $0x218] sm:$0xff] }
 0x584   :  { %v2700_v57 = vsel %vm1074_vm14, %v7881_v56, %v2699_v39  ;;  %v2706_v55 = vsel %vm1072_vm13, %v7878_v13, %v2705_v31  ;;  %v2531_v36 = vsel %vm1090_vm12, %v7749_v38, %v7745_v15  ;;  %v2690_v0 = vsel %vm1082_vm4, %v7967_v48, %v2689_v47 }
 0x585   :  { %v2701_v41 = vsel %vm1076_vm15, %v7900_v23, %v2700_v57  ;;  %v2707_v31 = vsel %vm1074_vm14, %v7884_v10, %v2706_v55  ;;  %v2532_v15 = vsel %vm1072_vm13, %v7755_v22, %v2531_v36  ;;  %v5451_v38 = vpack.i.bf16 %v2690_v0, %v2601_v28 }
 0x586   :  { %v2702_v4 = vsel %vm1078_vm0, %v7891_v49, %v2701_v41  ;;  %v2708_v39 = vsel %vm1076_vm15, %v7894_v50, %v2707_v31  ;;  %v2533_v11 = vsel %vm1074_vm14, %v7764_v6, %v2532_v15  ;;  %v5001_v22 = vpack.c.bf16 %v2845_v54, %v2843_v20 }
 0x587   :  { %v2703_v47 = vsel %vm1080_vm3, %v7985_v29, %v2702_v4  ;;  %v2709_v57 = vsel %vm1078_vm0, %v7924_v18, %v2708_v39  ;;  %v2534_v55 = vsel %vm1076_vm15, %v7767_v52, %v2533_v11  ;;  %5452 = vrot.lane.b32.xlu0 %v5451_v38, %s5518_s1  ;;  %v2525_v0 = vsel %vm1072_vm13, %v7752_v3, %v7779_v32 }
 0x588   :  { %v2704_v28 = vsel %vm1082_vm4, %v8008_v59, %v2703_v47  ;;  %v2710_v36 = vsel %vm1080_vm3, %v7993_v51, %v2709_v57  ;;  %v2535_v6 = vsel %vm1078_vm0, %v7773_v12, %v2534_v55  ;;  %v2463_v11 = vrot.slane %v2368_v40, %v6223_v46  ;;  %5002 = vmatprep.subr.bf16.mxu0 %v5001_v22 }
 0x589   :  { %v2711_v20 = vsel %vm1082_vm4, %v8011_v26, %v2710_v36  ;;  %v2536_v54 = vsel %vm1080_vm3, %v7792_v43, %v2535_v6  ;;  %v2526_v41 = vsel %vm1074_vm14, %v7761_v53, %v2525_v0  ;;  %v2545_v62 = vsel %vm1090_vm12, %v7836_v58, %v7826_v19 }
 0x58a   :  { %v5456_v31 = vpack.i.bf16 %v2711_v20, %v2704_v28  ;;  %v8071_v15 = vsel %vm1082_vm4, %v7809_v27, %v2536_v54  ;;  %v2527_v32 = vsel %vm1076_vm15, %v7758_v60, %v2526_v41  ;;  %v2546_v38 = vsel %vm1072_vm13, %v7842_v30, %v2545_v62 }
 0x58b   :  { %v2528_v40 = vsel %vm1078_vm0, %v7770_v14, %v2527_v32  ;;  %v2538_v4 = vsel %vm1090_vm12, %v7833_v7, %v2463_v11  ;;  %v2547_v47 = vsel %vm1074_vm14, %v7850_v34, %v2546_v38  ;;  %v2634_v55 = vsel %vm1090_vm12, %v7761_v53, %v7752_v3 }
 0x58c   :  { %5457 = vrot.lane.b32.xlu0 %v5456_v31, %s5518_s1  ;;  %v2529_v39 = vsel %vm1080_vm3, %v7776_v45, %v2528_v40  ;;  %v2539_v19 = vsel %vm1072_vm13, %v7839_v37, %v2538_v4  ;;  %v2548_v57 = vsel %vm1076_vm15, %v7870_v42, %v2547_v47  ;;  %v2635_v36 = vsel %vm1072_vm13, %v7758_v60, %v2634_v55  ;;  %s4243_s1 = sshll.u32 %s5523_s2, 4  ;;  %s4244_s1 = int_to_ptr.vmem [resolvable:$true] %s4243_s1 }
 0x58d   :  { %v8093_v58 = vsel %vm1082_vm4, %v7804_v1, %v2529_v39  ;;  %v2540_v7 = vsel %vm1074_vm14, %v7847_v61, %v2539_v19  ;;  %v2549_v22 = vsel %vm1078_vm0, %v7878_v13, %v2548_v57  ;;  %v2636_v11 = vsel %vm1074_vm14, %v7770_v14, %v2635_v36  ;;  %p5488_p9 = scmp.lt.s32.totalorder %s4244_s1, %s4244_s1 }
 0x58e   :  { %v2541_v28 = vsel %vm1076_vm15, %v7867_v35, %v2540_v7  ;;  %v2550_v6 = vsel %vm1080_vm3, %v7884_v10, %v2549_v22  ;;  %v2637_v20 = vsel %vm1076_vm15, %v7776_v45, %v2636_v11  ;;  %v2648_v62 = vsel %vm1090_vm12, %v7847_v61, %v7839_v37 }
 0x58f   :  { %v2542_v0 = vsel %vm1078_vm0, %v7875_v24, %v2541_v28  ;;  %v8116_v3 = vsel %vm1082_vm4, %v7894_v50, %v2550_v6  ;;  %v2638_v41 = vsel %vm1078_vm0, %v7804_v1, %v2637_v20  ;;  %v2649_v40 = vsel %vm1072_vm13, %v7867_v35, %v2648_v62 }
 0x590   :  { %v2543_v53 = vsel %vm1080_vm3, %v7881_v56, %v2542_v0  ;;  %v2639_v31 = vsel %vm1080_vm3, %v7821_v44, %v2638_v41  ;;  %v2642_v38 = vsel %vm1072_vm13, %v7767_v52, %v7787_v63  ;;  %v2655_v4 = vsel %vm1090_vm12, %v7850_v34, %v7842_v30  ;;  %v9367_v0 = vld [vmem:[#allocation28_spill] sm:$0xff] }
 0x591   :  { %v8124_v54 = vsel %vm1082_vm4, %v7900_v23, %v2543_v53  ;;  %v8132_v32 = vsel %vm1082_vm4, %v7956_v25, %v2639_v31  ;;  %v2650_v39 = vsel %vm1074_vm14, %v7875_v24, %v2649_v40  ;;  %v2643_v47 = vsel %vm1074_vm14, %v7773_v12, %v2642_v38 }
 0x592   :  { %v2656_v37 = vsel %vm1072_vm13, %v7870_v42, %v2655_v4  ;;  %v2651_v61 = vsel %vm1076_vm15, %v7881_v56, %v2650_v39  ;;  %v2644_v19 = vsel %vm1076_vm15, %v7792_v43, %v2643_v47  ;;  %v2301_v30 = vrot.slane %v7911_v2, 1 }
 0x593   :  { %v2657_v63 = vsel %vm1074_vm14, %v7878_v13, %v2656_v37  ;;  %v2652_v34 = vsel %vm1078_vm0, %v7900_v23, %v2651_v61  ;;  %v2645_v57 = vsel %vm1078_vm0, %v7809_v27, %v2644_v19  ;;  %v2751_v55 = vsel %vm1090_vm12, %v7773_v12, %v7767_v52 }
 0x594   :  { %v2658_v7 = vsel %vm1076_vm15, %v7884_v10, %v2657_v63  ;;  %v2653_v22 = vsel %vm1080_vm3, %v7891_v49, %v2652_v34  ;;  %v2646_v28 = vsel %vm1080_vm3, %v7862_v17, %v2645_v57  ;;  %v2343_v11 = vadd.f32 %v2301_v30, %v9367_v0  ;;  %v2846_v30 = vld [vmem:[%s9286_s7 + $0x220] sm:$0xff]  ;;  %v2848_v34 = vld [vmem:[%s9286_s7 + $0x230] sm:$0xff]  ;;  %v2851_v57 = vld [vmem:[%s9286_s7 + $0x248] sm:$0xff] }
 0x595   :  { %v2659_v2 = vsel %vm1078_vm0, %v7894_v50, %v2658_v7  ;;  %v8175_v36 = vsel %vm1082_vm4, %v7985_v29, %v2653_v22  ;;  %v8179_v6 = vsel %vm1082_vm4, %v7945_v33, %v2646_v28  ;;  %v2752_v53 = vsel %vm1072_vm13, %v7792_v43, %v2751_v55  ;;  %v2853_v7 = vld [vmem:[%s9286_s7 + $0x258] sm:$0xff]  ;;  %v2850_v22 = vld [vmem:[%s9286_s7 + $0x240] sm:$0xff]  ;;  %v2852_v28 = vld [vmem:[%s9286_s7 + $0x250] sm:$0xff] }
 0x596   :  { %v2660_v52 = vsel %vm1080_vm3, %v7924_v18, %v2659_v2  ;;  %v2744_v20 = vsel %vm1090_vm12, %v7770_v14, %v7758_v60  ;;  %v2753_v41 = vsel %vm1074_vm14, %v7809_v27, %v2752_v53  ;;  %v2307_v62 = vrot.slane %v7844_v5, 1  ;;  %v2855_v2 = vld [vmem:[%s9286_s7 + $0x268] sm:$0xff] }
 0x597   :  { %v8185_v12 = vsel %vm1082_vm4, %v7993_v51, %v2660_v52  ;;  %v2745_v31 = vsel %vm1072_vm13, %v7776_v45, %v2744_v20  ;;  %v2765_v40 = vsel %vm1090_vm12, %v7878_v13, %v7870_v42  ;;  %v2367_v38 = vmax.f32 %v2343_v11, 0.0  ;;  %v2854_v20 = vld [vmem:[%s9286_s7 + $0x260] sm:$0xff] }
 0x598   :  { %v2754_v43 = vsel %vm1076_vm15, %v7862_v17, %v2753_v41  ;;  %v2746_v4 = vsel %vm1074_vm14, %v7804_v1, %v2745_v31  ;;  %v2355_v45 = vadd.f32 %v2307_v62, %v6511_v16  ;;  %v2758_v16 = vsel %vm1090_vm12, %v7875_v24, %v7867_v35  ;;  %v2856_v41 = vld [vmem:[%s9286_s7 + $0x270] sm:$0xff]  ;;  %v2859_v31 = vld [vmem:[%s9286_s7 + $0x288] sm:$0xff] }
 0x599   :  { %v2755_v60 = vsel %vm1078_vm0, %v7945_v33, %v2754_v43  ;;  %v2747_v14 = vsel %vm1076_vm15, %v7821_v44, %v2746_v4  ;;  %v2735_v27 = vrot.slane %v2367_v38, %v6250_v21  ;;  %v2731_v42 = vrot.slane %v2367_v38, %v6223_v46  ;;  %v2858_v38 = vld [vmem:[%s9286_s7 + $0x280] sm:$0xff]  ;;  %v2863_v43 = vld [vmem:[%s9286_s7 + $0x2a8] sm:$0xff] }
 0x59a   :  { %v2756_v5 = vsel %vm1080_vm3, %v7960_v9, %v2755_v60  ;;  %v2748_v17 = vsel %vm1078_vm0, %v7956_v25, %v2747_v14  ;;  %v2379_v13 = vmax.f32 %v2355_v45, 0.0  ;;  %v2766_v33 = vsel %vm1072_vm13, %v7884_v10, %v2765_v40  ;;  %v2862_v14 = vld [vmem:[%s9286_s7 + $0x2a0] sm:$0xff]  ;;  %v2864_v45 = vld [vmem:[%s9286_s7 + $0x2b0] sm:$0xff] }
 0x59b   :  { %v2749_v1 = vsel %vm1080_vm3, %v7967_v48, %v2748_v17  ;;  %v8224_v44 = vsel %vm1082_vm4, %v2735_v27, %v2756_v5  ;;  %v2767_v25 = vsel %vm1074_vm14, %v7894_v50, %v2766_v33  ;;  %v2759_v35 = vsel %vm1072_vm13, %v7881_v56, %v2758_v16  ;;  %v2867_v27 = vld [vmem:[%s9286_s7 + $0x2c8] sm:$0xff]  ;;  %v2869_v5 = vld [vmem:[%s9286_s7 + $0x2d8] sm:$0xff] }
 0x59c   :  { %v8227_v9 = vsel %vm1082_vm4, %v2731_v42, %v2749_v1  ;;  %v2768_v48 = vsel %vm1076_vm15, %v7924_v18, %v2767_v25  ;;  %v2743_v39 = vrot.slane %v2379_v13, %v6250_v21  ;;  %v2760_v47 = vsel %vm1074_vm14, %v7900_v23, %v2759_v35  ;;  %v2842_v23 = vld [vmem:[%s9286_s7 + $0x200] sm:$0xff]  ;;  %v2871_v33 = vld [vmem:[%s9286_s7 + $0x2e8] sm:$0xff]  ;;  %v2873_v16 = vld [vmem:[%s9286_s7 + $0x2f8] sm:$0xff] }
 0x59d   :  { %v2769_v10 = vsel %vm1078_vm0, %v7993_v51, %v2768_v48  ;;  %v2761_v50 = vsel %vm1076_vm15, %v7891_v49, %v2760_v47  ;;  %v2739_v21 = vrot.slane %v2379_v13, %v6223_v46  ;;  %v2847_v49 = vld [vmem:[%s9286_s7 + $0x228] sm:$0xff]  ;;  %v5009_v55 = vpack.c.bf16 %v2853_v7, %v2851_v57  ;;  %v2866_v1 = vld [vmem:[%s9286_s7 + $0x2c0] sm:$0xff]  ;;  %v2868_v13 = vld [vmem:[%s9286_s7 + $0x2d0] sm:$0xff] }
 0x59e   :  { %v2770_v24 = vsel %vm1080_vm3, %v8011_v26, %v2769_v10  ;;  %v2762_v18 = vsel %vm1078_vm0, %v7985_v29, %v2761_v50  ;;  %v2844_v26 = vld [vmem:[%s9286_s7 + $0x210] sm:$0xff]  ;;  %v2849_v29 = vld [vmem:[%s9286_s7 + $0x238] sm:$0xff]  ;;  %v5011_v11 = vpack.c.bf16 %v2852_v28, %v2850_v22  ;;  %v5015_v62 = vpack.c.bf16 %v2856_v41, %v2854_v20  ;;  %v2875_v35 = vld [vmem:[%s9286_s7 + $0x308] sm:$0xff] }
 0x59f   :  { %v8243_v37 = vsel %vm1082_vm4, %v2743_v39, %v2770_v24  ;;  %v2763_v56 = vsel %vm1080_vm3, %v8008_v59, %v2762_v18  ;;  %v5003_v61 = vpack.c.bf16 %v2844_v26, %v2842_v23  ;;  %v5005_v63 = vpack.c.bf16 %v2849_v29, %v2847_v49  ;;  %v2870_v39 = vld [vmem:[%s9286_s7 + $0x2e0] sm:$0xff]  ;;  %v2872_v10 = vld [vmem:[%s9286_s7 + $0x2f0] sm:$0xff]  ;;  %v2877_v24 = vld [vmem:[%s9286_s7 + $0x318] sm:$0xff] }
 0x5a0   :  { %v8253_v51 = vsel %vm1082_vm4, %v2739_v21, %v2763_v56  ;;  %v5023_v42 = vpack.c.bf16 %v2864_v45, %v2862_v14  ;;  %v5025_v17 = vpack.c.bf16 %v2869_v5, %v2867_v27  ;;  %v5027_v25 = vpack.c.bf16 %v2868_v13, %v2866_v1  ;;  %v2874_v21 = vld [vmem:[%s9286_s7 + $0x300] sm:$0xff]  ;;  %v2876_v18 = vld [vmem:[%s9286_s7 + $0x310] sm:$0xff]  ;;  %v2879_v56 = vld [vmem:[%s9286_s7 + $0x328] sm:$0xff] }
 0x5a1   :  { %v5029_v48 = vpack.c.bf16 %v2873_v16, %v2871_v33  ;;  %v5031_v47 = vpack.c.bf16 %v2872_v10, %v2870_v39  ;;  %v5033_v50 = vpack.c.bf16 %v2877_v24, %v2875_v35  ;;  %v2881_v23 = vld [vmem:[%s9286_s7 + $0x338] sm:$0xff]  ;;  %v5035_v26 = vpack.c.bf16 %v2876_v18, %v2874_v21  ;;  %v2878_v29 = vld [vmem:[%s9286_s7 + $0x320] sm:$0xff]  ;;  %v2884_v7 = vld [vmem:[%s9286_s7 + $0x350] sm:$0xff] }
 0x5a2   :  { %v5037_v49 = vpack.c.bf16 %v2881_v23, %v2879_v56  ;;  %v2882_v57 = vld [vmem:[%s9286_s7 + $0x340] sm:$0xff]  ;;  %v2900_v27 = vld [vmem:[%s9286_s7 + $0x3d0] sm:$0xff]  ;;  %v2903_v5 = vld [vmem:[%s9286_s7 + $0x3e8] sm:$0xff] }
 0x5a3   :  { %v5043_v22 = vpack.c.bf16 %v2884_v7, %v2882_v57  ;;  %v2890_v41 = vld [vmem:[%s9286_s7 + $0x380] sm:$0xff]  ;;  %v3500_v1 = vld [vmem:[%s9288_s9 + $0x88] sm:$0xff]  ;;  %v2904_v10 = vld [vmem:[%s9286_s7 + $0x3f0] sm:$0xff] }
 0x5a4   :  { %v2898_v45 = vld [vmem:[%s9286_s7 + $0x3c0] sm:$0xff]  ;;  %v2907_v24 = vld [vmem:[%s9286_s7 + $0x408] sm:$0xff]  ;;  %v2908_v56 = vld [vmem:[%s9286_s7 + $0x410] sm:$0xff] }
 0x5a5   :  { %v3483_v13 = vld [vmem:[%s9288_s9] sm:$0xff]  ;;  %v5059_v33 = vpack.c.bf16 %v2900_v27, %v2898_v45  ;;  %v2911_v23 = vld [vmem:[%s9286_s7 + $0x428] sm:$0xff]  ;;  %v2928_v27 = vld [vmem:[%s9286_s7 + $0x4b0] sm:$0xff] }
 0x5a6   :  { %v2902_v39 = vld [vmem:[%s9286_s7 + $0x3e0] sm:$0xff]  ;;  %v2915_v7 = vld [vmem:[%s9286_s7 + $0x448] sm:$0xff] }
 0x5a7   :  { %v2906_v18 = vld [vmem:[%s9286_s7 + $0x400] sm:$0xff] }
 0x5a8   :  { %v2926_v45 = vld [vmem:[%s9286_s7 + $0x4a0] sm:$0xff] }
 0x5e7   :  { %v8267_v59 = vpop.permute.xlu1 %2602 }
 0x5e8   :  { %v2774_v19 = vsel %vm549_vm11, %v8071_v15, %v8267_v59  ;;  %v5007_v15 = vpack.c.bf16 %v2848_v34, %v2846_v30 }
 0x5e9   :  { %3086 = vmatprep.mubr.f32.mxu0 %v2774_v19  ;;  %v2883_v19 = vld [vmem:[%s9286_s7 + $0x348] sm:$0xff] }
 0x5ea   :  { %3087 = vmatmul.mubr.f32.vlgmr.msra.gmra.mrb[12].mxu0 %v8093_v58  ;;  %v2857_v58 = vld [vmem:[%s9286_s7 + $0x278] sm:$0xff] }
 0x5eb   :  { %5004 = vmatpush1.bf16.msra.mxu0 %v5003_v61  ;;  %v5013_v53 = vpack.c.bf16 %v2857_v58, %v2855_v2  ;;  %v2880_v61 = vld [vmem:[%s9286_s7 + $0x330] sm:$0xff]  ;;  %v2886_v2 = vld [vmem:[%s9286_s7 + $0x360] sm:$0xff] }
 0x5ec   :  { %5006 = vmatprep.subr.bf16.mxu0 %v5005_v63  ;;  %v2885_v63 = vld [vmem:[%s9286_s7 + $0x358] sm:$0xff]  ;;  %v5039_v30 = vpack.c.bf16 %v2880_v61, %v2878_v29  ;;  %v2888_v58 = vld [vmem:[%s9286_s7 + $0x370] sm:$0xff]  ;;  %v5067_v61 = vpack.c.bf16 %v2908_v56, %v2906_v18  ;;  %v2938_v18 = vld [vmem:[%s9286_s7 + $0x500] sm:$0xff] }
 0x5ed   :  { %v5041_v34 = vpack.c.bf16 %v2885_v63, %v2883_v19  ;;  %v2910_v63 = vld [vmem:[%s9286_s7 + $0x420] sm:$0xff]  ;;  %v2940_v56 = vld [vmem:[%s9286_s7 + $0x510] sm:$0xff] }
 0x5ef   :  { %v8297_v52 = vpop.permute.xlu0 %2606  ;;  %5008 = vmatpush1.bf16.msra.mxu0 %v5007_v15  ;;  %v2887_v15 = vld [vmem:[%s9286_s7 + $0x368] sm:$0xff] }
 0x5f0   :  { %v2775_v0 = vsel %vm549_vm11, %v8116_v3, %v8297_v52  ;;  %5010 = vmatprep.subr.bf16.mxu0 %v5009_v55  ;;  %v2861_v3 = vld [vmem:[%s9286_s7 + $0x298] sm:$0xff] }
 0x5f1   :  { %3092 = vmatprep.mubr.f32.mxu0 %v2775_v0  ;;  %v5017_v40 = vpack.c.bf16 %v2861_v3, %v2859_v31  ;;  %v2889_v55 = vld [vmem:[%s9286_s7 + $0x378] sm:$0xff]  ;;  %v2891_v0 = vld [vmem:[%s9286_s7 + $0x388] sm:$0xff]  ;;  %v2892_v31 = vld [vmem:[%s9286_s7 + $0x390] sm:$0xff] }
 0x5f2   :  { %3093 = vmatmul.mubr.f32.gmra.mrb[14].mxu0 %v8124_v54  ;;  %v2860_v54 = vld [vmem:[%s9286_s7 + $0x290] sm:$0xff]  ;;  %v5045_v28 = vpack.c.bf16 %v2889_v55, %v2887_v15  ;;  %v2895_v3 = vld [vmem:[%s9286_s7 + $0x3a8] sm:$0xff]  ;;  %v2917_v15 = vld [vmem:[%s9286_s7 + $0x458] sm:$0xff] }
 0x5f3   :  { %3163 = vmatprep.mubr.f32.mxu0 %v8132_v32  ;;  %5012 = vmatpush1.bf16.msra.mxu0 %v5011_v11  ;;  %v2865_v32 = vld [vmem:[%s9286_s7 + $0x2b8] sm:$0xff]  ;;  %v5019_v4 = vpack.c.bf16 %v2860_v54, %v2858_v38  ;;  %v2894_v54 = vld [vmem:[%s9286_s7 + $0x3a0] sm:$0xff] }
 0x5f4   :  { %5014 = vmatprep.subr.bf16.mxu0 %v5013_v53  ;;  %v5021_v60 = vpack.c.bf16 %v2865_v32, %v2863_v43  ;;  %v2893_v11 = vld [vmem:[%s9286_s7 + $0x398] sm:$0xff]  ;;  %v5047_v53 = vpack.c.bf16 %v2888_v58, %v2886_v2  ;;  %v2896_v43 = vld [vmem:[%s9286_s7 + $0x3b0] sm:$0xff]  ;;  %v2899_v32 = vld [vmem:[%s9286_s7 + $0x3c8] sm:$0xff] }
 0x5f5   :  { %v5049_v20 = vpack.c.bf16 %v2893_v11, %v2891_v0  ;;  %v2916_v2 = vld [vmem:[%s9286_s7 + $0x450] sm:$0xff]  ;;  %v2921_v11 = vld [vmem:[%s9286_s7 + $0x478] sm:$0xff] }
 0x5f7   :  { %5016 = vmatpush1.bf16.msra.mxu0 %v5015_v62  ;;  %v2897_v62 = vld [vmem:[%s9286_s7 + $0x3b8] sm:$0xff] }
 0x5f8   :  { %5018 = vmatprep.subr.bf16.mxu0 %v5017_v40  ;;  %v5051_v40 = vpack.c.bf16 %v2892_v31, %v2890_v41  ;;  %v5053_v38 = vpack.c.bf16 %v2897_v62, %v2895_v3  ;;  %v2920_v31 = vld [vmem:[%s9286_s7 + $0x470] sm:$0xff]  ;;  %v2923_v3 = vld [vmem:[%s9286_s7 + $0x488] sm:$0xff]  ;;  %v2925_v62 = vld [vmem:[%s9286_s7 + $0x498] sm:$0xff] }
 0x5f9   :  { %v8484_v29 = vpop.permute.xlu0 %5452 }
 0x5fa   :  { %v5454_v57 = vunpack.i.l.bf16 %v8484_v29  ;;  %v5455_v55 = vunpack.i.h.bf16 %v8484_v29  ;;  %v2980_v29 = vld [vmem:[%s9286_s7 + $0x650] sm:$0xff] }
 0x5fb   :  { %5020 = vmatpush1.bf16.msra.mxu0 %v5019_v4  ;;  %v2901_v4 = vld [vmem:[%s9286_s7 + $0x3d8] sm:$0xff] }
 0x5fc   :  { %5022 = vmatprep.subr.bf16.mxu0 %v5021_v60  ;;  %v5055_v60 = vpack.c.bf16 %v2896_v43, %v2894_v54  ;;  %v5057_v14 = vpack.c.bf16 %v2901_v4, %v2899_v32  ;;  %v2611_v0 = vsel %vm549_vm11, %v8297_v52, %v5454_v57  ;;  %v2918_v52 = vld [vmem:[%s9286_s7 + $0x460] sm:$0xff]  ;;  %v2924_v43 = vld [vmem:[%s9286_s7 + $0x490] sm:$0xff]  ;;  %v2927_v32 = vld [vmem:[%s9286_s7 + $0x4a8] sm:$0xff] }
 0x5fd   :  { %v2922_v54 = vld [vmem:[%s9286_s7 + $0x480] sm:$0xff]  ;;  %v2929_v4 = vld [vmem:[%s9286_s7 + $0x4b8] sm:$0xff] }
 0x5ff   :  { %5024 = vmatpush1.bf16.msra.mxu0 %v5023_v42  ;;  %v2905_v42 = vld [vmem:[%s9286_s7 + $0x3f8] sm:$0xff] }
 0x600   :  { %5026 = vmatprep.subr.bf16.mxu0 %v5025_v17  ;;  %v3499_v17 = vld [vmem:[%s9288_s9 + $0x80] sm:$0xff] }
 0x601   :  { %v5177_v16 = vpack.c.bf16 %v3500_v1, %v3499_v17  ;;  %v5087_v17 = vpack.c.bf16 %v2928_v27, %v2926_v45  ;;  %v2962_v45 = vld [vmem:[%s9286_s7 + $0x5c0] sm:$0xff]  ;;  %v2964_v27 = vld [vmem:[%s9286_s7 + $0x5d0] sm:$0xff] }
 0x603   :  { %5028 = vmatpush1.bf16.msra.mxu0 %v5027_v25  ;;  %v3484_v25 = vld [vmem:[%s9288_s9 + $0x8] sm:$0xff]  ;;  %5178 = vmatprep.subr.bf16.mxu1 %v5177_v16 }
 0x604   :  { %5030 = vmatprep.subr.bf16.mxu0 %v5029_v48  ;;  %v5061_v48 = vpack.c.bf16 %v2905_v42, %v2903_v5  ;;  %v5179_v35 = vpack.c.bf16 %v3484_v25, %v3483_v13  ;;  %v2931_v5 = vld [vmem:[%s9286_s7 + $0x4c8] sm:$0xff]  ;;  %v2933_v42 = vld [vmem:[%s9286_s7 + $0x4d8] sm:$0xff]  ;;  %v2930_v13 = vld [vmem:[%s9286_s7 + $0x4c0] sm:$0xff] }
 0x605   :  { %v5089_v1 = vpack.c.bf16 %v2933_v42, %v2931_v5  ;;  %v2935_v16 = vld [vmem:[%s9286_s7 + $0x4e8] sm:$0xff]  ;;  %v2937_v25 = vld [vmem:[%s9286_s7 + $0x4f8] sm:$0xff] }
 0x606   :  { %5180 = vmatpush3.bf16.msra.mxu1 %v5179_v35  ;;  %v2936_v35 = vld [vmem:[%s9286_s7 + $0x4f0] sm:$0xff]  ;;  %v2967_v5 = vld [vmem:[%s9286_s7 + $0x5e8] sm:$0xff]  ;;  %v2969_v42 = vld [vmem:[%s9286_s7 + $0x5f8] sm:$0xff] }
 0x607   :  { %5032 = vmatpush1.bf16.msra.mxu0 %v5031_v47  ;;  %v2909_v47 = vld [vmem:[%s9286_s7 + $0x418] sm:$0xff] }
 0x608   :  { %5034 = vmatprep.subr.bf16.mxu0 %v5033_v50  ;;  %v5063_v50 = vpack.c.bf16 %v2904_v10, %v2902_v39  ;;  %v5065_v21 = vpack.c.bf16 %v2909_v47, %v2907_v24  ;;  %v5093_v39 = vpack.c.bf16 %v2937_v25, %v2935_v16  ;;  %v2934_v10 = vld [vmem:[%s9286_s7 + $0x4e0] sm:$0xff]  ;;  %v2939_v24 = vld [vmem:[%s9286_s7 + $0x508] sm:$0xff]  ;;  %v2941_v47 = vld [vmem:[%s9286_s7 + $0x518] sm:$0xff] }
 0x609   :  { %v2971_v16 = vld [vmem:[%s9286_s7 + $0x608] sm:$0xff]  ;;  %v2973_v25 = vld [vmem:[%s9286_s7 + $0x618] sm:$0xff] }
 0x60b   :  { %5036 = vmatpush1.bf16.msra.mxu0 %v5035_v26  ;;  %v2913_v26 = vld [vmem:[%s9286_s7 + $0x438] sm:$0xff] }
 0x60c   :  { %5038 = vmatprep.subr.bf16.mxu0 %v5037_v49  ;;  %v2605_v49 = vpop.permute.xlu1 %2604  ;;  %v5069_v19 = vpack.c.bf16 %v2913_v26, %v2911_v23  ;;  %v2943_v23 = vld [vmem:[%s9286_s7 + $0x528] sm:$0xff]  ;;  %v2945_v26 = vld [vmem:[%s9286_s7 + $0x538] sm:$0xff] }
 0x60f   :  { %5040 = vmatpush1.bf16.msra.mxu0 %v5039_v30  ;;  %v2912_v30 = vld [vmem:[%s9286_s7 + $0x430] sm:$0xff] }
 0x610   :  { %5042 = vmatprep.subr.bf16.mxu0 %v5041_v34  ;;  %v2610_v34 = vsel %vm549_vm11, %v8267_v59, %v2605_v49  ;;  %v2914_v59 = vld [vmem:[%s9286_s7 + $0x440] sm:$0xff]  ;;  %v2715_v58 = vpop.permute.xlu1 %2714  ;;  %v5099_v49 = vpack.c.bf16 %v2940_v56, %v2938_v18 }
 0x613   :  { %5044 = vmatpush1.bf16.msra.mxu0 %v5043_v22  ;;  %v5071_v22 = vpack.c.bf16 %v2912_v30, %v2910_v63  ;;  %v2944_v63 = vld [vmem:[%s9286_s7 + $0x530] sm:$0xff]  ;;  %v2947_v30 = vld [vmem:[%s9286_s7 + $0x548] sm:$0xff] }
 0x614   :  { %5046 = vmatprep.subr.bf16.mxu0 %v5045_v28  ;;  %v5073_v28 = vpack.c.bf16 %v2917_v15, %v2915_v7  ;;  %v2946_v15 = vld [vmem:[%s9286_s7 + $0x540] sm:$0xff] }
 0x617   :  { %5048 = vmatpush1.bf16.msra.mxu0 %v5047_v53  ;;  %v2720_v53 = vsel %vm549_vm11, %v5455_v55, %v2715_v58 }
 0x618   :  { %5050 = vmatprep.subr.bf16.mxu0 %v5049_v20  ;;  %v5075_v20 = vpack.c.bf16 %v2916_v2, %v2914_v59  ;;  %v2953_v59 = vld [vmem:[%s9286_s7 + $0x578] sm:$0xff] }
 0x61b   :  { %5052 = vmatpush1.bf16.msra.mxu0 %v5051_v40  ;;  %v5079_v40 = vpack.c.bf16 %v2920_v31, %v2918_v52  ;;  %v2954_v52 = vld [vmem:[%s9286_s7 + $0x580] sm:$0xff]  ;;  %v2956_v31 = vld [vmem:[%s9286_s7 + $0x590] sm:$0xff] }
 0x61c   :  { %5054 = vmatprep.subr.bf16.mxu0 %v5053_v38  ;;  %v5081_v38 = vpack.c.bf16 %v2925_v62, %v2923_v3  ;;  %v2959_v3 = vld [vmem:[%s9286_s7 + $0x5a8] sm:$0xff]  ;;  %v2961_v62 = vld [vmem:[%s9286_s7 + $0x5b8] sm:$0xff] }
 0x61f   :  { %5056 = vmatpush1.bf16.msra.mxu0 %v5055_v60  ;;  %v5083_v60 = vpack.c.bf16 %v2924_v43, %v2922_v54  ;;  %v2958_v54 = vld [vmem:[%s9286_s7 + $0x5a0] sm:$0xff]  ;;  %v2960_v43 = vld [vmem:[%s9286_s7 + $0x5b0] sm:$0xff] }
 0x620   :  { %5058 = vmatprep.subr.bf16.mxu0 %v5057_v14  ;;  %v5085_v14 = vpack.c.bf16 %v2929_v4, %v2927_v32  ;;  %v2963_v32 = vld [vmem:[%s9286_s7 + $0x5c8] sm:$0xff]  ;;  %v2965_v4 = vld [vmem:[%s9286_s7 + $0x5d8] sm:$0xff] }
 0x623   :  { %5060 = vmatpush1.bf16.msra.mxu0 %v5059_v33  ;;  %v2932_v33 = vld [vmem:[%s9286_s7 + $0x4d0] sm:$0xff] }
 0x624   :  { %5062 = vmatprep.subr.bf16.mxu0 %v5061_v48  ;;  %v5091_v48 = vpack.c.bf16 %v2932_v33, %v2930_v13  ;;  %v2966_v13 = vld [vmem:[%s9286_s7 + $0x5e0] sm:$0xff]  ;;  %v2968_v33 = vld [vmem:[%s9286_s7 + $0x5f0] sm:$0xff] }
 0x627   :  { %5064 = vmatpush1.bf16.msra.mxu0 %v5063_v50  ;;  %v5095_v50 = vpack.c.bf16 %v2936_v35, %v2934_v10  ;;  %v5129_v10 = vpack.c.bf16 %v2973_v25, %v2971_v16  ;;  %v2970_v35 = vld [vmem:[%s9286_s7 + $0x600] sm:$0xff]  ;;  %v3004_v16 = vld [vmem:[%s9286_s7 + $0x710] sm:$0xff]  ;;  %v3007_v25 = vld [vmem:[%s9286_s7 + $0x728] sm:$0xff] }
 0x628   :  { %5066 = vmatprep.subr.bf16.mxu0 %v5065_v21  ;;  %v5097_v21 = vpack.c.bf16 %v2941_v47, %v2939_v24  ;;  %v2972_v24 = vld [vmem:[%s9286_s7 + $0x610] sm:$0xff]  ;;  %v2975_v47 = vld [vmem:[%s9286_s7 + $0x628] sm:$0xff] }
 0x629   :  { %v5131_v56 = vpack.c.bf16 %v2972_v24, %v2970_v35  ;;  %v3006_v35 = vld [vmem:[%s9286_s7 + $0x720] sm:$0xff]  ;;  %v3008_v24 = vld [vmem:[%s9286_s7 + $0x730] sm:$0xff] }
 0x62a   :  { %3164 = vmatmul.mubr.f32.vlgmr.msra.gmra.mrb[12].mxu0 %v2610_v34  ;;  %v2949_v34 = vld [vmem:[%s9286_s7 + $0x558] sm:$0xff] }
 0x62b   :  { %3169 = vmatprep.mubr.f32.mxu0 %v8175_v36  ;;  %5068 = vmatpush1.bf16.msra.mxu0 %v5067_v61  ;;  %v2919_v36 = vld [vmem:[%s9286_s7 + $0x468] sm:$0xff]  ;;  %v5101_v61 = vpack.c.bf16 %v2945_v26, %v2943_v23  ;;  %v5105_v7 = vpack.c.bf16 %v2949_v34, %v2947_v30  ;;  %v2974_v26 = vld [vmem:[%s9286_s7 + $0x620] sm:$0xff] }
 0x62c   :  { %5070 = vmatprep.subr.bf16.mxu0 %v5069_v19  ;;  %v5077_v41 = vpack.c.bf16 %v2921_v11, %v2919_v36  ;;  %v2942_v19 = vld [vmem:[%s9286_s7 + $0x520] sm:$0xff]  ;;  %v2952_v36 = vld [vmem:[%s9286_s7 + $0x570] sm:$0xff]  ;;  %v2955_v11 = vld [vmem:[%s9286_s7 + $0x588] sm:$0xff] }
 0x62d   :  { %v5103_v57 = vpack.c.bf16 %v2944_v63, %v2942_v19  ;;  %v2979_v19 = vld [vmem:[%s9286_s7 + $0x648] sm:$0xff]  ;;  %v2981_v63 = vld [vmem:[%s9286_s7 + $0x658] sm:$0xff] }
 0x62e   :  { %3170 = vmatmul.mubr.f32.gmra.mrb[14].mxu0 %v2611_v0  ;;  %v2950_v0 = vld [vmem:[%s9286_s7 + $0x560] sm:$0xff] }
 0x62f   :  { %5072 = vmatpush1.bf16.msra.mxu0 %v5071_v22  ;;  %3240 = vmatprep.mubr.f32.mxu0 %v2720_v53  ;;  %v2948_v22 = vld [vmem:[%s9286_s7 + $0x550] sm:$0xff]  ;;  %v2957_v53 = vld [vmem:[%s9286_s7 + $0x598] sm:$0xff] }
 0x630   :  { %5074 = vmatprep.subr.bf16.mxu0 %v5073_v28  ;;  %v2951_v28 = vld [vmem:[%s9286_s7 + $0x568] sm:$0xff]  ;;  %v5107_v2 = vpack.c.bf16 %v2948_v22, %v2946_v15  ;;  %v2985_v15 = vld [vmem:[%s9286_s7 + $0x678] sm:$0xff] }
 0x631   :  { %v5109_v58 = vpack.c.bf16 %v2953_v59, %v2951_v28  ;;  %v2984_v59 = vld [vmem:[%s9286_s7 + $0x670] sm:$0xff] }
 0x633   :  { %5076 = vmatpush1.bf16.msra.mxu0 %v5075_v20  ;;  %v5111_v20 = vpack.c.bf16 %v2952_v36, %v2950_v0  ;;  %v2986_v36 = vld [vmem:[%s9286_s7 + $0x680] sm:$0xff] }
 0x634   :  { %5078 = vmatprep.subr.bf16.mxu0 %v5077_v41  ;;  %v5113_v41 = vpack.c.bf16 %v2957_v53, %v2955_v11  ;;  %v2988_v11 = vld [vmem:[%s9286_s7 + $0x690] sm:$0xff]  ;;  %v2991_v53 = vld [vmem:[%s9286_s7 + $0x6a8] sm:$0xff] }
 0x637   :  { %5080 = vmatpush1.bf16.msra.mxu0 %v5079_v40  ;;  %v5115_v40 = vpack.c.bf16 %v2956_v31, %v2954_v52  ;;  %v2990_v31 = vld [vmem:[%s9286_s7 + $0x6a0] sm:$0xff] }
 0x638   :  { %5082 = vmatprep.subr.bf16.mxu0 %v5081_v38  ;;  %v5117_v38 = vpack.c.bf16 %v2961_v62, %v2959_v3  ;;  %v2992_v3 = vld [vmem:[%s9286_s7 + $0x6b0] sm:$0xff]  ;;  %v2995_v62 = vld [vmem:[%s9286_s7 + $0x6c8] sm:$0xff] }
 0x63b   :  { %5084 = vmatpush1.bf16.msra.mxu0 %v5083_v60  ;;  %v5119_v60 = vpack.c.bf16 %v2960_v43, %v2958_v54  ;;  %v2994_v43 = vld [vmem:[%s9286_s7 + $0x6c0] sm:$0xff] }
 0x63c   :  { %5086 = vmatprep.subr.bf16.mxu0 %v5085_v14  ;;  %v5121_v14 = vpack.c.bf16 %v2965_v4, %v2963_v32  ;;  %v2996_v32 = vld [vmem:[%s9286_s7 + $0x6d0] sm:$0xff]  ;;  %v2999_v4 = vld [vmem:[%s9286_s7 + $0x6e8] sm:$0xff] }
 0x63f   :  { %5088 = vmatpush1.bf16.msra.mxu0 %v5087_v17  ;;  %v5123_v17 = vpack.c.bf16 %v2964_v27, %v2962_v45  ;;  %v2998_v27 = vld [vmem:[%s9286_s7 + $0x6e0] sm:$0xff] }
 0x640   :  { %5090 = vmatprep.subr.bf16.mxu0 %v5089_v1  ;;  %v5125_v1 = vpack.c.bf16 %v2969_v42, %v2967_v5  ;;  %v3000_v5 = vld [vmem:[%s9286_s7 + $0x6f0] sm:$0xff]  ;;  %v3003_v42 = vld [vmem:[%s9286_s7 + $0x708] sm:$0xff] }
 0x643   :  { %5092 = vmatpush1.bf16.msra.mxu0 %v5091_v48  ;;  %v5458_v48 = vpop.permute.xlu0 %5457 }
 0x644   :  { %5094 = vmatprep.subr.bf16.mxu0 %v5093_v39  ;;  %v5127_v39 = vpack.c.bf16 %v2968_v33, %v2966_v13  ;;  %v5459_v18 = vunpack.i.l.bf16 %v5458_v48  ;;  %v3002_v33 = vld [vmem:[%s9286_s7 + $0x700] sm:$0xff] }
 0x647   :  { %5096 = vmatpush1.bf16.msra.mxu0 %v5095_v50  ;;  %v2977_v50 = vld [vmem:[%s9286_s7 + $0x638] sm:$0xff] }
 0x648   :  { %5098 = vmatprep.subr.bf16.mxu0 %v5097_v21  ;;  %v5460_v21 = vunpack.i.h.bf16 %v5458_v48  ;;  %v5133_v23 = vpack.c.bf16 %v2977_v50, %v2975_v47  ;;  %v3009_v48 = vld [vmem:[%s9286_s7 + $0x738] sm:$0xff]  ;;  %v3011_v47 = vld [vmem:[%s9286_s7 + $0x748] sm:$0xff] }
 0x649   :  { %v3013_v50 = vld [vmem:[%s9286_s7 + $0x758] sm:$0xff] }
 0x64a   :  { %v2721_v30 = vsel %vm549_vm11, %v5459_v18, %v5460_v21  ;;  %v5167_v21 = vpack.c.bf16 %v3008_v24, %v3006_v35 }
 0x64b   :  { %5100 = vmatpush1.bf16.msra.mxu0 %v5099_v49  ;;  %v2976_v49 = vld [vmem:[%s9286_s7 + $0x630] sm:$0xff] }
 0x64c   :  { %5102 = vmatprep.subr.bf16.mxu0 %v5101_v61  ;;  %v2776_v61 = vsel %vm549_vm11, %v8179_v6, %v5455_v55  ;;  %v5135_v34 = vpack.c.bf16 %v2976_v49, %v2974_v26  ;;  %v2978_v6 = vld [vmem:[%s9286_s7 + $0x640] sm:$0xff]  ;;  %v2777_v55 = vsel %vm549_vm11, %v8185_v12, %v5459_v18  ;;  %v5169_v18 = vpack.c.bf16 %v3013_v50, %v3011_v47  ;;  %v3015_v26 = vld [vmem:[%s9286_s7 + $0x768] sm:$0xff]  ;;  %v3017_v49 = vld [vmem:[%s9286_s7 + $0x778] sm:$0xff] }
 0x64d   :  { %v5139_v22 = vpack.c.bf16 %v2980_v29, %v2978_v6  ;;  %v2982_v12 = vld [vmem:[%s9286_s7 + $0x660] sm:$0xff]  ;;  %v3502_v6 = vld [vmem:[%s9288_s9 + $0x98] sm:$0xff] }
 0x64f   :  { %5104 = vmatpush1.bf16.msra.mxu0 %v5103_v57  ;;  %v5137_v57 = vpack.c.bf16 %v2981_v63, %v2979_v19  ;;  %v5173_v19 = vpack.c.bf16 %v3017_v49, %v3015_v26  ;;  %v3014_v63 = vld [vmem:[%s9286_s7 + $0x760] sm:$0xff] }
 0x650   :  { %5106 = vmatprep.subr.bf16.mxu0 %v5105_v7  ;;  %v2983_v7 = vld [vmem:[%s9286_s7 + $0x668] sm:$0xff] }
 0x651   :  { %v5141_v28 = vpack.c.bf16 %v2985_v15, %v2983_v7  ;;  %v3504_v7 = vld [vmem:[%s9288_s9 + $0xa8] sm:$0xff] }
 0x653   :  { %5108 = vmatpush1.bf16.msra.mxu0 %v5107_v2  ;;  %v2987_v2 = vld [vmem:[%s9286_s7 + $0x688] sm:$0xff] }
 0x654   :  { %5110 = vmatprep.subr.bf16.mxu0 %v5109_v58  ;;  %v2989_v58 = vld [vmem:[%s9286_s7 + $0x698] sm:$0xff] }
 0x655   :  { %v5145_v0 = vpack.c.bf16 %v2989_v58, %v2987_v2  ;;  %v3506_v2 = vld [vmem:[%s9288_s9 + $0xb8] sm:$0xff]  ;;  %v3489_v58 = vld [vmem:[%s9288_s9 + $0x30] sm:$0xff] }
 0x657   :  { %5112 = vmatpush1.bf16.msra.mxu0 %v5111_v20  ;;  %v2993_v20 = vld [vmem:[%s9286_s7 + $0x6b8] sm:$0xff] }
 0x658   :  { %5114 = vmatprep.subr.bf16.mxu0 %v5113_v41  ;;  %v5147_v41 = vpack.c.bf16 %v2988_v11, %v2986_v36  ;;  %v5149_v52 = vpack.c.bf16 %v2993_v20, %v2991_v53  ;;  %v3507_v36 = vld [vmem:[%s9288_s9 + $0xc0] sm:$0xff]  ;;  %v3508_v11 = vld [vmem:[%s9288_s9 + $0xc8] sm:$0xff] }
 0x659   :  { %v5193_v20 = vpack.c.bf16 %v3508_v11, %v3507_v36 }
 0x65b   :  { %5116 = vmatpush1.bf16.msra.mxu0 %v5115_v40  ;;  %v2997_v40 = vld [vmem:[%s9286_s7 + $0x6d8] sm:$0xff] }
 0x65c   :  { %5118 = vmatprep.subr.bf16.mxu0 %v5117_v38  ;;  %v5151_v38 = vpack.c.bf16 %v2992_v3, %v2990_v31  ;;  %v5153_v54 = vpack.c.bf16 %v2997_v40, %v2995_v62  ;;  %v3509_v31 = vld [vmem:[%s9288_s9 + $0xd0] sm:$0xff]  ;;  %v3510_v3 = vld [vmem:[%s9288_s9 + $0xd8] sm:$0xff] }
 0x65d   :  { %v5197_v40 = vpack.c.bf16 %v3510_v3, %v3509_v31 }
 0x65f   :  { %5120 = vmatpush1.bf16.msra.mxu0 %v5119_v60  ;;  %v3001_v60 = vld [vmem:[%s9286_s7 + $0x6f8] sm:$0xff] }
 0x660   :  { %5122 = vmatprep.subr.bf16.mxu0 %v5121_v14  ;;  %v5155_v14 = vpack.c.bf16 %v2996_v32, %v2994_v43  ;;  %v5157_v45 = vpack.c.bf16 %v3001_v60, %v2999_v4  ;;  %v3511_v43 = vld [vmem:[%s9288_s9 + $0xe0] sm:$0xff]  ;;  %v3512_v32 = vld [vmem:[%s9288_s9 + $0xe8] sm:$0xff] }
 0x661   :  { %v5201_v60 = vpack.c.bf16 %v3512_v32, %v3511_v43 }
 0x663   :  { %5124 = vmatpush1.bf16.msra.mxu0 %v5123_v17  ;;  %v3005_v17 = vld [vmem:[%s9286_s7 + $0x718] sm:$0xff] }
 0x664   :  { %5126 = vmatprep.subr.bf16.mxu0 %v5125_v1  ;;  %v5159_v1 = vpack.c.bf16 %v3000_v5, %v2998_v27  ;;  %v5161_v13 = vpack.c.bf16 %v3005_v17, %v3003_v42  ;;  %v3513_v27 = vld [vmem:[%s9288_s9 + $0xf0] sm:$0xff]  ;;  %v3514_v5 = vld [vmem:[%s9288_s9 + $0xf8] sm:$0xff] }
 0x665   :  { %v5205_v17 = vpack.c.bf16 %v3514_v5, %v3513_v27  ;;  %v3515_v5 = vld [vmem:[%s9288_s9 + $0x100] sm:$0xff] }
 0x667   :  { %5128 = vmatpush1.bf16.msra.mxu0 %v5127_v39  ;;  %v5163_v39 = vpack.c.bf16 %v3004_v16, %v3002_v33  ;;  %v9368_v16 = vmov 0.0|0.0  }
 0x668   :  { %5130 = vmatprep.subr.bf16.mxu0 %v5129_v10  ;;  %v5165_v10 = vpack.c.bf16 %v3009_v48, %v3007_v25 }
 0x66a   :  { %3241 = vmatmul.mubr.f32.vlgmr.msra.gmra.mrb[12].mxu0 %v2776_v61 }
 0x66b   :  { %3246 = vmatprep.mubr.f32.mxu0 %v2721_v30  ;;  %5132 = vmatpush1.bf16.msra.mxu0 %v5131_v56  ;;  %v3010_v56 = vld [vmem:[%s9286_s7 + $0x740] sm:$0xff]  ;;  %v3016_v30 = vld [vmem:[%s9286_s7 + $0x770] sm:$0xff] }
 0x66c   :  { %5134 = vmatprep.subr.bf16.mxu0 %v5133_v23  ;;  %v3012_v23 = vld [vmem:[%s9286_s7 + $0x750] sm:$0xff] }
 0x66d   :  { %v5171_v61 = vpack.c.bf16 %v3012_v23, %v3010_v56 }
 0x66e   :  { %3247 = vmatmul.mubr.f32.gmra.mrb[14].mxu0 %v2777_v55  ;;  %v3485_v55 = vld [vmem:[%s9288_s9 + $0x10] sm:$0xff] }
 0x66f   :  { %5136 = vmatpush1.bf16.msra.mxu0 %v5135_v34  ;;  %4321 = vmatprep.mubr.msk.f32.mxu0 %vm549_vm11, %v8224_v44  ;;  %v5143_v44 = vpack.c.bf16 %v2984_v59, %v2982_v12  ;;  %v5175_v34 = vpack.c.bf16 %v3016_v30, %v3014_v63  ;;  %v3505_v12 = vld [vmem:[%s9288_s9 + $0xb0] sm:$0xff] }
 0x670   :  { %5138 = vmatprep.subr.bf16.mxu0 %v5137_v57  ;;  %v3501_v57 = vld [vmem:[%s9288_s9 + $0x90] sm:$0xff] }
 0x671   :  { %v5181_v29 = vpack.c.bf16 %v3502_v6, %v3501_v57 }
 0x673   :  { %5140 = vmatpush1.bf16.msra.mxu0 %v5139_v22  ;;  %5182 = vmatprep.subr.bf16.mxu1 %v5181_v29  ;;  %v3487_v22 = vld [vmem:[%s9288_s9 + $0x20] sm:$0xff] }
 0x674   :  { %5142 = vmatprep.subr.bf16.mxu0 %v5141_v28  ;;  %v3488_v28 = vld [vmem:[%s9288_s9 + $0x28] sm:$0xff] }
 0x675   :  { %v5187_v59 = vpack.c.bf16 %v3488_v28, %v3487_v22 }
 0x677   :  { %5144 = vmatpush1.bf16.msra.mxu0 %v5143_v44  ;;  %v3490_v44 = vld [vmem:[%s9288_s9 + $0x38] sm:$0xff] }
 0x678   :  { %5146 = vmatprep.subr.bf16.mxu0 %v5145_v0  ;;  %v5189_v0 = vpack.c.bf16 %v3506_v2, %v3505_v12  ;;  %v5191_v53 = vpack.c.bf16 %v3490_v44, %v3489_v58 }
 0x67b   :  { %5148 = vmatpush1.bf16.msra.mxu0 %v5147_v41  ;;  %v3491_v41 = vld [vmem:[%s9288_s9 + $0x40] sm:$0xff] }
 0x67c   :  { %5150 = vmatprep.subr.bf16.mxu0 %v5149_v52  ;;  %v3492_v52 = vld [vmem:[%s9288_s9 + $0x48] sm:$0xff] }
 0x67d   :  { %v5195_v62 = vpack.c.bf16 %v3492_v52, %v3491_v41 }
 0x67f   :  { %5152 = vmatpush1.bf16.msra.mxu0 %v5151_v38  ;;  %v3493_v38 = vld [vmem:[%s9288_s9 + $0x50] sm:$0xff] }
 0x680   :  { %5154 = vmatprep.subr.bf16.mxu0 %v5153_v54  ;;  %v3494_v54 = vld [vmem:[%s9288_s9 + $0x58] sm:$0xff] }
 0x681   :  { %v5199_v4 = vpack.c.bf16 %v3494_v54, %v3493_v38 }
 0x683   :  { %5156 = vmatpush1.bf16.msra.mxu0 %v5155_v14  ;;  %v3495_v14 = vld [vmem:[%s9288_s9 + $0x60] sm:$0xff] }
 0x684   :  { %5158 = vmatprep.subr.bf16.mxu0 %v5157_v45  ;;  %v3496_v45 = vld [vmem:[%s9288_s9 + $0x68] sm:$0xff] }
 0x685   :  { %v5203_v42 = vpack.c.bf16 %v3496_v45, %v3495_v14 }
 0x687   :  { %5160 = vmatpush1.bf16.msra.mxu0 %v5159_v1  ;;  %v3497_v1 = vld [vmem:[%s9288_s9 + $0x70] sm:$0xff] }
 0x688   :  { %5162 = vmatprep.subr.bf16.mxu0 %v5161_v13  ;;  %v3498_v13 = vld [vmem:[%s9288_s9 + $0x78] sm:$0xff] }
 0x689   :  { %v5207_v33 = vpack.c.bf16 %v3498_v13, %v3497_v1 }
 0x68b   :  { %5164 = vmatpush1.bf16.msra.mxu0 %v5163_v39  ;;  %v4323_v39 = vld [vmem:[%s9287_s8] ss:$0 sm:$0xff] }
 0x68c   :  { %5166 = vmatprep.subr.bf16.mxu0 %v5165_v10 }
 0x68f   :  { %5168 = vmatpush1.bf16.msra.mxu0 %v5167_v21 }
 0x690   :  { %5170 = vmatprep.subr.bf16.mxu0 %v5169_v18 }
 0x693   :  { %5172 = vmatpush1.bf16.msra.mxu0 %v5171_v61 }
 0x694   :  { %5174 = vmatprep.subr.bf16.mxu0 %v5173_v19 }
 0x697   :  { %5176 = vmatpush1.bf16.msra.mxu0 %v5175_v34 }
 0x69a   :  { %3318 = vmatmul.mubr.f32.vlgmr.msra.gmra.mrb[12].mxu0 %v8227_v9  ;;  %v3486_v9 = vld [vmem:[%s9288_s9 + $0x18] sm:$0xff] }
 0x69b   :  { %4322 = vmatprep.mubr.msk.f32.mxu0 %vm549_vm11, %v8243_v37  ;;  %v3503_v37 = vld [vmem:[%s9288_s9 + $0xa0] sm:$0xff] }
 0x69c   :  { %v5185_v15 = vpack.c.bf16 %v3504_v7, %v3503_v37 }
 0x69e   :  { %3324 = vmatmul.mubr.f32.gmra.mrb[14].mxu0 %v8253_v51  ;;  %v5183_v51 = vpack.c.bf16 %v3486_v9, %v3485_v55 }
 0x6a0   :  { %5184 = vmatpush3.bf16.msra.mxu1 %v5183_v51 }
 0x6a1   :  { %5186 = vmatprep.subr.bf16.mxu1 %v5185_v15 }
 0x6a4   :  { %5188 = vmatpush3.bf16.msra.mxu1 %v5187_v59 }
 0x6a5   :  { %5190 = vmatprep.subr.bf16.mxu1 %v5189_v0 }
 0x6a8   :  { %5192 = vmatpush3.bf16.msra.mxu1 %v5191_v53 }
 0x6a9   :  { %5194 = vmatprep.subr.bf16.mxu1 %v5193_v20 }
 0x6ac   :  { %5196 = vmatpush3.bf16.msra.mxu1 %v5195_v62 }
 0x6ad   :  { %5198 = vmatprep.subr.bf16.mxu1 %v5197_v40 }
 0x6b0   :  { %5200 = vmatpush3.bf16.msra.mxu1 %v5199_v4 }
 0x6b1   :  { %5202 = vmatprep.subr.bf16.mxu1 %v5201_v60 }
 0x6b4   :  { %5204 = vmatpush3.bf16.msra.mxu1 %v5203_v42  ;;  %v3516_v42 = vld [vmem:[%s9288_s9 + $0x108] sm:$0xff] }
 0x6b5   :  { %5206 = vmatprep.subr.bf16.mxu1 %v5205_v17 }
 0x6b8   :  { %5208 = vmatpush3.bf16.msra.mxu1 %v5207_v33 }
 0x6b9   :  { %5209 = vmatprep.subr.bf16.mxu1 %v9368_v16 }
 0x76d   :  { %v3319_v25 = vpop.f32.mrb[12].mxu0 }
 0x76e   :  { %v3321_v48 = vpop.f32.mrb[13].mxu0 }
 0x76f   :  { %v3330_v10 = vmax.f32 %v3319_v25, %v3321_v48 }
 0x771   :  { %v3339_v35 = vadd.f32 %v4323_v39, %v3330_v10  ;;  %v3325_v24 = vpop.f32.mrb[14].mxu0  ;;  %v5210_v10 = vpack.c.bf16 %v3516_v42, %v3515_v5  ;;  %v3723_v5 = vld [vmem:[#allocation2 + $0xb0] sm:$0xff]  ;;  %v3724_v42 = vld [vmem:[#allocation2 + $0xb8] sm:$0xff] }
 0x772   :  { %v3327_v47 = vpop.f32.mrb[15].mxu0 }
 0x773   :  { %v3341_v50 = vmax.f32 %v3339_v35, 0.0  ;;  %v3331_v21 = vmax.f32 %v3325_v24, %v3327_v47  ;;  %v3517_v24 = vld [vmem:[%s9288_s9 + $0x110] sm:$0xff]  ;;  %v3518_v47 = vld [vmem:[%s9288_s9 + $0x118] sm:$0xff] }
 0x775   :  { %v3345_v18 = vcombine.high %v3341_v50, %v3341_v50  ;;  %v3352_v56 = vrot.slane %v3341_v50, %v6239_v8  ;;  %v3340_v23 = vadd.f32 %v4323_v39, %v3331_v21  ;;  %v5213_v50 = vpack.c.bf16 %v3518_v47, %v3517_v24  ;;  %v3710_v24 = vld [vmem:[#allocation2 + $0x48] sm:$0xff] }
 0x776   :  { %v9369_v21 = vmov 0.0  }
 0x777   :  { %v3359_v26 = vrot.slane %v3345_v18, %v6239_v8  ;;  %v3360_v49 = vcombine.high %v3352_v56, %v3352_v56  ;;  %v4324_v61 = vrot.slane %v3352_v56, 9  ;;  %v3342_v19 = vmax.f32 %v3340_v23, 0.0  ;;  %v3519_v18 = vld [vmem:[%s9288_s9 + $0x120] sm:$0xff] }
 0x779   :  { %v3361_v63 = vcombine.high %v3359_v26, %v3359_v26  ;;  %v4325_v30 = vrot.slane %v3360_v49, 9  ;;  %v4326_v34 = vrot.slane %v3359_v26, 9  ;;  %v8917_v57 = vmax.f32 %v3352_v56, %v4324_v61  ;;  %v3520_v56 = vld [vmem:[%s9288_s9 + $0x128] sm:$0xff] }
 0x77a   :  { %v3362_v6 = vcombine.high %v3342_v19, %v3342_v19  ;;  %v3369_v29 = vrot.slane %v3342_v19, %v6239_v8  ;;  %v5216_v23 = vpack.c.bf16 %v3520_v56, %v3519_v18  ;;  %v3523_v19 = vld [vmem:[%s9288_s9 + $0x140] sm:$0xff]  ;;  %v3728_v18 = vld [vmem:[#allocation2 + $0xd8] sm:$0xff]  ;;  %v3711_v56 = vld [vmem:[#allocation2 + $0x50] sm:$0xff] }
 0x77b   :  { %v8920_v55 = vmax.f32 %v3360_v49, %v4325_v30  ;;  %v8922_v9 = vmax.f32 %v3359_v26, %v4326_v34  ;;  %v4327_v37 = vrot.slane %v3361_v63, 9  ;;  %v3430_v22 = vrot.slane %v8917_v57, %v6223_v46  ;;  %v3521_v26 = vld [vmem:[%s9288_s9 + $0x130] sm:$0xff]  ;;  %v3522_v49 = vld [vmem:[%s9288_s9 + $0x138] sm:$0xff] }
 0x77c   :  { %v3376_v51 = vrot.slane %v3362_v6, %v6239_v8  ;;  %v3377_v7 = vcombine.high %v3369_v29, %v3369_v29  ;;  %v4328_v15 = vrot.slane %v3369_v29, 9  ;;  %v5219_v61 = vpack.c.bf16 %v3522_v49, %v3521_v26  ;;  %v3525_v34 = vld [vmem:[%s9288_s9 + $0x150] sm:$0xff]  ;;  %v3526_v6 = vld [vmem:[%s9288_s9 + $0x158] sm:$0xff]  ;;  %v3729_v49 = vld [vmem:[#allocation2 + $0xe0] sm:$0xff] }
 0x77d   :  { %v3434_v28 = vrot.slane %v8920_v55, %v6223_v46  ;;  %v8929_v12 = vmax.f32 %v3361_v63, %v4327_v37  ;;  %v3438_v59 = vrot.slane %v8922_v9, %v6223_v46  ;;  %v3524_v63 = vld [vmem:[%s9288_s9 + $0x148] sm:$0xff]  ;;  %v3527_v37 = vld [vmem:[%s9288_s9 + $0x160] sm:$0xff]  ;;  %v3712_v26 = vld [vmem:[#allocation2 + $0x58] sm:$0xff] }
 0x77e   :  { %v3378_v2 = vcombine.high %v3376_v51, %v3376_v51  ;;  %v4329_v58 = vrot.slane %v3377_v7, 9  ;;  %v4330_v44 = vrot.slane %v3376_v51, 9  ;;  %v8933_v0 = vmax.f32 %v3369_v29, %v4328_v15  ;;  %v3529_v15 = vld [vmem:[%s9288_s9 + $0x170] sm:$0xff] }
 0x77f   :  { %v3459_v36 = vsel %vm1072_vm13, %v3434_v28, %v3430_v22  ;;  %v3442_v11 = vrot.slane %v8929_v12, %v6223_v46  ;;  %v3471_v52 = vsel %vm1090_vm12, %v3434_v28, %v3430_v22  ;;  %v5222_v30 = vpack.c.bf16 %v3524_v63, %v3523_v19  ;;  %v3530_v22 = vld [vmem:[%s9288_s9 + $0x178] sm:$0xff] }
 0x780   :  { %v8938_v53 = vmax.f32 %v3377_v7, %v4329_v58  ;;  %v8940_v20 = vmax.f32 %v3376_v51, %v4330_v44  ;;  %v4331_v41 = vrot.slane %v3378_v2, 9  ;;  %v3446_v31 = vrot.slane %v8933_v0, %v6223_v46  ;;  %v3528_v51 = vld [vmem:[%s9288_s9 + $0x168] sm:$0xff]  ;;  %v3717_v44 = vld [vmem:[#allocation2 + $0x80] sm:$0xff] }
 0x781   :  { %v3460_v3 = vsel %vm1074_vm14, %v3438_v59, %v3459_v36  ;;  %v3472_v43 = vsel %vm1072_vm13, %v3438_v59, %v3471_v52  ;;  %v5225_v29 = vpack.c.bf16 %v3526_v6, %v3525_v34  ;;  %v5228_v7 = vpack.c.bf16 %v3528_v51, %v3527_v37  ;;  %v3718_v36 = vld [vmem:[#allocation2 + $0x88] sm:$0xff]  ;;  %v3731_v6 = vld [vmem:[#allocation2 + $0xf0] sm:$0xff] }
 0x782   :  { %v3450_v62 = vrot.slane %v8938_v53, %v6223_v46  ;;  %v8948_v40 = vmax.f32 %v3378_v2, %v4331_v41  ;;  %v3454_v38 = vrot.slane %v8940_v20, %v6223_v46  ;;  %v3461_v54 = vsel %vm1076_vm15, %v3442_v11, %v3460_v3  ;;  %v3702_v52 = vld [vmem:[#allocation2 + $0x8] sm:$0xff]  ;;  %v3720_v3 = vld [vmem:[#allocation2 + $0x98] sm:$0xff] }
 0x783   :  { %v3467_v27 = vsel %vm1127_vm5, 0.0, %v3461_v54  ;;  %v3473_v1 = vsel %vm1074_vm14, %v3442_v11, %v3472_v43  ;;  %v5231_v28 = vpack.c.bf16 %v3530_v22, %v3529_v15  ;;  %v3701_v11 = vld [vmem:[#allocation2] sm:$0xff]  ;;  %v5233_v41 = vpack.c.bf16 %v3718_v36, %v3717_v44  ;;  %v3703_v54 = vld [vmem:[#allocation2 + $0x10] sm:$0xff]  ;;  %v3704_v43 = vld [vmem:[#allocation2 + $0x18] sm:$0xff] }
 0x784   :  { %v3462_v32 = vsel %vm1072_vm13, %v3450_v62, %v3446_v31  ;;  %v3458_v4 = vrot.slane %v8948_v40, %v6223_v46  ;;  %v3474_v60 = vsel %vm1090_vm12, %v3450_v62, %v3446_v31  ;;  %v3469_v48 = vsel %vm147_vm1, %v3467_v27, 0.0  ;;  %v3719_v31 = vld [vmem:[#allocation2 + $0x90] sm:$0xff]  ;;  %v3706_v27 = vld [vmem:[#allocation2 + $0x28] sm:$0xff]  ;;  %v3716_v15 = vld [vmem:[#allocation2 + $0x78] sm:$0xff] }
 0x785   :  { %v3463_v14 = vsel %vm1074_vm14, %v3454_v38, %v3462_v32  ;;  %v3475_v45 = vsel %vm1072_vm13, %v3454_v38, %v3474_v60  ;;  %v3479_v2 = vrot.slane %v3469_v48, 2  ;;  %v5235_v62 = vpack.c.bf16 %v3702_v52, %v3701_v11  ;;  %v3721_v32 = vld [vmem:[#allocation2 + $0xa0] sm:$0xff]  ;;  %v3714_v34 = vld [vmem:[#allocation2 + $0x68] sm:$0xff] }
 0x786   :  { %v3464_v17 = vsel %vm1076_vm15, %v3458_v4, %v3463_v14  ;;  %v3476_v13 = vsel %vm1074_vm14, %v3458_v4, %v3475_v45  ;;  %v5237_v38 = vpack.c.bf16 %v3720_v3, %v3719_v31  ;;  %v3722_v4 = vld [vmem:[#allocation2 + $0xa8] sm:$0xff]  ;;  %v5239_v60 = vpack.c.bf16 %v3704_v43, %v3703_v54  ;;  %v3705_v45 = vld [vmem:[#allocation2 + $0x20] sm:$0xff] }
 0x787   :  { %v4334_v33 = vcombine.low %v3473_v1, %v3476_v13  ;;  %v3468_v25 = vsel %vm1127_vm5, 0.0, %v3464_v17  ;;  %v5241_v14 = vpack.c.bf16 %v3722_v4, %v3721_v32  ;;  %v5243_v17 = vpack.c.bf16 %v3706_v27, %v3705_v45  ;;  %v3707_v13 = vld [vmem:[#allocation2 + $0x30] sm:$0xff]  ;;  %v3733_v43 = vld [vmem:[#allocation2 + $0x100] sm:$0xff]  ;;  %v3734_v32 = vld [vmem:[#allocation2 + $0x108] sm:$0xff] }
 0x788   :  { %v3470_v39 = vsel %vm147_vm1, %v3468_v25, 0.0  ;;  %v5245_v1 = vpack.c.bf16 %v3724_v42, %v3723_v5  ;;  %v3725_v25 = vld [vmem:[#allocation2 + $0xc0] sm:$0xff]  ;;  %v5255_v19 = vpack.c.bf16 %v3712_v26, %v3711_v56  ;;  %v5266_v45 = vpack.c.bf16 %v3734_v32, %v3733_v43  ;;  %v3735_v5 = vld [vmem:[#allocation2 + $0x110] sm:$0xff]  ;;  %v3736_v42 = vld [vmem:[#allocation2 + $0x118] sm:$0xff] }
 0x789   :  { %3608 = vmatprep.mubr.f32.mxu1 %v4334_v33  ;;  %v4333_v35 = vcombine.low %v3469_v48, %v3470_v39  ;;  %v3480_v59 = vrot.slane %v3470_v39, 2  ;;  %v3708_v33 = vld [vmem:[#allocation2 + $0x38] sm:$0xff]  ;;  %v3726_v48 = vld [vmem:[#allocation2 + $0xc8] sm:$0xff]  ;;  %v3747_v26 = vld [vmem:[#allocation2 + $0x170] sm:$0xff] }
 0x78a   :  { %v5247_v39 = vpack.c.bf16 %v3708_v33, %v3707_v13  ;;  %v3738_v13 = vld [vmem:[#allocation2 + $0x128] sm:$0xff]  ;;  %v4027_v43 = vld [vmem:[%s9292_s13 + $0xc0] sm:$0xff] }
 0x78b   :  { %3609 = vmatmul.mubr.f32.vlgmr.msra.gmra.mrb[30].mxu1 %v4333_v35  ;;  %v3540_v58 = vcombine.low %v3479_v2, %v3480_v59  ;;  %v3709_v35 = vld [vmem:[#allocation2 + $0x40] sm:$0xff]  ;;  %v3746_v56 = vld [vmem:[#allocation2 + $0x168] sm:$0xff] }
 0x78c   :  { %5211 = vmatpush3.bf16.msra.mxu1 %v5210_v10  ;;  %4545 = vmatprep.mubr.msk.f32.mxu1 %vm5521_vm2, %v9369_v21  ;;  %v5249_v10 = vpack.c.bf16 %v3726_v48, %v3725_v25  ;;  %v5251_v47 = vpack.c.bf16 %v3710_v24, %v3709_v35  ;;  %v3739_v25 = vld [vmem:[#allocation2 + $0x130] sm:$0xff]  ;;  %v3740_v48 = vld [vmem:[#allocation2 + $0x138] sm:$0xff]  ;;  %v3742_v35 = vld [vmem:[#allocation2 + $0x148] sm:$0xff] }
 0x78d   :  { %5212 = vmatprep.subr.bf16.mxu1 %v9368_v16  ;;  %v4028_v32 = vld [vmem:[%s9292_s13 + $0xc8] sm:$0xff] }
 0x790   :  { %5214 = vmatpush3.bf16.msra.mxu1 %v5213_v50  ;;  %v3727_v50 = vld [vmem:[#allocation2 + $0xd0] sm:$0xff] }
 0x791   :  { %5215 = vmatprep.subr.bf16.mxu1 %v9368_v16 }
 0x794   :  { %5217 = vmatpush3.bf16.msra.mxu1 %v5216_v23  ;;  %v5253_v23 = vpack.c.bf16 %v3728_v18, %v3727_v50  ;;  %v3745_v18 = vld [vmem:[#allocation2 + $0x160] sm:$0xff] }
 0x795   :  { %5218 = vmatprep.subr.bf16.mxu1 %v9368_v16 }
 0x798   :  { %5220 = vmatpush3.bf16.msra.mxu1 %v5219_v61  ;;  %v3730_v61 = vld [vmem:[#allocation2 + $0xe8] sm:$0xff] }
 0x799   :  { %5221 = vmatprep.subr.bf16.mxu1 %v9368_v16  ;;  %v5257_v63 = vpack.c.bf16 %v3730_v61, %v3729_v49  ;;  %v3748_v49 = vld [vmem:[#allocation2 + $0x178] sm:$0xff] }
 0x79a   :  { %v5287_v61 = vpack.c.bf16 %v3748_v49, %v3747_v26  ;;  %v4052_v26 = vld [vmem:[%s9292_s13 + $0x188] sm:$0xff] }
 0x79c   :  { %5223 = vmatpush3.bf16.msra.mxu1 %v5222_v30  ;;  %v3713_v30 = vld [vmem:[#allocation2 + $0x60] sm:$0xff] }
 0x79d   :  { %5224 = vmatprep.subr.bf16.mxu1 %v9368_v16  ;;  %v5259_v37 = vpack.c.bf16 %v3714_v34, %v3713_v30  ;;  %v4019_v34 = vld [vmem:[%s9292_s13 + $0x80] sm:$0xff] }
 0x7a0   :  { %5226 = vmatpush3.bf16.msra.mxu1 %v5225_v29  ;;  %v3732_v29 = vld [vmem:[#allocation2 + $0xf8] sm:$0xff] }
 0x7a1   :  { %5227 = vmatprep.subr.bf16.mxu1 %v9368_v16  ;;  %v5261_v51 = vpack.c.bf16 %v3732_v29, %v3731_v6  ;;  %v4020_v6 = vld [vmem:[%s9292_s13 + $0x88] sm:$0xff]  ;;  %v4003_v29 = vld [vmem:[%s9292_s13] sm:$0xff] }
 0x7a4   :  { %5229 = vmatpush3.bf16.msra.mxu1 %v5228_v7  ;;  %v3715_v7 = vld [vmem:[#allocation2 + $0x70] sm:$0xff] }
 0x7a5   :  { %5230 = vmatprep.subr.bf16.mxu1 %v9368_v16  ;;  %v5263_v22 = vpack.c.bf16 %v3716_v15, %v3715_v7  ;;  %v4022_v7 = vld [vmem:[%s9292_s13 + $0x98] sm:$0xff] }
 0x7a8   :  { %5232 = vmatpush3.bf16.msra.mxu1 %v5231_v28 }
 0x7a9   :  { %5234 = vmatprep.subr.bf16.mxu1 %v5233_v41 }
 0x7ab   :  { %4546 = vmatmul.mubr.f32.vlgmr.msra.gmra.mrb[32].mxu1 %v3540_v58  ;;  %v4332_v58 = vld [vmem:[%s9289_s10] ss:$0 sm:$0xff] }
 0x7ac   :  { %5236 = vmatpush3.bf16.msra.mxu1 %v5235_v62 }
 0x7ad   :  { %5238 = vmatprep.subr.bf16.mxu1 %v5237_v38 }
 0x7b0   :  { %5240 = vmatpush3.bf16.msra.mxu1 %v5239_v60 }
 0x7b1   :  { %5242 = vmatprep.subr.bf16.mxu1 %v5241_v14 }
 0x7b4   :  { %5244 = vmatpush3.bf16.msra.mxu1 %v5243_v17  ;;  %v5269_v17 = vpack.c.bf16 %v3736_v42, %v3735_v5  ;;  %v4030_v5 = vld [vmem:[%s9292_s13 + $0xd8] sm:$0xff] }
 0x7b5   :  { %5246 = vmatprep.subr.bf16.mxu1 %v5245_v1  ;;  %v3737_v1 = vld [vmem:[#allocation2 + $0x120] sm:$0xff] }
 0x7b6   :  { %v5272_v33 = vpack.c.bf16 %v3738_v13, %v3737_v1  ;;  %v4013_v1 = vld [vmem:[%s9292_s13 + $0x50] sm:$0xff]  ;;  %v4014_v13 = vld [vmem:[%s9292_s13 + $0x58] sm:$0xff] }
 0x7b8   :  { %5248 = vmatpush3.bf16.msra.mxu1 %v5247_v39  ;;  %v5275_v39 = vpack.c.bf16 %v3740_v48, %v3739_v25  ;;  %v4032_v25 = vld [vmem:[%s9292_s13 + $0xe8] sm:$0xff]  ;;  %v5311_v48 = vpack.c.bf16 %v4014_v13, %v4013_v1 }
 0x7b9   :  { %5250 = vmatprep.subr.bf16.mxu1 %v5249_v10  ;;  %v3741_v10 = vld [vmem:[#allocation2 + $0x140] sm:$0xff] }
 0x7ba   :  { %v5278_v24 = vpack.c.bf16 %v3742_v35, %v3741_v10  ;;  %v4015_v10 = vld [vmem:[%s9292_s13 + $0x60] sm:$0xff]  ;;  %v4016_v35 = vld [vmem:[%s9292_s13 + $0x68] sm:$0xff] }
 0x7bc   :  { %5252 = vmatpush3.bf16.msra.mxu1 %v5251_v47  ;;  %v3744_v47 = vld [vmem:[#allocation2 + $0x158] sm:$0xff] }
 0x7bd   :  { %5254 = vmatprep.subr.bf16.mxu1 %v5253_v23  ;;  %v5284_v23 = vpack.c.bf16 %v3746_v56, %v3745_v18  ;;  %v4017_v18 = vld [vmem:[%s9292_s13 + $0x70] sm:$0xff]  ;;  %v4018_v56 = vld [vmem:[%s9292_s13 + $0x78] sm:$0xff] }
 0x7be   :  { %v5319_v49 = vpack.c.bf16 %v4018_v56, %v4017_v18 }
 0x7c0   :  { %5256 = vmatpush3.bf16.msra.mxu1 %v5255_v19 }
 0x7c1   :  { %5258 = vmatprep.subr.bf16.mxu1 %v5257_v63 }
 0x7c4   :  { %5260 = vmatpush3.bf16.msra.mxu1 %v5259_v37  ;;  %v5289_v37 = vpack.c.bf16 %v4020_v6, %v4019_v34  ;;  %v4335_v34 = vld [vmem:[%s9291_s12] ss:$0 sm:$0xff] }
 0x7c5   :  { %5262 = vmatprep.subr.bf16.mxu1 %v5261_v51  ;;  %v4021_v51 = vld [vmem:[%s9292_s13 + $0x90] sm:$0xff] }
 0x7c8   :  { %5264 = vmatpush3.bf16.msra.mxu1 %v5263_v22  ;;  %v5293_v22 = vpack.c.bf16 %v4022_v7, %v4021_v51 }
 0x7c9   :  { %5265 = vmatprep.subr.bf16.mxu1 %v9368_v16 }
 0x85e   :  { %v4371_v28 = vpop.f32.mrb[30].mxu1 }
 0x85f   :  { %v4372_v59 = vpop.f32.mrb[31].mxu1 }
 0x860   :  { %v4373_v2 = vadd.f32 %v4372_v59, %v4371_v28  ;;  %v4005_v28 = vld [vmem:[%s9292_s13 + $0x10] sm:$0xff]  ;;  %v4006_v59 = vld [vmem:[%s9292_s13 + $0x18] sm:$0xff] }
 0x862   :  { %v3611_v44 = vadd.f32 %v4373_v2, %v4332_v58  ;;  %v5295_v2 = vpack.c.bf16 %v4006_v59, %v4005_v28  ;;  %v4023_v58 = vld [vmem:[%s9292_s13 + $0xa0] sm:$0xff] }
 0x87e   :  { %v3680_v36 = vpop.f32.mrb[32].mxu1 }
 0x87f   :  { %v3681_v11 = vadd.f32 %v3680_v36, %v3611_v44  ;;  %v4547_v41 = vpop.f32.mrb[33].mxu1  ;;  %v4024_v44 = vld [vmem:[%s9292_s13 + $0xa8] sm:$0xff]  ;;  %v4007_v36 = vld [vmem:[%s9292_s13 + $0x20] sm:$0xff] }
 0x880   :  { %v4008_v41 = vld [vmem:[%s9292_s13 + $0x28] sm:$0xff] }
 0x881   :  { %v3684_v52 = vmax.f32 %v3681_v11, 0.0  ;;  %v5297_v11 = vpack.c.bf16 %v4024_v44, %v4023_v58 }
 0x883   :  { %v3686_v31 = vcombine.high %v3684_v52, %v3684_v52  ;;  %v3687_v3 = vrot.slane %v3684_v52, 7 }
 0x885   :  { %v3688_v62 = vrot.slane %v3686_v31, 7  ;;  %v3691_v38 = vsel %vm1127_vm5, 0.0, %v3687_v3  ;;  %v4337_v54 = vcombine.low %v3684_v52, %v3686_v31  ;;  %v4025_v52 = vld [vmem:[%s9292_s13 + $0xb0] sm:$0xff]  ;;  %v4026_v31 = vld [vmem:[%s9292_s13 + $0xb8] sm:$0xff]  ;;  %v5299_v3 = vpack.c.bf16 %v4008_v41, %v4007_v36 }
 0x886   :  { %v3693_v60 = vsel %vm147_vm1, %v3691_v38, 0.0  ;;  %v4009_v38 = vld [vmem:[%s9292_s13 + $0x30] sm:$0xff] }
 0x887   :  { %3826 = vmatprep.mubr.f32.mxu1 %v4337_v54  ;;  %v3692_v4 = vsel %vm1127_vm5, 0.0, %v3688_v62  ;;  %v3697_v63 = vrot.slane %v3693_v60, 2  ;;  %v5301_v62 = vpack.c.bf16 %v4026_v31, %v4025_v52  ;;  %v4010_v54 = vld [vmem:[%s9292_s13 + $0x38] sm:$0xff]  ;;  %v5522_v31 = vmov 1935823168  }
 0x888   :  { %v3694_v14 = vsel %vm147_vm1, %v3692_v4, 0.0  ;;  %v5303_v4 = vpack.c.bf16 %v4010_v54, %v4009_v38 }
 0x889   :  { %v4336_v27 = vcombine.low %v3693_v60, %v3694_v14  ;;  %v3698_v19 = vrot.slane %v3694_v14, 2  ;;  %v5305_v60 = vpack.c.bf16 %v4028_v32, %v4027_v43  ;;  %v4011_v14 = vld [vmem:[%s9292_s13 + $0x40] sm:$0xff] }
 0x88b   :  { %3827 = vmatmul.mubr.f32.vlgmr.msra.gmra.mrb[34].mxu1 %v4336_v27  ;;  %v3758_v30 = vcombine.low %v3697_v63, %v3698_v19  ;;  %v4029_v27 = vld [vmem:[%s9292_s13 + $0xd0] sm:$0xff] }
 0x88c   :  { %5267 = vmatpush3.bf16.msra.mxu1 %v5266_v45  ;;  %4580 = vmatprep.mubr.msk.f32.mxu1 %vm5521_vm2, %v9369_v21  ;;  %v3743_v21 = vld [vmem:[#allocation2 + $0x150] sm:$0xff]  ;;  %v4012_v45 = vld [vmem:[%s9292_s13 + $0x48] sm:$0xff] }
 0x88d   :  { %5268 = vmatprep.subr.bf16.mxu1 %v9368_v16  ;;  %v5281_v50 = vpack.c.bf16 %v3744_v47, %v3743_v21  ;;  %v5307_v42 = vpack.c.bf16 %v4012_v45, %v4011_v14  ;;  %v4034_v21 = vld [vmem:[%s9292_s13 + $0xf8] sm:$0xff]  ;;  %v5315_v47 = vpack.c.bf16 %v4016_v35, %v4015_v10 }
 0x890   :  { %5270 = vmatpush3.bf16.msra.mxu1 %v5269_v17  ;;  %v5309_v17 = vpack.c.bf16 %v4030_v5, %v4029_v27 }
 0x891   :  { %5271 = vmatprep.subr.bf16.mxu1 %v9368_v16 }
 0x894   :  { %5273 = vmatpush3.bf16.msra.mxu1 %v5272_v33  ;;  %v4031_v33 = vld [vmem:[%s9292_s13 + $0xe0] sm:$0xff] }
 0x895   :  { %5274 = vmatprep.subr.bf16.mxu1 %v9368_v16 }
 0x898   :  { %5276 = vmatpush3.bf16.msra.mxu1 %v5275_v39  ;;  %v5313_v39 = vpack.c.bf16 %v4032_v25, %v4031_v33  ;;  %v9370_v25 = vld [vmem:[#allocation8_spill] sm:$0xff] }
 0x899   :  { %5277 = vmatprep.subr.bf16.mxu1 %v9368_v16 }
 0x89c   :  { %5279 = vmatpush3.bf16.msra.mxu1 %v5278_v24  ;;  %v4033_v24 = vld [vmem:[%s9292_s13 + $0xf0] sm:$0xff] }
 0x89d   :  { %5280 = vmatprep.subr.bf16.mxu1 %v9368_v16 }
 0x8a0   :  { %5282 = vmatpush3.bf16.msra.mxu1 %v5281_v50  ;;  %v5317_v50 = vpack.c.bf16 %v4034_v21, %v4033_v24 }
 0x8a1   :  { %5283 = vmatprep.subr.bf16.mxu1 %v9368_v16 }
 0x8a4   :  { %5285 = vmatpush3.bf16.msra.mxu1 %v5284_v23  ;;  %v4051_v23 = vld [vmem:[%s9292_s13 + $0x180] sm:$0xff] }
 0x8a5   :  { %5286 = vmatprep.subr.bf16.mxu1 %v9368_v16  ;;  %v4004_v16 = vld [vmem:[%s9292_s13 + $0x8] sm:$0xff] }
 0x8a6   :  { %v5291_v15 = vpack.c.bf16 %v4004_v16, %v4003_v29 }
 0x8a8   :  { %5288 = vmatpush3.bf16.msra.mxu1 %v5287_v61  ;;  %v5321_v61 = vpack.c.bf16 %v4052_v26, %v4051_v23  ;;  %v4054_v23 = vld [vmem:[%s9292_s13 + $0x198] sm:$0xff] }
 0x8a9   :  { %5290 = vmatprep.subr.bf16.mxu1 %v5289_v37 }
 0x8ab   :  { %4581 = vmatmul.mubr.f32.vlgmr.msra.gmra.mrb[36].mxu1 %v3758_v30 }
 0x8ac   :  { %5292 = vmatpush3.bf16.msra.mxu1 %v5291_v15 }
 0x8ad   :  { %5294 = vmatprep.subr.bf16.mxu1 %v5293_v22 }
 0x8b0   :  { %5296 = vmatpush3.bf16.msra.mxu1 %v5295_v2 }
 0x8b1   :  { %5298 = vmatprep.subr.bf16.mxu1 %v5297_v11 }
 0x8b4   :  { %5300 = vmatpush3.bf16.msra.mxu1 %v5299_v3  ;;  %v3997_v3 = vunpack.c.l.s4 %v5522_v31  ;;  %v4061_v31 = vld [vmem:[%s9292_s13 + $0x1d0] sm:$0xff] }
 0x8b5   :  { %5302 = vmatprep.subr.bf16.mxu1 %v5301_v62 }
 0x8b6   :  { %v3998_v5 = vunpack.c.0.s8 %v3997_v3  ;;  %v4062_v3 = vld [vmem:[%s9292_s13 + $0x1d8] sm:$0xff] }
 0x8b8   :  { %5304 = vmatpush3.bf16.msra.mxu1 %v5303_v4 }
 0x8b9   :  { %5306 = vmatprep.subr.bf16.mxu1 %v5305_v60 }
 0x8bc   :  { %5308 = vmatpush3.bf16.msra.mxu1 %v5307_v42 }
 0x8bd   :  { %5310 = vmatprep.subr.bf16.mxu1 %v5309_v17 }
 0x8c0   :  { %5312 = vmatpush3.bf16.msra.mxu1 %v5311_v48  ;;  %v4001_v48 = vsub.s32 %v3998_v5, %v9370_v25  ;;  %v4050_v5 = vld [vmem:[%s9292_s13 + $0x178] sm:$0xff] }
 0x8c1   :  { %5314 = vmatprep.subr.bf16.mxu1 %v5313_v39 }
 0x8c4   :  { %5316 = vmatpush3.bf16.msra.mxu1 %v5315_v47  ;;  %v4035_v47 = vld [vmem:[%s9292_s13 + $0x100] sm:$0xff] }
 0x8c5   :  { %5318 = vmatprep.subr.bf16.mxu1 %v5317_v50  ;;  %v4036_v50 = vld [vmem:[%s9292_s13 + $0x108] sm:$0xff] }
 0x8c8   :  { %5320 = vmatpush3.bf16.msra.mxu1 %v5319_v49  ;;  %v5323_v49 = vpack.c.bf16 %v4036_v50, %v4035_v47 }
 0x8c9   :  { %5322 = vmatprep.subr.bf16.mxu1 %v5321_v61 }
 0x95e   :  { %v4423_v19 = vpop.f32.mrb[34].mxu1 }
 0x95f   :  { %v4424_v63 = vpop.f32.mrb[35].mxu1 }
 0x960   :  { %v4425_v30 = vadd.f32 %v4424_v63, %v4423_v19  ;;  %v4037_v63 = vld [vmem:[%s9292_s13 + $0x110] sm:$0xff] }
 0x962   :  { %v3829_v6 = vadd.f32 %v4425_v30, %v4335_v34  ;;  %v4038_v30 = vld [vmem:[%s9292_s13 + $0x118] sm:$0xff] }
 0x97e   :  { %v3898_v29 = vpop.f32.mrb[36].mxu1 }
 0x97f   :  { %v3899_v37 = vadd.f32 %v3898_v29, %v3829_v6  ;;  %v4582_v16 = vpop.f32.mrb[37].mxu1  ;;  %v4055_v6 = vld [vmem:[%s9292_s13 + $0x1a0] sm:$0xff]  ;;  %v4056_v29 = vld [vmem:[%s9292_s13 + $0x1a8] sm:$0xff] }
 0x980   :  { %v4039_v16 = vld [vmem:[%s9292_s13 + $0x120] sm:$0xff] }
 0x981   :  { %v3903_v51 = vcombine.high %v3899_v37, %v3899_v37  ;;  %v3910_v7 = vrot.slane %v3899_v37, %v6239_v8  ;;  %v5329_v37 = vpack.c.bf16 %v4056_v29, %v4055_v6 }
 0x983   :  { %v3917_v15 = vrot.slane %v3903_v51, %v6239_v8  ;;  %v3918_v22 = vcombine.high %v3910_v7, %v3910_v7  ;;  %v3920_v28 = vrot.slane %v3910_v7, 1  ;;  %v3932_v59 = vadd.f32 %v3910_v7, %v8917_v57  ;;  %v4040_v51 = vld [vmem:[%s9292_s13 + $0x128] sm:$0xff]  ;;  %v4057_v7 = vld [vmem:[%s9292_s13 + $0x1b0] sm:$0xff] }
 0x985   :  { %v3919_v2 = vcombine.high %v3917_v15, %v3917_v15  ;;  %v3921_v58 = vrot.slane %v3918_v22, 1  ;;  %v3922_v44 = vrot.slane %v3917_v15, 1  ;;  %v3933_v36 = vadd.f32 %v3920_v28, %v8920_v55 }
 0x986   :  { %v3934_v11 = vadd.f32 %v3918_v22, %v8922_v9  ;;  %v3936_v41 = vadd.f32 %v3917_v15, %v8933_v0  ;;  %v3940_v52 = vmax.f32 %v3932_v59, 0.0  ;;  %v4058_v15 = vld [vmem:[%s9292_s13 + $0x1b8] sm:$0xff]  ;;  %v5331_v22 = vpack.c.bf16 %v4040_v51, %v4039_v16  ;;  %v4041_v59 = vld [vmem:[%s9292_s13 + $0x130] sm:$0xff] }
 0x987   :  { %v3923_v62 = vrot.slane %v3919_v2, 1  ;;  %v3935_v38 = vadd.f32 %v3921_v58, %v8929_v12  ;;  %v3937_v54 = vadd.f32 %v3922_v44, %v8938_v53  ;;  %v3938_v43 = vadd.f32 %v3919_v2, %v8940_v20  ;;  %v4042_v2 = vld [vmem:[%s9292_s13 + $0x138] sm:$0xff]  ;;  %v4059_v58 = vld [vmem:[%s9292_s13 + $0x1c0] sm:$0xff]  ;;  %v4060_v44 = vld [vmem:[%s9292_s13 + $0x1c8] sm:$0xff] }
 0x988   :  { %v3941_v57 = vmax.f32 %v3933_v36, 0.0  ;;  %v3942_v32 = vmax.f32 %v3934_v11, 0.0  ;;  %v3944_v55 = vmax.f32 %v3936_v41, 0.0  ;;  %v3959_v9 = vrot.slane %v3940_v52, %v6223_v46  ;;  %v4043_v41 = vld [vmem:[%s9292_s13 + $0x140] sm:$0xff]  ;;  %v4044_v52 = vld [vmem:[%s9292_s13 + $0x148] sm:$0xff] }
 0x989   :  { %v3939_v4 = vadd.f32 %v3923_v62, %v8948_v40  ;;  %v3943_v60 = vmax.f32 %v3935_v38, 0.0  ;;  %v3945_v14 = vmax.f32 %v3937_v54, 0.0  ;;  %v3946_v27 = vmax.f32 %v3938_v43, 0.0  ;;  %v4045_v54 = vld [vmem:[%s9292_s13 + $0x150] sm:$0xff]  ;;  %v4046_v43 = vld [vmem:[%s9292_s13 + $0x158] sm:$0xff] }
 0x98a   :  { %v3963_v0 = vrot.slane %v3941_v57, %v6223_v46  ;;  %v3967_v45 = vrot.slane %v3942_v32, %v6223_v46  ;;  %v3975_v42 = vrot.slane %v3944_v55, %v6223_v46  ;;  %v5333_v28 = vpack.c.bf16 %v4058_v15, %v4057_v7  ;;  %v4063_v57 = vld [vmem:[%s9292_s13 + $0x1e0] sm:$0xff]  ;;  %v4064_v32 = vld [vmem:[%s9292_s13 + $0x1e8] sm:$0xff] }
 0x98b   :  { %v3971_v12 = vrot.slane %v3943_v60, %v6223_v46  ;;  %v3947_v53 = vmax.f32 %v3939_v4, 0.0  ;;  %v3979_v17 = vrot.slane %v3945_v14, %v6223_v46  ;;  %v3983_v13 = vrot.slane %v3946_v27, %v6223_v46  ;;  %v4047_v55 = vld [vmem:[%s9292_s13 + $0x160] sm:$0xff]  ;;  %v4048_v14 = vld [vmem:[%s9292_s13 + $0x168] sm:$0xff] }
 0x98c   :  { %v3988_v20 = vsel %vm1090_vm12, %v3963_v0, %v3959_v9  ;;  %v5335_v36 = vpack.c.bf16 %v4042_v2, %v4041_v59  ;;  %v5337_v11 = vpack.c.bf16 %v4060_v44, %v4059_v58  ;;  %v5339_v62 = vpack.c.bf16 %v4044_v52, %v4043_v41  ;;  %v4065_v9 = vld [vmem:[%s9292_s13 + $0x1f0] sm:$0xff]  ;;  %v4066_v0 = vld [vmem:[%s9292_s13 + $0x1f8] sm:$0xff] }
 0x98d   :  { %v3989_v40 = vsel %vm1072_vm13, %v3967_v45, %v3988_v20  ;;  %v3987_v39 = vrot.slane %v3947_v53, %v6223_v46  ;;  %v4053_v46 = vld [vmem:[%s9292_s13 + $0x190] sm:$0xff]  ;;  %v5341_v38 = vpack.c.bf16 %v4062_v3, %v4061_v31  ;;  %v5343_v4 = vpack.c.bf16 %v4046_v43, %v4045_v54 }
 0x98e   :  { %v3990_v1 = vsel %vm1074_vm14, %v3971_v12, %v3989_v40  ;;  %v5325_v19 = vpack.c.bf16 %v4054_v23, %v4053_v46  ;;  %v5345_v60 = vpack.c.bf16 %v4064_v32, %v4063_v57  ;;  %v5347_v45 = vpack.c.bf16 %v4048_v14, %v4047_v55  ;;  %v4049_v12 = vld [vmem:[%s9292_s13 + $0x170] sm:$0xff]  ;;  %s5483_s13 = scalar_lea.vmem %s4244_s1, 32 }
 0x98f   :  { %v3991_v33 = vsel %vm1076_vm15, %v3975_v42, %v3990_v1  ;;  %v5349_v27 = vpack.c.bf16 %v4066_v0, %v4065_v9  ;;  %v5351_v53 = vpack.c.bf16 %v4050_v5, %v4049_v12  ;;  %p5484_p8 = scmp.ne.s32.totalorder %s4244_s1, %s5483_s13  ;;  %p5489_p10 = scmp.lt.s32.totalorder %s5483_s13, %s5483_s13 }
 0x990   :  { %v3992_v10 = vsel %vm1078_vm0, %v3979_v17, %v3991_v33  ;;  %v4338_v17 = vld [vmem:[%s9293_s14] ss:$0 sm:$0xff] }
 0x991   :  { %v3993_v35 = vsel %vm1080_vm3, %v3983_v13, %v3992_v10  ;;  %p5490_p11 = por %p5489_p10, %p5488_p9 }
 0x992   :  { %v3994_v24 = vsel %vm1082_vm4, %v3987_v39, %v3993_v35 }
 0x993   :  { %v4002_v21 = vrot.slane %v3994_v24, %v4001_v48  ;;  %p5491_p12 = pnand %p5490_p11, %p5484_p8 }
 0x995   :  { %v4082_v18 = vrot.slane %v4002_v21, %v6239_v8  ;;  %v4075_v56 = vcombine.high %v4002_v21, %v4002_v21 }
 0x997   :  { %v4090_v26 = vcombine.high %v4082_v18, %v4082_v18  ;;  %v4089_v61 = vrot.slane %v4075_v56, %v6239_v8  ;;  %v5327_v8 = vpack.c.bf16 %v4038_v30, %v4037_v63 }
 0x999   :  { %4160 = vmatprep.mubr.f32.mxu1 %v4090_v26  ;;  %v4091_v34 = vcombine.high %v4089_v61, %v4089_v61 }
 0x99a   :  { %4161 = vmatmul.mubr.f32.vlgmr.msra.gmra.mrb[38].mxu1 %v4082_v18 }
 0x99b   :  { %5324 = vmatpush3.bf16.msra.mxu1 %v5323_v49  ;;  %4230 = vmatprep.mubr.f32.mxu1 %v4091_v34 }
 0x99c   :  { %5326 = vmatprep.subr.bf16.mxu1 %v5325_v19 }
 0x99f   :  { %5328 = vmatpush3.bf16.msra.mxu1 %v5327_v8 }
 0x9a0   :  { %5330 = vmatprep.subr.bf16.mxu1 %v5329_v37 }
 0x9a3   :  { %5332 = vmatpush3.bf16.msra.mxu1 %v5331_v22 }
 0x9a4   :  { %5334 = vmatprep.subr.bf16.mxu1 %v5333_v28 }
 0x9a7   :  { %5336 = vmatpush3.bf16.msra.mxu1 %v5335_v36 }
 0x9a8   :  { %5338 = vmatprep.subr.bf16.mxu1 %v5337_v11 }
 0x9ab   :  { %5340 = vmatpush3.bf16.msra.mxu1 %v5339_v62 }
 0x9ac   :  { %5342 = vmatprep.subr.bf16.mxu1 %v5341_v38 }
 0x9af   :  { %5344 = vmatpush3.bf16.msra.mxu1 %v5343_v4 }
 0x9b0   :  { %5346 = vmatprep.subr.bf16.mxu1 %v5345_v60 }
 0x9b3   :  { %5348 = vmatpush3.bf16.msra.mxu1 %v5347_v45 }
 0x9b4   :  { %5350 = vmatprep.subr.bf16.mxu1 %v5349_v27 }
 0x9b7   :  { %5352 = vmatpush3.bf16.msra.mxu1 %v5351_v53 }
 0x9ba   :  { %4231 = vmatmul.mubr.f32.vlgmr.msra.gmra.mrb[40].mxu1 %v4089_v61 }
 0xa6d   :  { %v4475_v20 = vpop.f32.mrb[38].mxu1 }
 0xa6e   :  { %v4476_v42 = vpop.f32.mrb[39].mxu1 }
 0xa6f   :  { %v4477_v40 = vadd.f32 %v4476_v42, %v4475_v20 }
 0xa71   :  { %v4163_v33 = vadd.f32 %v4477_v40, %v4338_v17 }
 0xa8d   :  { %v4510_v1 = vpop.f32.mrb[40].mxu1 }
 0xa8e   :  { %v4511_v13 = vpop.f32.mrb[41].mxu1 }
 0xa8f   :  { %v4512_v25 = vadd.f32 %v4511_v13, %v4510_v1 }
 0xa91   :  { %v4233_v48 = vadd.f32 %v4512_v25, %v4163_v33 }
 0xa93   :  { %4236 = vst [vmem:[#allocation5] sm:$0x3] %v4233_v48 }
 0xa94   :  { %5494 = shalt.err (!%p5491_p12)
}
 0xa95   :  { %s5495_s14 = scalar_lea.hbm %s9294_s15, 32 }
 0xa96   :  { %p5496_p13 = scmp.ne.s32.totalorder %s9294_s15, %s5495_s14  ;;  %p5499_p0 = scmp.lt.u32.totalorder %s5495_s14, %s9294_s15 }
 0xa98   :  { %p5501_p1 = pnand %p5499_p0, %p5496_p13 }
 0xa9a   :  { %5504 = shalt.err (!%p5501_p1)
}
 0xa9b   :  { %4246 = dma.vmem_to_hbm [thread:$0]  %s4244_s1, 32, %s9294_s15, [#allocation4]  }
 0xa9c   :  { %5507 = dma.done.wait [#allocation4], 32  }
 0xa9d   :  { %5508 = vsyncadd [#allocation4], 4294967264 }
 0xa9e   :  { %4250 = vsyncpa [#allocation3], 1 }
 0xa9f   :  { %4251 = vsyncpa [#allocation4], 1 }

</bundles_post_ra>
